<compile_context>
chip_gen: v7x
topology: tpu7x:2x2x1
jax: 0.10.0
libtpu: 0.0.40
codegen_flags: <defaults>
</compile_context>

<pallas_src>
import functools

import jax
import jax.numpy as jnp
from jax.experimental import pallas as pl
from jax.experimental.pallas import tpu as pltpu

IN_FEATURES = 32 * 32 * 3   # 3072
HIDDEN = 512
OUT = 10
OUT_PAD = 128               # lane-dense output width


def fc4_kernel(x_ref, w1_ref, b1_ref, w2_ref, b2_ref, o_ref):
    # fc1: cast the f32 x tile to bf16 in-register, MXU bf16 x bf16 -> f32 acc.
    x = x_ref[...].astype(jnp.bfloat16)
    h = jnp.dot(x, w1_ref[...], preferred_element_type=jnp.float32)
    h = jnp.maximum(h + b1_ref[...], 0.0)          # b1 is (1, HIDDEN), broadcasts
    # dropout = identity (eval mode)
    # fc2 + ReLU: bf16 inputs, f32 accumulate, lane-dense (TB, 128) store.
    y = jnp.dot(h.astype(jnp.bfloat16), w2_ref[...],
                preferred_element_type=jnp.float32)
    o_ref[...] = jnp.maximum(y + b2_ref[...], 0.0).astype(o_ref.dtype)


def prepare_params(w1, b1, w2, b2):
    """One-time weight preparation (cast / pad / reshape). Reuse across calls."""
    w1_bf = w1.astype(jnp.bfloat16)                                          # (3072, 512)
    b1_2d = b1.reshape(1, HIDDEN).astype(jnp.float32)                        # (1, 512)
    w2_bf = jnp.pad(w2.astype(jnp.bfloat16), ((0, 0), (0, OUT_PAD - OUT)))   # (512, 128)
    b2_2d = jnp.pad(b2.astype(jnp.float32), (0, OUT_PAD - OUT)).reshape(1, OUT_PAD)
    return w1_bf, b1_2d, w2_bf, b2_2d


def _round_up(a, m):
    return ((a + m - 1) // m) * m


@functools.partial(jax.jit, static_argnames=("tile_b",))
def fc4_forward(x, params, *, tile_b=1024):
    """x: (B, 3072) f32; params = prepare_params(w1, b1, w2, b2)."""
    w1_bf, b1_2d, w2_bf, b2_2d = params
    B = x.shape[0]

    # Pad the batch only to the 8-row (f32 sublane) multiple — no pad-to-TB.
    B8 = _round_up(B, 8)
    if B8 != B:
        x = jnp.pad(x, ((0, B8 - B), (0, 0)))

    # Batch tile: aim for >= 2 grid steps (v7x has 2 TensorCores) while capping
    # the f32 x tile at tile_b rows for VMEM headroom.
    TB = min(tile_b, max(8, _round_up(pl.cdiv(B8, 2), 256)))
    TB = min(TB, B8)
    grid = (pl.cdiv(B8, TB),)   # last block may be partial; rows are independent

    out = pl.pallas_call(
        fc4_kernel,
        out_shape=jax.ShapeDtypeStruct((B8, OUT_PAD), jnp.float32),
        grid_spec=pltpu.PrefetchScalarGridSpec(
            num_scalar_prefetch=0,
            grid=grid,
            in_specs=[
                pl.BlockSpec((TB, IN_FEATURES), lambda i: (i, 0)),      # x streams (f32)
                pl.BlockSpec((IN_FEATURES, HIDDEN), lambda i: (0, 0)),  # w1 resident (bf16)
                pl.BlockSpec((1, HIDDEN), lambda i: (0, 0)),            # b1 resident
                pl.BlockSpec((HIDDEN, OUT_PAD), lambda i: (0, 0)),      # w2 resident (bf16)
                pl.BlockSpec((1, OUT_PAD), lambda i: (0, 0)),           # b2 resident
            ],
            out_specs=pl.BlockSpec((TB, OUT_PAD), lambda i: (i, 0)),
        ),
        compiler_params=pltpu.CompilerParams(
            dimension_semantics=("parallel",),   # megacore-shard the batch axis
            vmem_limit_bytes=48 << 20,           # ~31 MiB used at TB=1024; v7x-safe
        ),
    )(x, w1_bf, b1_2d, w2_bf, b2_2d)

    return out[:B, :OUT]


def init_params(key):
    # Deterministic init, mimicking PyTorch Linear's U(-1/sqrt(fan_in), +1/sqrt(fan_in)).
    k1, k2, k3, k4 = jax.random.split(key, 4)
    bound1 = 1.0 / jnp.sqrt(jnp.float32(IN_FEATURES))
    bound2 = 1.0 / jnp.sqrt(jnp.float32(HIDDEN))
    w1 = jax.random.uniform(k1, (IN_FEATURES, HIDDEN), jnp.float32, -bound1, bound1)
    b1 = jax.random.uniform(k2, (HIDDEN,), jnp.float32, -bound1, bound1)
    w2 = jax.random.uniform(k3, (HIDDEN, OUT), jnp.float32, -bound2, bound2)
    b2 = jax.random.uniform(k4, (OUT,), jnp.float32, -bound2, bound2)
    return w1, b1, w2, b2


def reference_forward(x, w1, b1, w2, b2):
    # Mirror the kernel's numerics: bf16 MXU inputs, f32 accumulation.
    xb = x.astype(jnp.bfloat16).astype(jnp.float32)
    w1b = w1.astype(jnp.bfloat16).astype(jnp.float32)
    h = jnp.maximum(xb @ w1b + b1, 0.0)
    hb = h.astype(jnp.bfloat16).astype(jnp.float32)
    w2b = w2.astype(jnp.bfloat16).astype(jnp.float32)
    return jnp.maximum(hb @ w2b + b2, 0.0)


if __name__ == "__main__":
    key = jax.random.PRNGKey(0)
    kx, kp = jax.random.split(key)

    B = 2
    x = jax.random.normal(kx, (B, IN_FEATURES), jnp.float32)
    w1, b1, w2, b2 = init_params(kp)

    params = prepare_params(w1, b1, w2, b2)     # one-time weight prep
    out = fc4_forward(x, params)
    out = jax.block_until_ready(out)

    ref = reference_forward(x, w1, b1, w2, b2)
    assert out.shape == (B, OUT), out.shape
    assert jnp.allclose(out, ref, atol=2e-3, rtol=2e-3), "mismatch vs reference"

    print("KERNEL_OK")
</pallas_src>

<mosaic_0001>
module attributes {stable_mosaic.version = 11 : i64} {
  func.func @fc4_kernel(%arg0: i32, %arg1: memref<8x3072xf32, #tpu.memory_space<vmem>>, %arg2: memref<3072x512xbf16, #tpu.memory_space<vmem>>, %arg3: memref<1x512xf32, #tpu.memory_space<vmem>>, %arg4: memref<512x128xbf16, #tpu.memory_space<vmem>>, %arg5: memref<1x128xf32, #tpu.memory_space<vmem>>, %arg6: memref<8x128xf32, #tpu.memory_space<vmem>>) attributes {dimension_semantics = [#tpu.dimension_semantics<parallel>], iteration_bounds = array<i64: 1>, scalar_prefetch = 0 : i64, scratch_operands = 0 : i64, tpu.core_type = #tpu.core_type<tc>, window_params = [{transform_indices = @transform_0, window_bounds = array<i64: 8, 3072>}, {pipeline_mode = #tpu.pipeline_mode<synchronous>, transform_indices = @transform_1, window_bounds = array<i64: 3072, 512>}, {pipeline_mode = #tpu.pipeline_mode<synchronous>, transform_indices = @transform_2, window_bounds = array<i64: 1, 512>}, {pipeline_mode = #tpu.pipeline_mode<synchronous>, transform_indices = @transform_3, window_bounds = array<i64: 512, 128>}, {pipeline_mode = #tpu.pipeline_mode<synchronous>, transform_indices = @transform_4, window_bounds = array<i64: 1, 128>}, {transform_indices = @transform_5, window_bounds = array<i64: 8, 128>}]} {
    %c0 = arith.constant 0 : index
    %c0_0 = arith.constant 0 : index
    %0 = vector.load %arg1[%c0, %c0_0] : memref<8x3072xf32, #tpu.memory_space<vmem>>, vector<8x3072xf32>
    %1 = arith.truncf %0 : vector<8x3072xf32> to vector<8x3072xbf16>
    %c0_1 = arith.constant 0 : index
    %c0_2 = arith.constant 0 : index
    %2 = vector.load %arg2[%c0_1, %c0_2] : memref<3072x512xbf16, #tpu.memory_space<vmem>>, vector<3072x512xbf16>
    %cst = arith.constant dense<0.000000e+00> : vector<8x512xf32>
    %3 = tpu.matmul %1, %2, %cst {dimension_numbers = #tpu.dot_dimension_numbers<[1], [0], [0], [1], [0, 0, 1, 1], [], []>} : vector<8x3072xbf16>, vector<3072x512xbf16>, vector<8x512xf32> -> vector<8x512xf32>
    %c0_3 = arith.constant 0 : index
    %c0_4 = arith.constant 0 : index
    %4 = vector.load %arg3[%c0_3, %c0_4] : memref<1x512xf32, #tpu.memory_space<vmem>>, vector<1x512xf32>
    %5 = vector.broadcast %4 : vector<1x512xf32> to vector<8x512xf32>
    %6 = arith.addf %3, %5 : vector<8x512xf32>
    %cst_5 = arith.constant 0.000000e+00 : f32
    %7 = vector.broadcast %cst_5 : f32 to vector<8x512xf32>
    %8 = arith.maximumf %6, %7 : vector<8x512xf32>
    %9 = arith.truncf %8 : vector<8x512xf32> to vector<8x512xbf16>
    %c0_6 = arith.constant 0 : index
    %c0_7 = arith.constant 0 : index
    %10 = vector.load %arg4[%c0_6, %c0_7] : memref<512x128xbf16, #tpu.memory_space<vmem>>, vector<512x128xbf16>
    %cst_8 = arith.constant dense<0.000000e+00> : vector<8x128xf32>
    %11 = tpu.matmul %9, %10, %cst_8 {dimension_numbers = #tpu.dot_dimension_numbers<[1], [0], [0], [1], [0, 0, 1, 1], [], []>} : vector<8x512xbf16>, vector<512x128xbf16>, vector<8x128xf32> -> vector<8x128xf32>
    %c0_9 = arith.constant 0 : index
    %c0_10 = arith.constant 0 : index
    %12 = vector.load %arg5[%c0_9, %c0_10] : memref<1x128xf32, #tpu.memory_space<vmem>>, vector<1x128xf32>
    %13 = vector.broadcast %12 : vector<1x128xf32> to vector<8x128xf32>
    %14 = arith.addf %11, %13 : vector<8x128xf32>
    %cst_11 = arith.constant 0.000000e+00 : f32
    %15 = vector.broadcast %cst_11 : f32 to vector<8x128xf32>
    %16 = arith.maximumf %14, %15 : vector<8x128xf32>
    %c0_12 = arith.constant 0 : index
    %c0_13 = arith.constant 0 : index
    %17 = vector.load %arg6[%c0_12, %c0_13] : memref<8x128xf32, #tpu.memory_space<vmem>>, vector<8x128xf32>
    tpu.vector_store %arg6[%c0_12, %c0_13], %16 {strides = array<i32>} : memref<8x128xf32, #tpu.memory_space<vmem>>, vector<8x128xf32>,
    return
  }
  func.func @transform_0(%arg0: i32) -> (i32, i32) {
    %c0_i32 = arith.constant 0 : i32
    %c0_i32_0 = arith.constant 0 : i32
    return %arg0, %c0_i32 : i32, i32
  }
  func.func @transform_1(%arg0: i32) -> (i32, i32) {
    %c0_i32 = arith.constant 0 : i32
    %c0_i32_0 = arith.constant 0 : i32
    %c0_i32_1 = arith.constant 0 : i32
    return %c0_i32, %c0_i32_0 : i32, i32
  }
  func.func @transform_2(%arg0: i32) -> (i32, i32) {
    %c0_i32 = arith.constant 0 : i32
    %c0_i32_0 = arith.constant 0 : i32
    %c0_i32_1 = arith.constant 0 : i32
    return %c0_i32, %c0_i32_0 : i32, i32
  }
  func.func @transform_3(%arg0: i32) -> (i32, i32) {
    %c0_i32 = arith.constant 0 : i32
    %c0_i32_0 = arith.constant 0 : i32
    %c0_i32_1 = arith.constant 0 : i32
    return %c0_i32, %c0_i32_0 : i32, i32
  }
  func.func @transform_4(%arg0: i32) -> (i32, i32) {
    %c0_i32 = arith.constant 0 : i32
    %c0_i32_0 = arith.constant 0 : i32
    %c0_i32_1 = arith.constant 0 : i32
    return %c0_i32, %c0_i32_0 : i32, i32
  }
  func.func @transform_5(%arg0: i32) -> (i32, i32) {
    %c0_i32 = arith.constant 0 : i32
    %c0_i32_0 = arith.constant 0 : i32
    return %arg0, %c0_i32 : i32, i32
  }
}

</mosaic_0001>

<bundles_post_ra>
// kernel: fc4_forward.1
= control target key start
LH: loop header
LB: loop body
LE: loop exit
PB: predicated region body
PF: predicated region fallthrough
CT: control target
= control target key end

     0   :  { %10 = vsyncpa [#allocation3], 0  ;;  %s8485_s0 = inlined_call_operand.vmem [shape: f32[8,3072], index: 0, kind: input, shape index: {}]   ;;  %s8486_s1 = inlined_call_operand.hbm [shape: bf16[3072,512], index: 1, kind: input, shape index: {}]   ;;  %s8487_s2 = inlined_call_operand.hbm [shape: f32[1,512], index: 2, kind: input, shape index: {}]   ;;  %s8488_s3 = inlined_call_operand.hbm [shape: bf16[512,128], index: 3, kind: input, shape index: {}]   ;;  %s8489_s4 = inlined_call_operand.hbm [shape: f32[1,128], index: 4, kind: input, shape index: {}]   ;;  %s8490_s5 = inlined_call_operand.vmem [shape: f32[8,128], index: 5, kind: output, shape index: {}]  }
   0x1   :  { %11 = vsyncpa [#allocation5], 0 }
   0x2   :  { %12 = vsyncpa [#allocation8], 0  ;;  %s8317_s18 = smov [#allocation4]   ;;  %s8318_s20 = smov [#allocation2]  }
   0x3   :  { %s33_s19 = sshll.u32 %s8317_s18, 4  ;;  %s20_s21 = sshll.u32 %s8318_s20, 4  ;;  %s34_s19 = int_to_ptr.vmem [resolvable:$true] %s33_s19  ;;  %s8355_s21 = int_to_ptr.vmem [resolvable:$true] %s20_s21 }
   0x4   :  { %s8223_s24 = scalar_lea.hbm %s8487_s2, 64 }
   0x5   :  { %p8224_p0 = scmp.ne.s32.totalorder %s8487_s2, %s8223_s24  ;;  %p8227_p1 = scmp.lt.u32.totalorder %s8223_s24, %s8487_s2 }
   0x7   :  { %p8229_p2 = pnand %p8227_p1, %p8224_p0 }
   0x9   :  { %8232 = shalt.err (!%p8229_p2)
}
   0xa   :  { %s8233_s29 = scalar_lea.vmem %s34_s19, 64  ;;  %p8238_p4 = scmp.lt.s32.totalorder %s34_s19, %s34_s19 }
   0xb   :  { %p8234_p3 = scmp.ne.s32.totalorder %s34_s19, %s8233_s29  ;;  %p8239_p5 = scmp.lt.s32.totalorder %s8233_s29, %s8233_s29 }
   0xd   :  { %p8240_p6 = por %p8239_p5, %p8238_p4 }
   0xf   :  { %p8241_p7 = pnand %p8240_p6, %p8234_p3 }
  0x11   :  { %8244 = shalt.err (!%p8241_p7)
}
  0x12   :  { %36 = dma.hbm_to_vmem [thread:$0]  %s8487_s2, 64, %s34_s19, [#allocation5]  }
  0x13   :  { %s8245_s9 = scalar_lea.hbm %s8486_s1, 98304 }
  0x14   :  { %p8246_p8 = scmp.ne.s32.totalorder %s8486_s1, %s8245_s9  ;;  %p8249_p9 = scmp.lt.u32.totalorder %s8245_s9, %s8486_s1 }
  0x16   :  { %p8251_p10 = pnand %p8249_p9, %p8246_p8 }
  0x18   :  { %8254 = shalt.err (!%p8251_p10)
}
  0x19   :  { %s8255_s14 = scalar_lea.vmem %s8355_s21, 98304  ;;  %p8260_p12 = scmp.lt.s32.totalorder %s8355_s21, %s8355_s21 }
  0x1a   :  { %p8256_p11 = scmp.ne.s32.totalorder %s8355_s21, %s8255_s14  ;;  %p8261_p13 = scmp.lt.s32.totalorder %s8255_s14, %s8255_s14 }
  0x1c   :  { %p8262_p0 = por %p8261_p13, %p8260_p12 }
  0x1e   :  { %p8263_p1 = pnand %p8262_p0, %p8256_p11 }
  0x20   :  { %8266 = shalt.err (!%p8263_p1)
}
  0x21   :  { %s8319_s2 = smov 256   ;;  %s8320_s15 = smov 16  }
  0x22   :  { %26 = dma.hbm_to_vmem [thread:$0]  %s8486_s1, 98304, %s8355_s21, [#allocation3], %s8319_s2, %s8319_s2, %s8320_s15  }
  0x23   :  { %s8321_s18 = smov [#allocation6]   ;;  %s8267_s23 = scalar_lea.hbm %s8488_s3, 4096 }
  0x24   :  { %s42_s19 = sshll.u32 %s8321_s18, 4  ;;  %p8268_p2 = scmp.ne.s32.totalorder %s8488_s3, %s8267_s23  ;;  %s43_s19 = int_to_ptr.vmem [resolvable:$true] %s42_s19 }
  0x25   :  { %p8271_p3 = scmp.lt.u32.totalorder %s8267_s23, %s8488_s3 }
  0x27   :  { %p8273_p4 = pnand %p8271_p3, %p8268_p2 }
  0x29   :  { %8276 = shalt.err (!%p8273_p4)
}
  0x2a   :  { %s8277_s28 = scalar_lea.vmem %s43_s19, 4096  ;;  %p8282_p6 = scmp.lt.s32.totalorder %s43_s19, %s43_s19 }
  0x2b   :  { %p8278_p5 = scmp.ne.s32.totalorder %s43_s19, %s8277_s28  ;;  %p8283_p7 = scmp.lt.s32.totalorder %s8277_s28, %s8277_s28 }
  0x2d   :  { %p8284_p8 = por %p8283_p7, %p8282_p6 }
  0x2f   :  { %p8285_p9 = pnand %p8284_p8, %p8278_p5 }
  0x31   :  { %8288 = shalt.err (!%p8285_p9)
}
  0x32   :  { %s8322_s1 = smov 64   ;;  %s8323_s21 = smov 4  }
  0x33   :  { %48 = dma.hbm_to_vmem [thread:$0]  %s8488_s3, 4096, %s43_s19, [#allocation5], %s8322_s1, %s8322_s1, %s8323_s21  }
  0x34   :  { %s8324_s6 = smov [#allocation7]   ;;  %s8289_s10 = scalar_lea.hbm %s8489_s4, 16 }
  0x35   :  { %s55_s7 = sshll.u32 %s8324_s6, 4  ;;  %p8290_p10 = scmp.ne.s32.totalorder %s8489_s4, %s8289_s10  ;;  %s56_s7 = int_to_ptr.vmem [resolvable:$true] %s55_s7 }
  0x36   :  { %p8293_p11 = scmp.lt.u32.totalorder %s8289_s10, %s8489_s4 }
  0x38   :  { %p8295_p12 = pnand %p8293_p11, %p8290_p10 }
  0x3a   :  { %8298 = shalt.err (!%p8295_p12)
}
  0x3b   :  { %s8299_s2 = scalar_lea.vmem %s56_s7, 16  ;;  %s8303_s3 = scalar_lea.vmem %s56_s7, 32 }
  0x3c   :  { %p8300_p13 = scmp.ne.s32.totalorder %s56_s7, %s8299_s2  ;;  %p8304_p0 = scmp.lt.s32.totalorder %s56_s7, %s56_s7 }
  0x3d   :  { %p8305_p1 = scmp.lt.s32.totalorder %s8303_s3, %s8299_s2 }
  0x3f   :  { %p8306_p2 = por %p8305_p1, %p8304_p0 }
  0x41   :  { %p8307_p3 = pnand %p8306_p2, %p8300_p13 }
  0x43   :  { %8310 = shalt.err (!%p8307_p3)
}
  0x44   :  { %58 = dma.hbm_to_vmem [thread:$0]  %s8489_s4, 16, %s56_s7, [#allocation8]  }
  0x45   :  { %8311 = dma.done.wait [#allocation3], 98304  }
  0x46   :  { %8312 = vsyncadd [#allocation3], 4294868992 }
  0x47   :  { %8313 = dma.done.wait [#allocation5], 4160  }
  0x48   :  { %8314 = vsyncadd [#allocation5], 4294963136 }
  0x49   :  { %8315 = dma.done.wait [#allocation8], 16  }
  0x4a   :  { %8316 = vsyncadd [#allocation8], 4294967280  ;;  %v7039_v0 = vld [vmem:[#allocation2 + $0x4] ss:$16 sps:$4 sm:$0xff]   ;;  %v7041_v1 = vld [vmem:[#allocation2 + $0xc] ss:$16 sps:$4 sm:$0xff]  }
  0x4b   :  { %4750 = vmatprep.subr.bf16.mxu0 %v7039_v0  ;;  %v7043_v2 = vld [vmem:[#allocation2] ss:$16 sps:$4 sm:$0xff]   ;;  %v7044_v3 = vld [vmem:[#allocation2 + $0x8] ss:$16 sps:$4 sm:$0xff]   ;;  %5242 = vmatprep.subr.bf16.mxu1 %v7041_v1  ;;  %v7045_v4 = vld [vmem:[#allocation2 + $0x24] ss:$16 sps:$4 sm:$0xff]  }
  0x4c   :  { %4751 = vmatpush1.bf16.msra.mxu0 %v7043_v2  ;;  %5243 = vmatpush1.bf16.msra.mxu1 %v7044_v3  ;;  %v7047_v5 = vld [vmem:[#allocation2 + $0x2c] ss:$16 sps:$4 sm:$0xff]   ;;  %v7049_v6 = vld [vmem:[#allocation2 + $0x20] ss:$16 sps:$4 sm:$0xff]   ;;  %v7050_v7 = vld [vmem:[#allocation2 + $0x28] ss:$16 sps:$4 sm:$0xff]  }
  0x4d   :  { %4752 = vmatprep.subr.bf16.mxu0 %v7045_v4  ;;  %5244 = vmatprep.subr.bf16.mxu1 %v7047_v5  ;;  %v7051_v8 = vld [vmem:[#allocation2 + $0x44] ss:$16 sps:$4 sm:$0xff]   ;;  %v7053_v9 = vld [vmem:[#allocation2 + $0x4c] ss:$16 sps:$4 sm:$0xff]   ;;  %v7055_v10 = vld [vmem:[#allocation2 + $0x40] ss:$16 sps:$4 sm:$0xff]  }
  0x4e   :  { %v7056_v11 = vld [vmem:[#allocation2 + $0x48] ss:$16 sps:$4 sm:$0xff]   ;;  %v7057_v12 = vld [vmem:[#allocation2 + $0x64] ss:$16 sps:$4 sm:$0xff]   ;;  %v7059_v13 = vld [vmem:[#allocation2 + $0x6c] ss:$16 sps:$4 sm:$0xff]  }
  0x4f   :  { %v7061_v14 = vld [vmem:[#allocation2 + $0x60] ss:$16 sps:$4 sm:$0xff]   ;;  %v7062_v15 = vld [vmem:[#allocation2 + $0x68] ss:$16 sps:$4 sm:$0xff]   ;;  %v7063_v16 = vld [vmem:[#allocation2 + $0x84] ss:$16 sps:$4 sm:$0xff]  }
  0x50   :  { %4753 = vmatpush1.bf16.msra.mxu0 %v7049_v6  ;;  %5245 = vmatpush1.bf16.msra.mxu1 %v7050_v7  ;;  %v7065_v17 = vld [vmem:[#allocation2 + $0x8c] ss:$16 sps:$4 sm:$0xff]   ;;  %v7067_v18 = vld [vmem:[#allocation2 + $0x80] ss:$16 sps:$4 sm:$0xff]   ;;  %v7068_v19 = vld [vmem:[#allocation2 + $0x88] ss:$16 sps:$4 sm:$0xff]  }
  0x51   :  { %4754 = vmatprep.subr.bf16.mxu0 %v7051_v8  ;;  %5246 = vmatprep.subr.bf16.mxu1 %v7053_v9  ;;  %v7069_v20 = vld [vmem:[#allocation2 + $0xa4] ss:$16 sps:$4 sm:$0xff]   ;;  %v7071_v21 = vld [vmem:[#allocation2 + $0xac] ss:$16 sps:$4 sm:$0xff]   ;;  %v7073_v22 = vld [vmem:[#allocation2 + $0xa0] ss:$16 sps:$4 sm:$0xff]  }
  0x52   :  { %v7074_v23 = vld [vmem:[#allocation2 + $0xa8] ss:$16 sps:$4 sm:$0xff]   ;;  %v7075_v24 = vld [vmem:[#allocation2 + $0xc4] ss:$16 sps:$4 sm:$0xff]   ;;  %v7077_v25 = vld [vmem:[#allocation2 + $0xcc] ss:$16 sps:$4 sm:$0xff]  }
  0x53   :  { %v7079_v26 = vld [vmem:[#allocation2 + $0xc0] ss:$16 sps:$4 sm:$0xff]   ;;  %v7080_v27 = vld [vmem:[#allocation2 + $0xc8] ss:$16 sps:$4 sm:$0xff]   ;;  %v7081_v28 = vld [vmem:[#allocation2 + $0xe4] ss:$16 sps:$4 sm:$0xff]  }
  0x54   :  { %4755 = vmatpush1.bf16.msra.mxu0 %v7055_v10  ;;  %5247 = vmatpush1.bf16.msra.mxu1 %v7056_v11  ;;  %v7083_v29 = vld [vmem:[#allocation2 + $0xec] ss:$16 sps:$4 sm:$0xff]   ;;  %v7085_v30 = vld [vmem:[#allocation2 + $0xe0] ss:$16 sps:$4 sm:$0xff]   ;;  %v7086_v31 = vld [vmem:[#allocation2 + $0xe8] ss:$16 sps:$4 sm:$0xff]  }
  0x55   :  { %4756 = vmatprep.subr.bf16.mxu0 %v7057_v12  ;;  %5248 = vmatprep.subr.bf16.mxu1 %v7059_v13  ;;  %v7087_v32 = vld [vmem:[#allocation2 + $0x104] ss:$16 sps:$4 sm:$0xff]   ;;  %v7089_v33 = vld [vmem:[#allocation2 + $0x10c] ss:$16 sps:$4 sm:$0xff]   ;;  %v7091_v34 = vld [vmem:[#allocation2 + $0x100] ss:$16 sps:$4 sm:$0xff]  }
  0x56   :  { %v7092_v35 = vld [vmem:[#allocation2 + $0x108] ss:$16 sps:$4 sm:$0xff]   ;;  %v7093_v36 = vld [vmem:[#allocation2 + $0x124] ss:$16 sps:$4 sm:$0xff]   ;;  %v7095_v37 = vld [vmem:[#allocation2 + $0x12c] ss:$16 sps:$4 sm:$0xff]  }
  0x57   :  { %v7097_v38 = vld [vmem:[#allocation2 + $0x120] ss:$16 sps:$4 sm:$0xff]   ;;  %v7098_v39 = vld [vmem:[#allocation2 + $0x128] ss:$16 sps:$4 sm:$0xff]   ;;  %v7099_v40 = vld [vmem:[#allocation2 + $0x144] ss:$16 sps:$4 sm:$0xff]  }
  0x58   :  { %4757 = vmatpush1.bf16.msra.mxu0 %v7061_v14  ;;  %5249 = vmatpush1.bf16.msra.mxu1 %v7062_v15  ;;  %v7101_v41 = vld [vmem:[#allocation2 + $0x14c] ss:$16 sps:$4 sm:$0xff]   ;;  %v7103_v42 = vld [vmem:[#allocation2 + $0x140] ss:$16 sps:$4 sm:$0xff]   ;;  %v7104_v43 = vld [vmem:[#allocation2 + $0x148] ss:$16 sps:$4 sm:$0xff]  }
  0x59   :  { %4758 = vmatprep.subr.bf16.mxu0 %v7063_v16  ;;  %5250 = vmatprep.subr.bf16.mxu1 %v7065_v17  ;;  %v7105_v44 = vld [vmem:[#allocation2 + $0x164] ss:$16 sps:$4 sm:$0xff]   ;;  %v7107_v45 = vld [vmem:[#allocation2 + $0x16c] ss:$16 sps:$4 sm:$0xff]   ;;  %v7109_v47 = vld [vmem:[#allocation2 + $0x160] ss:$16 sps:$4 sm:$0xff]  }
  0x5a   :  { %v73_v46 = vld [vmem:[%s8485_s0 + $0x8] sm:$0xff]  ;;  %v7111_v50 = vld [vmem:[#allocation2 + $0x184] ss:$16 sps:$4 sm:$0xff]   ;;  %v7115_v52 = vld [vmem:[#allocation2 + $0x180] ss:$16 sps:$4 sm:$0xff]  }
  0x5b   :  { %v97_v48 = vpack.c.bf16 %v73_v46, %v73_v46  ;;  %v7110_v49 = vld [vmem:[#allocation2 + $0x168] ss:$16 sps:$4 sm:$0xff]   ;;  %v7113_v51 = vld [vmem:[#allocation2 + $0x18c] ss:$16 sps:$4 sm:$0xff]   ;;  %v7117_v54 = vld [vmem:[#allocation2 + $0x1a4] ss:$16 sps:$4 sm:$0xff]  }
  0x5c   :  { %4759 = vmatpush1.bf16.msra.mxu0 %v7067_v18  ;;  %5251 = vmatpush1.bf16.msra.mxu1 %v7068_v19  ;;  %v7116_v53 = vld [vmem:[#allocation2 + $0x188] ss:$16 sps:$4 sm:$0xff]   ;;  %v7119_v55 = vld [vmem:[#allocation2 + $0x1ac] ss:$16 sps:$4 sm:$0xff]   ;;  %v7121_v56 = vld [vmem:[#allocation2 + $0x1a0] ss:$16 sps:$4 sm:$0xff]  }
  0x5d   :  { %4760 = vmatprep.subr.bf16.mxu0 %v7069_v20  ;;  %5252 = vmatprep.subr.bf16.mxu1 %v7071_v21  ;;  %v7122_v57 = vld [vmem:[#allocation2 + $0x1a8] ss:$16 sps:$4 sm:$0xff]   ;;  %v7123_v58 = vld [vmem:[#allocation2 + $0x1c4] ss:$16 sps:$4 sm:$0xff]   ;;  %v7125_v59 = vld [vmem:[#allocation2 + $0x1cc] ss:$16 sps:$4 sm:$0xff]  }
  0x5e   :  { %4782 = vmatprep.mubr.bf16.mxu0 %v97_v48  ;;  %5274 = vmatprep.mubr.bf16.mxu1 %v97_v48  ;;  %v7127_v60 = vld [vmem:[#allocation2 + $0x1c0] ss:$16 sps:$4 sm:$0xff]   ;;  %v7128_v61 = vld [vmem:[#allocation2 + $0x1c8] ss:$16 sps:$4 sm:$0xff]   ;;  %v7129_v62 = vld [vmem:[#allocation2 + $0x1e4] ss:$16 sps:$4 sm:$0xff]  }
  0x5f   :  { %v7131_v63 = vld [vmem:[#allocation2 + $0x1ec] ss:$16 sps:$4 sm:$0xff]   ;;  %v7133_v0 = vld [vmem:[#allocation2 + $0x1e0] ss:$16 sps:$4 sm:$0xff]   ;;  %v7134_v1 = vld [vmem:[#allocation2 + $0x1e8] ss:$16 sps:$4 sm:$0xff]  }
  0x60   :  { %4761 = vmatpush1.bf16.msra.mxu0 %v7073_v22  ;;  %5253 = vmatpush1.bf16.msra.mxu1 %v7074_v23  ;;  %v72_v2 = vld [vmem:[%s8485_s0] sm:$0xff]  ;;  %v7140_v4 = vld [vmem:[#allocation2 + $0x20c] ss:$16 sps:$4 sm:$0xff]   ;;  %v7138_v7 = vld [vmem:[#allocation2 + $0x208] ss:$16 sps:$4 sm:$0xff]  }
  0x61   :  { %4762 = vmatprep.subr.bf16.mxu0 %v7075_v24  ;;  %5254 = vmatprep.subr.bf16.mxu1 %v7077_v25  ;;  %v7137_v3 = vld [vmem:[#allocation2 + $0x204] ss:$16 sps:$4 sm:$0xff]   ;;  %v96_v5 = vpack.c.bf16 %v72_v2, %v72_v2  ;;  %v7135_v6 = vld [vmem:[#allocation2 + $0x200] ss:$16 sps:$4 sm:$0xff]   ;;  %v7146_v9 = vld [vmem:[#allocation2 + $0x22c] ss:$16 sps:$4 sm:$0xff]  }
  0x62   :  { %v7143_v8 = vld [vmem:[#allocation2 + $0x224] ss:$16 sps:$4 sm:$0xff]   ;;  %v7141_v10 = vld [vmem:[#allocation2 + $0x220] ss:$16 sps:$4 sm:$0xff]   ;;  %v7144_v11 = vld [vmem:[#allocation2 + $0x228] ss:$16 sps:$4 sm:$0xff]  }
  0x63   :  { %v7149_v12 = vld [vmem:[#allocation2 + $0x244] ss:$16 sps:$4 sm:$0xff]   ;;  %v7152_v13 = vld [vmem:[#allocation2 + $0x24c] ss:$16 sps:$4 sm:$0xff]   ;;  %v7147_v14 = vld [vmem:[#allocation2 + $0x240] ss:$16 sps:$4 sm:$0xff]  }
  0x64   :  { %4763 = vmatpush1.bf16.msra.mxu0 %v7079_v26  ;;  %5255 = vmatpush1.bf16.msra.mxu1 %v7080_v27  ;;  %v7150_v15 = vld [vmem:[#allocation2 + $0x248] ss:$16 sps:$4 sm:$0xff]   ;;  %v7155_v16 = vld [vmem:[#allocation2 + $0x264] ss:$16 sps:$4 sm:$0xff]   ;;  %v7158_v17 = vld [vmem:[#allocation2 + $0x26c] ss:$16 sps:$4 sm:$0xff]  }
  0x65   :  { %4764 = vmatprep.subr.bf16.mxu0 %v7081_v28  ;;  %5256 = vmatprep.subr.bf16.mxu1 %v7083_v29  ;;  %v7153_v18 = vld [vmem:[#allocation2 + $0x260] ss:$16 sps:$4 sm:$0xff]   ;;  %v7156_v19 = vld [vmem:[#allocation2 + $0x268] ss:$16 sps:$4 sm:$0xff]   ;;  %v7161_v20 = vld [vmem:[#allocation2 + $0x284] ss:$16 sps:$4 sm:$0xff]  }
  0x66   :  { %v7164_v21 = vld [vmem:[#allocation2 + $0x28c] ss:$16 sps:$4 sm:$0xff]   ;;  %v7159_v22 = vld [vmem:[#allocation2 + $0x280] ss:$16 sps:$4 sm:$0xff]   ;;  %v7162_v23 = vld [vmem:[#allocation2 + $0x288] ss:$16 sps:$4 sm:$0xff]  }
  0x67   :  { %v7167_v24 = vld [vmem:[#allocation2 + $0x2a4] ss:$16 sps:$4 sm:$0xff]   ;;  %v7170_v25 = vld [vmem:[#allocation2 + $0x2ac] ss:$16 sps:$4 sm:$0xff]   ;;  %v7165_v26 = vld [vmem:[#allocation2 + $0x2a0] ss:$16 sps:$4 sm:$0xff]  }
  0x68   :  { %4765 = vmatpush1.bf16.msra.mxu0 %v7085_v30  ;;  %5257 = vmatpush1.bf16.msra.mxu1 %v7086_v31  ;;  %v7168_v27 = vld [vmem:[#allocation2 + $0x2a8] ss:$16 sps:$4 sm:$0xff]   ;;  %v7173_v28 = vld [vmem:[#allocation2 + $0x2c4] ss:$16 sps:$4 sm:$0xff]   ;;  %v7176_v29 = vld [vmem:[#allocation2 + $0x2cc] ss:$16 sps:$4 sm:$0xff]  }
  0x69   :  { %4766 = vmatprep.subr.bf16.mxu0 %v7087_v32  ;;  %5258 = vmatprep.subr.bf16.mxu1 %v7089_v33  ;;  %v75_v30 = vld [vmem:[%s8485_s0 + $0x18] sm:$0xff]  ;;  %v7171_v31 = vld [vmem:[#allocation2 + $0x2c0] ss:$16 sps:$4 sm:$0xff]   ;;  %v7197_v46 = vld [vmem:[#allocation2 + $0x344] ss:$16 sps:$4 sm:$0xff]  }
  0x6a   :  { %v99_v32 = vpack.c.bf16 %v75_v30, %v75_v30  ;;  %v7174_v33 = vld [vmem:[#allocation2 + $0x2c8] ss:$16 sps:$4 sm:$0xff]   ;;  %v7195_v48 = vld [vmem:[#allocation2 + $0x340] ss:$16 sps:$4 sm:$0xff]   ;;  %v7227_v2 = vld [vmem:[#allocation2 + $0x3e4] ss:$16 sps:$4 sm:$0xff]  }
  0x6b   :  { %v7263_v30 = vld [vmem:[#allocation2 + $0x4a4] ss:$16 sps:$4 sm:$0xff]  }
  0x6c   :  { %4767 = vmatpush1.bf16.msra.mxu0 %v7091_v34  ;;  %5259 = vmatpush1.bf16.msra.mxu1 %v7092_v35  ;;  %v7179_v34 = vld [vmem:[#allocation2 + $0x2e4] ss:$16 sps:$4 sm:$0xff]   ;;  %v7182_v35 = vld [vmem:[#allocation2 + $0x2ec] ss:$16 sps:$4 sm:$0xff]  }
  0x6d   :  { %4768 = vmatprep.subr.bf16.mxu0 %v7093_v36  ;;  %5260 = vmatprep.subr.bf16.mxu1 %v7095_v37  ;;  %v7177_v36 = vld [vmem:[#allocation2 + $0x2e0] ss:$16 sps:$4 sm:$0xff]   ;;  %v7180_v37 = vld [vmem:[#allocation2 + $0x2e8] ss:$16 sps:$4 sm:$0xff]  }
  0x70   :  { %4769 = vmatpush1.bf16.msra.mxu0 %v7097_v38  ;;  %5261 = vmatpush1.bf16.msra.mxu1 %v7098_v39  ;;  %v7185_v38 = vld [vmem:[#allocation2 + $0x304] ss:$16 sps:$4 sm:$0xff]   ;;  %v7188_v39 = vld [vmem:[#allocation2 + $0x30c] ss:$16 sps:$4 sm:$0xff]  }
  0x71   :  { %4770 = vmatprep.subr.bf16.mxu0 %v7099_v40  ;;  %5262 = vmatprep.subr.bf16.mxu1 %v7101_v41  ;;  %v7183_v40 = vld [vmem:[#allocation2 + $0x300] ss:$16 sps:$4 sm:$0xff]   ;;  %v7186_v41 = vld [vmem:[#allocation2 + $0x308] ss:$16 sps:$4 sm:$0xff]  }
  0x74   :  { %4771 = vmatpush1.bf16.msra.mxu0 %v7103_v42  ;;  %5263 = vmatpush1.bf16.msra.mxu1 %v7104_v43  ;;  %v7191_v42 = vld [vmem:[#allocation2 + $0x324] ss:$16 sps:$4 sm:$0xff]   ;;  %v7194_v43 = vld [vmem:[#allocation2 + $0x32c] ss:$16 sps:$4 sm:$0xff]  }
  0x75   :  { %4772 = vmatprep.subr.bf16.mxu0 %v7105_v44  ;;  %5264 = vmatprep.subr.bf16.mxu1 %v7107_v45  ;;  %v7189_v44 = vld [vmem:[#allocation2 + $0x320] ss:$16 sps:$4 sm:$0xff]   ;;  %v7192_v45 = vld [vmem:[#allocation2 + $0x328] ss:$16 sps:$4 sm:$0xff]  }
  0x78   :  { %4773 = vmatpush1.bf16.msra.mxu0 %v7109_v47  ;;  %5265 = vmatpush1.bf16.msra.mxu1 %v7110_v49  ;;  %v7200_v47 = vld [vmem:[#allocation2 + $0x34c] ss:$16 sps:$4 sm:$0xff]   ;;  %v7198_v49 = vld [vmem:[#allocation2 + $0x348] ss:$16 sps:$4 sm:$0xff]  }
  0x79   :  { %4774 = vmatprep.subr.bf16.mxu0 %v7111_v50  ;;  %5266 = vmatprep.subr.bf16.mxu1 %v7113_v51  ;;  %v7203_v50 = vld [vmem:[#allocation2 + $0x364] ss:$16 sps:$4 sm:$0xff]   ;;  %v7206_v51 = vld [vmem:[#allocation2 + $0x36c] ss:$16 sps:$4 sm:$0xff]  }
  0x7c   :  { %4775 = vmatpush1.bf16.msra.mxu0 %v7115_v52  ;;  %5267 = vmatpush1.bf16.msra.mxu1 %v7116_v53  ;;  %v7201_v52 = vld [vmem:[#allocation2 + $0x360] ss:$16 sps:$4 sm:$0xff]   ;;  %v7204_v53 = vld [vmem:[#allocation2 + $0x368] ss:$16 sps:$4 sm:$0xff]  }
  0x7d   :  { %4776 = vmatprep.subr.bf16.mxu0 %v7117_v54  ;;  %5268 = vmatprep.subr.bf16.mxu1 %v7119_v55  ;;  %v7209_v54 = vld [vmem:[#allocation2 + $0x384] ss:$16 sps:$4 sm:$0xff]   ;;  %v7212_v55 = vld [vmem:[#allocation2 + $0x38c] ss:$16 sps:$4 sm:$0xff]  }
  0x80   :  { %4777 = vmatpush1.bf16.msra.mxu0 %v7121_v56  ;;  %5269 = vmatpush1.bf16.msra.mxu1 %v7122_v57  ;;  %v7207_v56 = vld [vmem:[#allocation2 + $0x380] ss:$16 sps:$4 sm:$0xff]   ;;  %v7210_v57 = vld [vmem:[#allocation2 + $0x388] ss:$16 sps:$4 sm:$0xff]  }
  0x81   :  { %4778 = vmatprep.subr.bf16.mxu0 %v7123_v58  ;;  %5270 = vmatprep.subr.bf16.mxu1 %v7125_v59  ;;  %v7215_v58 = vld [vmem:[#allocation2 + $0x3a4] ss:$16 sps:$4 sm:$0xff]   ;;  %v7218_v59 = vld [vmem:[#allocation2 + $0x3ac] ss:$16 sps:$4 sm:$0xff]  }
  0x84   :  { %4779 = vmatpush1.bf16.msra.mxu0 %v7127_v60  ;;  %5271 = vmatpush1.bf16.msra.mxu1 %v7128_v61  ;;  %v7213_v60 = vld [vmem:[#allocation2 + $0x3a0] ss:$16 sps:$4 sm:$0xff]   ;;  %v7216_v61 = vld [vmem:[#allocation2 + $0x3a8] ss:$16 sps:$4 sm:$0xff]  }
  0x85   :  { %4780 = vmatprep.subr.bf16.mxu0 %v7129_v62  ;;  %5272 = vmatprep.subr.bf16.mxu1 %v7131_v63  ;;  %v7221_v62 = vld [vmem:[#allocation2 + $0x3c4] ss:$16 sps:$4 sm:$0xff]   ;;  %v7224_v63 = vld [vmem:[#allocation2 + $0x3cc] ss:$16 sps:$4 sm:$0xff]  }
  0x88   :  { %4781 = vmatpush1.bf16.msra.mxu0 %v7133_v0  ;;  %5273 = vmatpush1.bf16.msra.mxu1 %v7134_v1  ;;  %v7219_v0 = vld [vmem:[#allocation2 + $0x3c0] ss:$16 sps:$4 sm:$0xff]   ;;  %v7222_v1 = vld [vmem:[#allocation2 + $0x3c8] ss:$16 sps:$4 sm:$0xff]  }
  0x89   :  { %4791 = vmatprep.subr.bf16.mxu0 %v7137_v3  ;;  %5283 = vmatprep.subr.bf16.mxu1 %v7140_v4  ;;  %v7230_v3 = vld [vmem:[#allocation2 + $0x3ec] ss:$16 sps:$4 sm:$0xff]   ;;  %v7225_v4 = vld [vmem:[#allocation2 + $0x3e0] ss:$16 sps:$4 sm:$0xff]  }
  0x8b   :  { %4783 = vmatmul.mubr.bf16.vlgmr.msra.gmra.mrb[0].mxu0 %v96_v5  ;;  %5275 = vmatmul.mubr.bf16.vlgmr.msra.gmra.mrb[0].mxu1 %v96_v5  ;;  %v7228_v5 = vld [vmem:[#allocation2 + $0x3e8] ss:$16 sps:$4 sm:$0xff]  }
  0x8c   :  { %4792 = vmatpush1.bf16.msra.mxu0 %v7135_v6  ;;  %5284 = vmatpush1.bf16.msra.mxu1 %v7138_v7  ;;  %v7233_v6 = vld [vmem:[#allocation2 + $0x404] ss:$16 sps:$4 sm:$0xff]  }
  0x8d   :  { %4793 = vmatprep.subr.bf16.mxu0 %v7143_v8  ;;  %5285 = vmatprep.subr.bf16.mxu1 %v7146_v9  ;;  %v74_v7 = vld [vmem:[%s8485_s0 + $0x10] sm:$0xff]  ;;  %v7236_v8 = vld [vmem:[#allocation2 + $0x40c] ss:$16 sps:$4 sm:$0xff]  }
  0x8e   :  { %4823 = vmatprep.mubr.bf16.mxu0 %v99_v32  ;;  %5315 = vmatprep.mubr.bf16.mxu1 %v99_v32  ;;  %v7231_v9 = vld [vmem:[#allocation2 + $0x400] ss:$16 sps:$4 sm:$0xff]  }
  0x8f   :  { %v7261_v32 = vld [vmem:[#allocation2 + $0x4a0] ss:$16 sps:$4 sm:$0xff]  }
  0x90   :  { %4794 = vmatpush1.bf16.msra.mxu0 %v7141_v10  ;;  %5286 = vmatpush1.bf16.msra.mxu1 %v7144_v11  ;;  %v7234_v10 = vld [vmem:[#allocation2 + $0x408] ss:$16 sps:$4 sm:$0xff]   ;;  %v98_v11 = vpack.c.bf16 %v74_v7, %v74_v7  ;;  %v7326_v7 = vld [vmem:[#allocation2 + $0x5ec] ss:$16 sps:$4 sm:$0xff]  }
  0x91   :  { %4795 = vmatprep.subr.bf16.mxu0 %v7149_v12  ;;  %5287 = vmatprep.subr.bf16.mxu1 %v7152_v13  ;;  %v7239_v12 = vld [vmem:[#allocation2 + $0x424] ss:$16 sps:$4 sm:$0xff]   ;;  %v7242_v13 = vld [vmem:[#allocation2 + $0x42c] ss:$16 sps:$4 sm:$0xff]  }
  0x94   :  { %4796 = vmatpush1.bf16.msra.mxu0 %v7147_v14  ;;  %5288 = vmatpush1.bf16.msra.mxu1 %v7150_v15  ;;  %v77_v14 = vld [vmem:[%s8485_s0 + $0x28] sm:$0xff] }
  0x95   :  { %4797 = vmatprep.subr.bf16.mxu0 %v7155_v16  ;;  %5289 = vmatprep.subr.bf16.mxu1 %v7158_v17  ;;  %v101_v15 = vpack.c.bf16 %v77_v14, %v77_v14  ;;  %v7237_v16 = vld [vmem:[#allocation2 + $0x420] ss:$16 sps:$4 sm:$0xff]   ;;  %v7240_v17 = vld [vmem:[#allocation2 + $0x428] ss:$16 sps:$4 sm:$0xff]  }
  0x96   :  { %v7330_v14 = vld [vmem:[#allocation2 + $0x608] ss:$16 sps:$4 sm:$0xff]  }
  0x98   :  { %4798 = vmatpush1.bf16.msra.mxu0 %v7153_v18  ;;  %5290 = vmatpush1.bf16.msra.mxu1 %v7156_v19  ;;  %v7245_v18 = vld [vmem:[#allocation2 + $0x444] ss:$16 sps:$4 sm:$0xff]   ;;  %v7248_v19 = vld [vmem:[#allocation2 + $0x44c] ss:$16 sps:$4 sm:$0xff]  }
  0x99   :  { %4799 = vmatprep.subr.bf16.mxu0 %v7161_v20  ;;  %5291 = vmatprep.subr.bf16.mxu1 %v7164_v21  ;;  %v7243_v20 = vld [vmem:[#allocation2 + $0x440] ss:$16 sps:$4 sm:$0xff]   ;;  %v7246_v21 = vld [vmem:[#allocation2 + $0x448] ss:$16 sps:$4 sm:$0xff]  }
  0x9c   :  { %4800 = vmatpush1.bf16.msra.mxu0 %v7159_v22  ;;  %5292 = vmatpush1.bf16.msra.mxu1 %v7162_v23  ;;  %v7251_v22 = vld [vmem:[#allocation2 + $0x464] ss:$16 sps:$4 sm:$0xff]   ;;  %v7254_v23 = vld [vmem:[#allocation2 + $0x46c] ss:$16 sps:$4 sm:$0xff]  }
  0x9d   :  { %4801 = vmatprep.subr.bf16.mxu0 %v7167_v24  ;;  %5293 = vmatprep.subr.bf16.mxu1 %v7170_v25  ;;  %v7249_v24 = vld [vmem:[#allocation2 + $0x460] ss:$16 sps:$4 sm:$0xff]   ;;  %v7252_v25 = vld [vmem:[#allocation2 + $0x468] ss:$16 sps:$4 sm:$0xff]  }
  0xa0   :  { %4802 = vmatpush1.bf16.msra.mxu0 %v7165_v26  ;;  %5294 = vmatpush1.bf16.msra.mxu1 %v7168_v27  ;;  %v7257_v26 = vld [vmem:[#allocation2 + $0x484] ss:$16 sps:$4 sm:$0xff]   ;;  %v7260_v27 = vld [vmem:[#allocation2 + $0x48c] ss:$16 sps:$4 sm:$0xff]  }
  0xa1   :  { %4803 = vmatprep.subr.bf16.mxu0 %v7173_v28  ;;  %5295 = vmatprep.subr.bf16.mxu1 %v7176_v29  ;;  %v7255_v28 = vld [vmem:[#allocation2 + $0x480] ss:$16 sps:$4 sm:$0xff]   ;;  %v7258_v29 = vld [vmem:[#allocation2 + $0x488] ss:$16 sps:$4 sm:$0xff]  }
  0xa4   :  { %4804 = vmatpush1.bf16.msra.mxu0 %v7171_v31  ;;  %5296 = vmatpush1.bf16.msra.mxu1 %v7174_v33  ;;  %v7266_v31 = vld [vmem:[#allocation2 + $0x4ac] ss:$16 sps:$4 sm:$0xff]   ;;  %v7264_v33 = vld [vmem:[#allocation2 + $0x4a8] ss:$16 sps:$4 sm:$0xff]  }
  0xa5   :  { %4805 = vmatprep.subr.bf16.mxu0 %v7179_v34  ;;  %5297 = vmatprep.subr.bf16.mxu1 %v7182_v35  ;;  %v7269_v34 = vld [vmem:[#allocation2 + $0x4c4] ss:$16 sps:$4 sm:$0xff]   ;;  %v7272_v35 = vld [vmem:[#allocation2 + $0x4cc] ss:$16 sps:$4 sm:$0xff]  }
  0xa8   :  { %4806 = vmatpush1.bf16.msra.mxu0 %v7177_v36  ;;  %5298 = vmatpush1.bf16.msra.mxu1 %v7180_v37  ;;  %v7267_v36 = vld [vmem:[#allocation2 + $0x4c0] ss:$16 sps:$4 sm:$0xff]   ;;  %v7270_v37 = vld [vmem:[#allocation2 + $0x4c8] ss:$16 sps:$4 sm:$0xff]  }
  0xa9   :  { %4807 = vmatprep.subr.bf16.mxu0 %v7185_v38  ;;  %5299 = vmatprep.subr.bf16.mxu1 %v7188_v39  ;;  %v7275_v38 = vld [vmem:[#allocation2 + $0x4e4] ss:$16 sps:$4 sm:$0xff]   ;;  %v7278_v39 = vld [vmem:[#allocation2 + $0x4ec] ss:$16 sps:$4 sm:$0xff]  }
  0xac   :  { %4808 = vmatpush1.bf16.msra.mxu0 %v7183_v40  ;;  %5300 = vmatpush1.bf16.msra.mxu1 %v7186_v41  ;;  %v7273_v40 = vld [vmem:[#allocation2 + $0x4e0] ss:$16 sps:$4 sm:$0xff]   ;;  %v7276_v41 = vld [vmem:[#allocation2 + $0x4e8] ss:$16 sps:$4 sm:$0xff]  }
  0xad   :  { %4809 = vmatprep.subr.bf16.mxu0 %v7191_v42  ;;  %5301 = vmatprep.subr.bf16.mxu1 %v7194_v43  ;;  %v7281_v42 = vld [vmem:[#allocation2 + $0x504] ss:$16 sps:$4 sm:$0xff]   ;;  %v7284_v43 = vld [vmem:[#allocation2 + $0x50c] ss:$16 sps:$4 sm:$0xff]  }
  0xb0   :  { %4810 = vmatpush1.bf16.msra.mxu0 %v7189_v44  ;;  %5302 = vmatpush1.bf16.msra.mxu1 %v7192_v45  ;;  %v7279_v44 = vld [vmem:[#allocation2 + $0x500] ss:$16 sps:$4 sm:$0xff]   ;;  %v7282_v45 = vld [vmem:[#allocation2 + $0x508] ss:$16 sps:$4 sm:$0xff]  }
  0xb1   :  { %4811 = vmatprep.subr.bf16.mxu0 %v7197_v46  ;;  %5303 = vmatprep.subr.bf16.mxu1 %v7200_v47  ;;  %v7287_v46 = vld [vmem:[#allocation2 + $0x524] ss:$16 sps:$4 sm:$0xff]   ;;  %v7290_v47 = vld [vmem:[#allocation2 + $0x52c] ss:$16 sps:$4 sm:$0xff]  }
  0xb4   :  { %4812 = vmatpush1.bf16.msra.mxu0 %v7195_v48  ;;  %5304 = vmatpush1.bf16.msra.mxu1 %v7198_v49  ;;  %v7285_v48 = vld [vmem:[#allocation2 + $0x520] ss:$16 sps:$4 sm:$0xff]   ;;  %v7288_v49 = vld [vmem:[#allocation2 + $0x528] ss:$16 sps:$4 sm:$0xff]  }
  0xb5   :  { %4813 = vmatprep.subr.bf16.mxu0 %v7203_v50  ;;  %5305 = vmatprep.subr.bf16.mxu1 %v7206_v51  ;;  %v7293_v50 = vld [vmem:[#allocation2 + $0x544] ss:$16 sps:$4 sm:$0xff]   ;;  %v7296_v51 = vld [vmem:[#allocation2 + $0x54c] ss:$16 sps:$4 sm:$0xff]  }
  0xb8   :  { %4814 = vmatpush1.bf16.msra.mxu0 %v7201_v52  ;;  %5306 = vmatpush1.bf16.msra.mxu1 %v7204_v53  ;;  %v7291_v52 = vld [vmem:[#allocation2 + $0x540] ss:$16 sps:$4 sm:$0xff]   ;;  %v7294_v53 = vld [vmem:[#allocation2 + $0x548] ss:$16 sps:$4 sm:$0xff]  }
  0xb9   :  { %4815 = vmatprep.subr.bf16.mxu0 %v7209_v54  ;;  %5307 = vmatprep.subr.bf16.mxu1 %v7212_v55  ;;  %v7299_v54 = vld [vmem:[#allocation2 + $0x564] ss:$16 sps:$4 sm:$0xff]   ;;  %v7302_v55 = vld [vmem:[#allocation2 + $0x56c] ss:$16 sps:$4 sm:$0xff]  }
  0xbc   :  { %4816 = vmatpush1.bf16.msra.mxu0 %v7207_v56  ;;  %5308 = vmatpush1.bf16.msra.mxu1 %v7210_v57  ;;  %v7297_v56 = vld [vmem:[#allocation2 + $0x560] ss:$16 sps:$4 sm:$0xff]   ;;  %v7300_v57 = vld [vmem:[#allocation2 + $0x568] ss:$16 sps:$4 sm:$0xff]  }
  0xbd   :  { %4817 = vmatprep.subr.bf16.mxu0 %v7215_v58  ;;  %5309 = vmatprep.subr.bf16.mxu1 %v7218_v59  ;;  %v7305_v58 = vld [vmem:[#allocation2 + $0x584] ss:$16 sps:$4 sm:$0xff]   ;;  %v7308_v59 = vld [vmem:[#allocation2 + $0x58c] ss:$16 sps:$4 sm:$0xff]  }
  0xc0   :  { %4818 = vmatpush1.bf16.msra.mxu0 %v7213_v60  ;;  %5310 = vmatpush1.bf16.msra.mxu1 %v7216_v61  ;;  %v7303_v60 = vld [vmem:[#allocation2 + $0x580] ss:$16 sps:$4 sm:$0xff]   ;;  %v7306_v61 = vld [vmem:[#allocation2 + $0x588] ss:$16 sps:$4 sm:$0xff]  }
  0xc1   :  { %4819 = vmatprep.subr.bf16.mxu0 %v7221_v62  ;;  %5311 = vmatprep.subr.bf16.mxu1 %v7224_v63  ;;  %v7311_v62 = vld [vmem:[#allocation2 + $0x5a4] ss:$16 sps:$4 sm:$0xff]   ;;  %v7314_v63 = vld [vmem:[#allocation2 + $0x5ac] ss:$16 sps:$4 sm:$0xff]  }
  0xc4   :  { %4820 = vmatpush1.bf16.msra.mxu0 %v7219_v0  ;;  %5312 = vmatpush1.bf16.msra.mxu1 %v7222_v1  ;;  %v7309_v0 = vld [vmem:[#allocation2 + $0x5a0] ss:$16 sps:$4 sm:$0xff]   ;;  %v7312_v1 = vld [vmem:[#allocation2 + $0x5a8] ss:$16 sps:$4 sm:$0xff]  }
  0xc5   :  { %4821 = vmatprep.subr.bf16.mxu0 %v7227_v2  ;;  %5313 = vmatprep.subr.bf16.mxu1 %v7230_v3  ;;  %v7317_v2 = vld [vmem:[#allocation2 + $0x5c4] ss:$16 sps:$4 sm:$0xff]   ;;  %v7320_v3 = vld [vmem:[#allocation2 + $0x5cc] ss:$16 sps:$4 sm:$0xff]  }
  0xc8   :  { %4822 = vmatpush1.bf16.msra.mxu0 %v7225_v4  ;;  %5314 = vmatpush1.bf16.msra.mxu1 %v7228_v5  ;;  %v7315_v4 = vld [vmem:[#allocation2 + $0x5c0] ss:$16 sps:$4 sm:$0xff]   ;;  %v7318_v5 = vld [vmem:[#allocation2 + $0x5c8] ss:$16 sps:$4 sm:$0xff]  }
  0xc9   :  { %4832 = vmatprep.subr.bf16.mxu0 %v7233_v6  ;;  %5324 = vmatprep.subr.bf16.mxu1 %v7236_v8  ;;  %v7323_v6 = vld [vmem:[#allocation2 + $0x5e4] ss:$16 sps:$4 sm:$0xff]   ;;  %v7321_v8 = vld [vmem:[#allocation2 + $0x5e0] ss:$16 sps:$4 sm:$0xff]  }
  0xcb   :  { %4824 = vmatmul.mubr.bf16.vlgmr.msra.gmra.mrb[0].mxu0 %v98_v11  ;;  %5316 = vmatmul.mubr.bf16.vlgmr.msra.gmra.mrb[0].mxu1 %v98_v11  ;;  %v76_v11 = vld [vmem:[%s8485_s0 + $0x20] sm:$0xff] }
  0xcc   :  { %4833 = vmatpush1.bf16.msra.mxu0 %v7231_v9  ;;  %5325 = vmatpush1.bf16.msra.mxu1 %v7234_v10  ;;  %v7324_v9 = vld [vmem:[#allocation2 + $0x5e8] ss:$16 sps:$4 sm:$0xff]   ;;  %v7329_v10 = vld [vmem:[#allocation2 + $0x604] ss:$16 sps:$4 sm:$0xff]  }
  0xcd   :  { %4834 = vmatprep.subr.bf16.mxu0 %v7239_v12  ;;  %5326 = vmatprep.subr.bf16.mxu1 %v7242_v13  ;;  %v7332_v12 = vld [vmem:[#allocation2 + $0x60c] ss:$16 sps:$4 sm:$0xff]   ;;  %v7327_v13 = vld [vmem:[#allocation2 + $0x600] ss:$16 sps:$4 sm:$0xff]  }
  0xce   :  { %4864 = vmatprep.mubr.bf16.mxu0 %v101_v15  ;;  %5356 = vmatprep.mubr.bf16.mxu1 %v101_v15  ;;  %v100_v15 = vpack.c.bf16 %v76_v11, %v76_v11  ;;  %v7422_v11 = vld [vmem:[#allocation2 + $0x7ec] ss:$16 sps:$4 sm:$0xff]  }
  0xd0   :  { %4835 = vmatpush1.bf16.msra.mxu0 %v7237_v16  ;;  %5327 = vmatpush1.bf16.msra.mxu1 %v7240_v17  ;;  %v79_v16 = vld [vmem:[%s8485_s0 + $0x38] sm:$0xff]  ;;  %v7335_v17 = vld [vmem:[#allocation2 + $0x624] ss:$16 sps:$4 sm:$0xff]  }
  0xd1   :  { %4836 = vmatprep.subr.bf16.mxu0 %v7245_v18  ;;  %5328 = vmatprep.subr.bf16.mxu1 %v7248_v19  ;;  %v7338_v18 = vld [vmem:[#allocation2 + $0x62c] ss:$16 sps:$4 sm:$0xff]   ;;  %v103_v19 = vpack.c.bf16 %v79_v16, %v79_v16 }
  0xd2   :  { %v7428_v16 = vld [vmem:[#allocation2 + $0x80c] ss:$16 sps:$4 sm:$0xff]  }
  0xd4   :  { %4837 = vmatpush1.bf16.msra.mxu0 %v7243_v20  ;;  %5329 = vmatpush1.bf16.msra.mxu1 %v7246_v21  ;;  %v7333_v20 = vld [vmem:[#allocation2 + $0x620] ss:$16 sps:$4 sm:$0xff]   ;;  %v7336_v21 = vld [vmem:[#allocation2 + $0x628] ss:$16 sps:$4 sm:$0xff]  }
  0xd5   :  { %4838 = vmatprep.subr.bf16.mxu0 %v7251_v22  ;;  %5330 = vmatprep.subr.bf16.mxu1 %v7254_v23  ;;  %v7341_v22 = vld [vmem:[#allocation2 + $0x644] ss:$16 sps:$4 sm:$0xff]   ;;  %v7344_v23 = vld [vmem:[#allocation2 + $0x64c] ss:$16 sps:$4 sm:$0xff]  }
  0xd8   :  { %4839 = vmatpush1.bf16.msra.mxu0 %v7249_v24  ;;  %5331 = vmatpush1.bf16.msra.mxu1 %v7252_v25  ;;  %v7339_v24 = vld [vmem:[#allocation2 + $0x640] ss:$16 sps:$4 sm:$0xff]   ;;  %v7342_v25 = vld [vmem:[#allocation2 + $0x648] ss:$16 sps:$4 sm:$0xff]  }
  0xd9   :  { %4840 = vmatprep.subr.bf16.mxu0 %v7257_v26  ;;  %5332 = vmatprep.subr.bf16.mxu1 %v7260_v27  ;;  %v7347_v26 = vld [vmem:[#allocation2 + $0x664] ss:$16 sps:$4 sm:$0xff]   ;;  %v7350_v27 = vld [vmem:[#allocation2 + $0x66c] ss:$16 sps:$4 sm:$0xff]  }
  0xdc   :  { %4841 = vmatpush1.bf16.msra.mxu0 %v7255_v28  ;;  %5333 = vmatpush1.bf16.msra.mxu1 %v7258_v29  ;;  %v7345_v28 = vld [vmem:[#allocation2 + $0x660] ss:$16 sps:$4 sm:$0xff]   ;;  %v7348_v29 = vld [vmem:[#allocation2 + $0x668] ss:$16 sps:$4 sm:$0xff]  }
  0xdd   :  { %4842 = vmatprep.subr.bf16.mxu0 %v7263_v30  ;;  %5334 = vmatprep.subr.bf16.mxu1 %v7266_v31  ;;  %v7353_v30 = vld [vmem:[#allocation2 + $0x684] ss:$16 sps:$4 sm:$0xff]   ;;  %v7356_v31 = vld [vmem:[#allocation2 + $0x68c] ss:$16 sps:$4 sm:$0xff]  }
  0xe0   :  { %4843 = vmatpush1.bf16.msra.mxu0 %v7261_v32  ;;  %5335 = vmatpush1.bf16.msra.mxu1 %v7264_v33  ;;  %v7351_v32 = vld [vmem:[#allocation2 + $0x680] ss:$16 sps:$4 sm:$0xff]   ;;  %v7354_v33 = vld [vmem:[#allocation2 + $0x688] ss:$16 sps:$4 sm:$0xff]  }
  0xe1   :  { %4844 = vmatprep.subr.bf16.mxu0 %v7269_v34  ;;  %5336 = vmatprep.subr.bf16.mxu1 %v7272_v35  ;;  %v7359_v34 = vld [vmem:[#allocation2 + $0x6a4] ss:$16 sps:$4 sm:$0xff]   ;;  %v7362_v35 = vld [vmem:[#allocation2 + $0x6ac] ss:$16 sps:$4 sm:$0xff]  }
  0xe4   :  { %4845 = vmatpush1.bf16.msra.mxu0 %v7267_v36  ;;  %5337 = vmatpush1.bf16.msra.mxu1 %v7270_v37  ;;  %v7357_v36 = vld [vmem:[#allocation2 + $0x6a0] ss:$16 sps:$4 sm:$0xff]   ;;  %v7360_v37 = vld [vmem:[#allocation2 + $0x6a8] ss:$16 sps:$4 sm:$0xff]  }
  0xe5   :  { %4846 = vmatprep.subr.bf16.mxu0 %v7275_v38  ;;  %5338 = vmatprep.subr.bf16.mxu1 %v7278_v39  ;;  %v7365_v38 = vld [vmem:[#allocation2 + $0x6c4] ss:$16 sps:$4 sm:$0xff]   ;;  %v7368_v39 = vld [vmem:[#allocation2 + $0x6cc] ss:$16 sps:$4 sm:$0xff]  }
  0xe8   :  { %4847 = vmatpush1.bf16.msra.mxu0 %v7273_v40  ;;  %5339 = vmatpush1.bf16.msra.mxu1 %v7276_v41  ;;  %v7363_v40 = vld [vmem:[#allocation2 + $0x6c0] ss:$16 sps:$4 sm:$0xff]   ;;  %v7366_v41 = vld [vmem:[#allocation2 + $0x6c8] ss:$16 sps:$4 sm:$0xff]  }
  0xe9   :  { %4848 = vmatprep.subr.bf16.mxu0 %v7281_v42  ;;  %5340 = vmatprep.subr.bf16.mxu1 %v7284_v43  ;;  %v7371_v42 = vld [vmem:[#allocation2 + $0x6e4] ss:$16 sps:$4 sm:$0xff]   ;;  %v7374_v43 = vld [vmem:[#allocation2 + $0x6ec] ss:$16 sps:$4 sm:$0xff]  }
  0xec   :  { %4849 = vmatpush1.bf16.msra.mxu0 %v7279_v44  ;;  %5341 = vmatpush1.bf16.msra.mxu1 %v7282_v45  ;;  %v7369_v44 = vld [vmem:[#allocation2 + $0x6e0] ss:$16 sps:$4 sm:$0xff]   ;;  %v7372_v45 = vld [vmem:[#allocation2 + $0x6e8] ss:$16 sps:$4 sm:$0xff]  }
  0xed   :  { %4850 = vmatprep.subr.bf16.mxu0 %v7287_v46  ;;  %5342 = vmatprep.subr.bf16.mxu1 %v7290_v47  ;;  %v7377_v46 = vld [vmem:[#allocation2 + $0x704] ss:$16 sps:$4 sm:$0xff]   ;;  %v7380_v47 = vld [vmem:[#allocation2 + $0x70c] ss:$16 sps:$4 sm:$0xff]  }
  0xf0   :  { %4851 = vmatpush1.bf16.msra.mxu0 %v7285_v48  ;;  %5343 = vmatpush1.bf16.msra.mxu1 %v7288_v49  ;;  %v7375_v48 = vld [vmem:[#allocation2 + $0x700] ss:$16 sps:$4 sm:$0xff]   ;;  %v7378_v49 = vld [vmem:[#allocation2 + $0x708] ss:$16 sps:$4 sm:$0xff]  }
  0xf1   :  { %4852 = vmatprep.subr.bf16.mxu0 %v7293_v50  ;;  %5344 = vmatprep.subr.bf16.mxu1 %v7296_v51  ;;  %v7383_v50 = vld [vmem:[#allocation2 + $0x724] ss:$16 sps:$4 sm:$0xff]   ;;  %v7386_v51 = vld [vmem:[#allocation2 + $0x72c] ss:$16 sps:$4 sm:$0xff]  }
  0xf4   :  { %4853 = vmatpush1.bf16.msra.mxu0 %v7291_v52  ;;  %5345 = vmatpush1.bf16.msra.mxu1 %v7294_v53  ;;  %v7381_v52 = vld [vmem:[#allocation2 + $0x720] ss:$16 sps:$4 sm:$0xff]   ;;  %v7384_v53 = vld [vmem:[#allocation2 + $0x728] ss:$16 sps:$4 sm:$0xff]  }
  0xf5   :  { %4854 = vmatprep.subr.bf16.mxu0 %v7299_v54  ;;  %5346 = vmatprep.subr.bf16.mxu1 %v7302_v55  ;;  %v7389_v54 = vld [vmem:[#allocation2 + $0x744] ss:$16 sps:$4 sm:$0xff]   ;;  %v7392_v55 = vld [vmem:[#allocation2 + $0x74c] ss:$16 sps:$4 sm:$0xff]  }
  0xf8   :  { %4855 = vmatpush1.bf16.msra.mxu0 %v7297_v56  ;;  %5347 = vmatpush1.bf16.msra.mxu1 %v7300_v57  ;;  %v7387_v56 = vld [vmem:[#allocation2 + $0x740] ss:$16 sps:$4 sm:$0xff]   ;;  %v7390_v57 = vld [vmem:[#allocation2 + $0x748] ss:$16 sps:$4 sm:$0xff]  }
  0xf9   :  { %4856 = vmatprep.subr.bf16.mxu0 %v7305_v58  ;;  %5348 = vmatprep.subr.bf16.mxu1 %v7308_v59  ;;  %v7395_v58 = vld [vmem:[#allocation2 + $0x764] ss:$16 sps:$4 sm:$0xff]   ;;  %v7398_v59 = vld [vmem:[#allocation2 + $0x76c] ss:$16 sps:$4 sm:$0xff]  }
  0xfc   :  { %4857 = vmatpush1.bf16.msra.mxu0 %v7303_v60  ;;  %5349 = vmatpush1.bf16.msra.mxu1 %v7306_v61  ;;  %v7393_v60 = vld [vmem:[#allocation2 + $0x760] ss:$16 sps:$4 sm:$0xff]   ;;  %v7396_v61 = vld [vmem:[#allocation2 + $0x768] ss:$16 sps:$4 sm:$0xff]  }
  0xfd   :  { %4858 = vmatprep.subr.bf16.mxu0 %v7311_v62  ;;  %5350 = vmatprep.subr.bf16.mxu1 %v7314_v63  ;;  %v7401_v62 = vld [vmem:[#allocation2 + $0x784] ss:$16 sps:$4 sm:$0xff]   ;;  %v7404_v63 = vld [vmem:[#allocation2 + $0x78c] ss:$16 sps:$4 sm:$0xff]  }
 0x100   :  { %4859 = vmatpush1.bf16.msra.mxu0 %v7309_v0  ;;  %5351 = vmatpush1.bf16.msra.mxu1 %v7312_v1  ;;  %v7399_v0 = vld [vmem:[#allocation2 + $0x780] ss:$16 sps:$4 sm:$0xff]   ;;  %v7402_v1 = vld [vmem:[#allocation2 + $0x788] ss:$16 sps:$4 sm:$0xff]  }
 0x101   :  { %4860 = vmatprep.subr.bf16.mxu0 %v7317_v2  ;;  %5352 = vmatprep.subr.bf16.mxu1 %v7320_v3  ;;  %v7407_v2 = vld [vmem:[#allocation2 + $0x7a4] ss:$16 sps:$4 sm:$0xff]   ;;  %v7410_v3 = vld [vmem:[#allocation2 + $0x7ac] ss:$16 sps:$4 sm:$0xff]  }
 0x104   :  { %4861 = vmatpush1.bf16.msra.mxu0 %v7315_v4  ;;  %5353 = vmatpush1.bf16.msra.mxu1 %v7318_v5  ;;  %v7405_v4 = vld [vmem:[#allocation2 + $0x7a0] ss:$16 sps:$4 sm:$0xff]   ;;  %v7408_v5 = vld [vmem:[#allocation2 + $0x7a8] ss:$16 sps:$4 sm:$0xff]  }
 0x105   :  { %4862 = vmatprep.subr.bf16.mxu0 %v7323_v6  ;;  %5354 = vmatprep.subr.bf16.mxu1 %v7326_v7  ;;  %v7413_v6 = vld [vmem:[#allocation2 + $0x7c4] ss:$16 sps:$4 sm:$0xff]   ;;  %v7416_v7 = vld [vmem:[#allocation2 + $0x7cc] ss:$16 sps:$4 sm:$0xff]  }
 0x108   :  { %4863 = vmatpush1.bf16.msra.mxu0 %v7321_v8  ;;  %5355 = vmatpush1.bf16.msra.mxu1 %v7324_v9  ;;  %v7411_v8 = vld [vmem:[#allocation2 + $0x7c0] ss:$16 sps:$4 sm:$0xff]   ;;  %v7414_v9 = vld [vmem:[#allocation2 + $0x7c8] ss:$16 sps:$4 sm:$0xff]  }
 0x109   :  { %4873 = vmatprep.subr.bf16.mxu0 %v7329_v10  ;;  %5365 = vmatprep.subr.bf16.mxu1 %v7332_v12  ;;  %v7419_v10 = vld [vmem:[#allocation2 + $0x7e4] ss:$16 sps:$4 sm:$0xff]   ;;  %v7417_v12 = vld [vmem:[#allocation2 + $0x7e0] ss:$16 sps:$4 sm:$0xff]  }
 0x10b   :  { %4865 = vmatmul.mubr.bf16.vlgmr.msra.gmra.mrb[0].mxu0 %v100_v15  ;;  %5357 = vmatmul.mubr.bf16.vlgmr.msra.gmra.mrb[0].mxu1 %v100_v15  ;;  %v7425_v15 = vld [vmem:[#allocation2 + $0x804] ss:$16 sps:$4 sm:$0xff]  }
 0x10c   :  { %4874 = vmatpush1.bf16.msra.mxu0 %v7327_v13  ;;  %5366 = vmatpush1.bf16.msra.mxu1 %v7330_v14  ;;  %v7420_v13 = vld [vmem:[#allocation2 + $0x7e8] ss:$16 sps:$4 sm:$0xff]   ;;  %v78_v14 = vld [vmem:[%s8485_s0 + $0x30] sm:$0xff] }
 0x10d   :  { %4875 = vmatprep.subr.bf16.mxu0 %v7335_v17  ;;  %5367 = vmatprep.subr.bf16.mxu1 %v7338_v18  ;;  %v102_v17 = vpack.c.bf16 %v78_v14, %v78_v14  ;;  %v81_v18 = vld [vmem:[%s8485_s0 + $0x48] sm:$0xff]  ;;  %v7515_v14 = vld [vmem:[#allocation2 + $0x9e4] ss:$16 sps:$4 sm:$0xff]  }
 0x10e   :  { %4905 = vmatprep.mubr.bf16.mxu0 %v103_v19  ;;  %5397 = vmatprep.mubr.bf16.mxu1 %v103_v19  ;;  %v7423_v19 = vld [vmem:[#allocation2 + $0x800] ss:$16 sps:$4 sm:$0xff]  }
 0x110   :  { %4876 = vmatpush1.bf16.msra.mxu0 %v7333_v20  ;;  %5368 = vmatpush1.bf16.msra.mxu1 %v7336_v21  ;;  %v7426_v20 = vld [vmem:[#allocation2 + $0x808] ss:$16 sps:$4 sm:$0xff]   ;;  %v7431_v21 = vld [vmem:[#allocation2 + $0x824] ss:$16 sps:$4 sm:$0xff]  }
 0x111   :  { %4877 = vmatprep.subr.bf16.mxu0 %v7341_v22  ;;  %5369 = vmatprep.subr.bf16.mxu1 %v7344_v23  ;;  %v7434_v22 = vld [vmem:[#allocation2 + $0x82c] ss:$16 sps:$4 sm:$0xff]   ;;  %v105_v23 = vpack.c.bf16 %v81_v18, %v81_v18  ;;  %v7521_v18 = vld [vmem:[#allocation2 + $0xa04] ss:$16 sps:$4 sm:$0xff]  }
 0x114   :  { %4878 = vmatpush1.bf16.msra.mxu0 %v7339_v24  ;;  %5370 = vmatpush1.bf16.msra.mxu1 %v7342_v25  ;;  %v7429_v24 = vld [vmem:[#allocation2 + $0x820] ss:$16 sps:$4 sm:$0xff]   ;;  %v7432_v25 = vld [vmem:[#allocation2 + $0x828] ss:$16 sps:$4 sm:$0xff]  }
 0x115   :  { %4879 = vmatprep.subr.bf16.mxu0 %v7347_v26  ;;  %5371 = vmatprep.subr.bf16.mxu1 %v7350_v27  ;;  %v7437_v26 = vld [vmem:[#allocation2 + $0x844] ss:$16 sps:$4 sm:$0xff]   ;;  %v7440_v27 = vld [vmem:[#allocation2 + $0x84c] ss:$16 sps:$4 sm:$0xff]  }
 0x118   :  { %4880 = vmatpush1.bf16.msra.mxu0 %v7345_v28  ;;  %5372 = vmatpush1.bf16.msra.mxu1 %v7348_v29  ;;  %v7435_v28 = vld [vmem:[#allocation2 + $0x840] ss:$16 sps:$4 sm:$0xff]   ;;  %v7438_v29 = vld [vmem:[#allocation2 + $0x848] ss:$16 sps:$4 sm:$0xff]  }
 0x119   :  { %4881 = vmatprep.subr.bf16.mxu0 %v7353_v30  ;;  %5373 = vmatprep.subr.bf16.mxu1 %v7356_v31  ;;  %v7443_v30 = vld [vmem:[#allocation2 + $0x864] ss:$16 sps:$4 sm:$0xff]   ;;  %v7446_v31 = vld [vmem:[#allocation2 + $0x86c] ss:$16 sps:$4 sm:$0xff]  }
 0x11c   :  { %4882 = vmatpush1.bf16.msra.mxu0 %v7351_v32  ;;  %5374 = vmatpush1.bf16.msra.mxu1 %v7354_v33  ;;  %v7441_v32 = vld [vmem:[#allocation2 + $0x860] ss:$16 sps:$4 sm:$0xff]   ;;  %v7444_v33 = vld [vmem:[#allocation2 + $0x868] ss:$16 sps:$4 sm:$0xff]  }
 0x11d   :  { %4883 = vmatprep.subr.bf16.mxu0 %v7359_v34  ;;  %5375 = vmatprep.subr.bf16.mxu1 %v7362_v35  ;;  %v7449_v34 = vld [vmem:[#allocation2 + $0x884] ss:$16 sps:$4 sm:$0xff]   ;;  %v7452_v35 = vld [vmem:[#allocation2 + $0x88c] ss:$16 sps:$4 sm:$0xff]  }
 0x120   :  { %4884 = vmatpush1.bf16.msra.mxu0 %v7357_v36  ;;  %5376 = vmatpush1.bf16.msra.mxu1 %v7360_v37  ;;  %v7447_v36 = vld [vmem:[#allocation2 + $0x880] ss:$16 sps:$4 sm:$0xff]   ;;  %v7450_v37 = vld [vmem:[#allocation2 + $0x888] ss:$16 sps:$4 sm:$0xff]  }
 0x121   :  { %4885 = vmatprep.subr.bf16.mxu0 %v7365_v38  ;;  %5377 = vmatprep.subr.bf16.mxu1 %v7368_v39  ;;  %v7455_v38 = vld [vmem:[#allocation2 + $0x8a4] ss:$16 sps:$4 sm:$0xff]   ;;  %v7458_v39 = vld [vmem:[#allocation2 + $0x8ac] ss:$16 sps:$4 sm:$0xff]  }
 0x124   :  { %4886 = vmatpush1.bf16.msra.mxu0 %v7363_v40  ;;  %5378 = vmatpush1.bf16.msra.mxu1 %v7366_v41  ;;  %v7453_v40 = vld [vmem:[#allocation2 + $0x8a0] ss:$16 sps:$4 sm:$0xff]   ;;  %v7456_v41 = vld [vmem:[#allocation2 + $0x8a8] ss:$16 sps:$4 sm:$0xff]  }
 0x125   :  { %4887 = vmatprep.subr.bf16.mxu0 %v7371_v42  ;;  %5379 = vmatprep.subr.bf16.mxu1 %v7374_v43  ;;  %v7461_v42 = vld [vmem:[#allocation2 + $0x8c4] ss:$16 sps:$4 sm:$0xff]   ;;  %v7464_v43 = vld [vmem:[#allocation2 + $0x8cc] ss:$16 sps:$4 sm:$0xff]  }
 0x128   :  { %4888 = vmatpush1.bf16.msra.mxu0 %v7369_v44  ;;  %5380 = vmatpush1.bf16.msra.mxu1 %v7372_v45  ;;  %v7459_v44 = vld [vmem:[#allocation2 + $0x8c0] ss:$16 sps:$4 sm:$0xff]   ;;  %v7462_v45 = vld [vmem:[#allocation2 + $0x8c8] ss:$16 sps:$4 sm:$0xff]  }
 0x129   :  { %4889 = vmatprep.subr.bf16.mxu0 %v7377_v46  ;;  %5381 = vmatprep.subr.bf16.mxu1 %v7380_v47  ;;  %v7467_v46 = vld [vmem:[#allocation2 + $0x8e4] ss:$16 sps:$4 sm:$0xff]   ;;  %v7470_v47 = vld [vmem:[#allocation2 + $0x8ec] ss:$16 sps:$4 sm:$0xff]  }
 0x12c   :  { %4890 = vmatpush1.bf16.msra.mxu0 %v7375_v48  ;;  %5382 = vmatpush1.bf16.msra.mxu1 %v7378_v49  ;;  %v7465_v48 = vld [vmem:[#allocation2 + $0x8e0] ss:$16 sps:$4 sm:$0xff]   ;;  %v7468_v49 = vld [vmem:[#allocation2 + $0x8e8] ss:$16 sps:$4 sm:$0xff]  }
 0x12d   :  { %4891 = vmatprep.subr.bf16.mxu0 %v7383_v50  ;;  %5383 = vmatprep.subr.bf16.mxu1 %v7386_v51  ;;  %v7473_v50 = vld [vmem:[#allocation2 + $0x904] ss:$16 sps:$4 sm:$0xff]   ;;  %v7476_v51 = vld [vmem:[#allocation2 + $0x90c] ss:$16 sps:$4 sm:$0xff]  }
 0x130   :  { %4892 = vmatpush1.bf16.msra.mxu0 %v7381_v52  ;;  %5384 = vmatpush1.bf16.msra.mxu1 %v7384_v53  ;;  %v7471_v52 = vld [vmem:[#allocation2 + $0x900] ss:$16 sps:$4 sm:$0xff]   ;;  %v7474_v53 = vld [vmem:[#allocation2 + $0x908] ss:$16 sps:$4 sm:$0xff]  }
 0x131   :  { %4893 = vmatprep.subr.bf16.mxu0 %v7389_v54  ;;  %5385 = vmatprep.subr.bf16.mxu1 %v7392_v55  ;;  %v7479_v54 = vld [vmem:[#allocation2 + $0x924] ss:$16 sps:$4 sm:$0xff]   ;;  %v7482_v55 = vld [vmem:[#allocation2 + $0x92c] ss:$16 sps:$4 sm:$0xff]  }
 0x134   :  { %4894 = vmatpush1.bf16.msra.mxu0 %v7387_v56  ;;  %5386 = vmatpush1.bf16.msra.mxu1 %v7390_v57  ;;  %v7477_v56 = vld [vmem:[#allocation2 + $0x920] ss:$16 sps:$4 sm:$0xff]   ;;  %v7480_v57 = vld [vmem:[#allocation2 + $0x928] ss:$16 sps:$4 sm:$0xff]  }
 0x135   :  { %4895 = vmatprep.subr.bf16.mxu0 %v7395_v58  ;;  %5387 = vmatprep.subr.bf16.mxu1 %v7398_v59  ;;  %v7485_v58 = vld [vmem:[#allocation2 + $0x944] ss:$16 sps:$4 sm:$0xff]   ;;  %v7488_v59 = vld [vmem:[#allocation2 + $0x94c] ss:$16 sps:$4 sm:$0xff]  }
 0x138   :  { %4896 = vmatpush1.bf16.msra.mxu0 %v7393_v60  ;;  %5388 = vmatpush1.bf16.msra.mxu1 %v7396_v61  ;;  %v7483_v60 = vld [vmem:[#allocation2 + $0x940] ss:$16 sps:$4 sm:$0xff]   ;;  %v7486_v61 = vld [vmem:[#allocation2 + $0x948] ss:$16 sps:$4 sm:$0xff]  }
 0x139   :  { %4897 = vmatprep.subr.bf16.mxu0 %v7401_v62  ;;  %5389 = vmatprep.subr.bf16.mxu1 %v7404_v63  ;;  %v7491_v62 = vld [vmem:[#allocation2 + $0x964] ss:$16 sps:$4 sm:$0xff]   ;;  %v7494_v63 = vld [vmem:[#allocation2 + $0x96c] ss:$16 sps:$4 sm:$0xff]  }
 0x13c   :  { %4898 = vmatpush1.bf16.msra.mxu0 %v7399_v0  ;;  %5390 = vmatpush1.bf16.msra.mxu1 %v7402_v1  ;;  %v7489_v0 = vld [vmem:[#allocation2 + $0x960] ss:$16 sps:$4 sm:$0xff]   ;;  %v7492_v1 = vld [vmem:[#allocation2 + $0x968] ss:$16 sps:$4 sm:$0xff]  }
 0x13d   :  { %4899 = vmatprep.subr.bf16.mxu0 %v7407_v2  ;;  %5391 = vmatprep.subr.bf16.mxu1 %v7410_v3  ;;  %v7497_v2 = vld [vmem:[#allocation2 + $0x984] ss:$16 sps:$4 sm:$0xff]   ;;  %v7500_v3 = vld [vmem:[#allocation2 + $0x98c] ss:$16 sps:$4 sm:$0xff]  }
 0x140   :  { %4900 = vmatpush1.bf16.msra.mxu0 %v7405_v4  ;;  %5392 = vmatpush1.bf16.msra.mxu1 %v7408_v5  ;;  %v7495_v4 = vld [vmem:[#allocation2 + $0x980] ss:$16 sps:$4 sm:$0xff]   ;;  %v7498_v5 = vld [vmem:[#allocation2 + $0x988] ss:$16 sps:$4 sm:$0xff]  }
 0x141   :  { %4901 = vmatprep.subr.bf16.mxu0 %v7413_v6  ;;  %5393 = vmatprep.subr.bf16.mxu1 %v7416_v7  ;;  %v7503_v6 = vld [vmem:[#allocation2 + $0x9a4] ss:$16 sps:$4 sm:$0xff]   ;;  %v7506_v7 = vld [vmem:[#allocation2 + $0x9ac] ss:$16 sps:$4 sm:$0xff]  }
 0x144   :  { %4902 = vmatpush1.bf16.msra.mxu0 %v7411_v8  ;;  %5394 = vmatpush1.bf16.msra.mxu1 %v7414_v9  ;;  %v7501_v8 = vld [vmem:[#allocation2 + $0x9a0] ss:$16 sps:$4 sm:$0xff]   ;;  %v7504_v9 = vld [vmem:[#allocation2 + $0x9a8] ss:$16 sps:$4 sm:$0xff]  }
 0x145   :  { %4903 = vmatprep.subr.bf16.mxu0 %v7419_v10  ;;  %5395 = vmatprep.subr.bf16.mxu1 %v7422_v11  ;;  %v7509_v10 = vld [vmem:[#allocation2 + $0x9c4] ss:$16 sps:$4 sm:$0xff]   ;;  %v7512_v11 = vld [vmem:[#allocation2 + $0x9cc] ss:$16 sps:$4 sm:$0xff]  }
 0x148   :  { %4904 = vmatpush1.bf16.msra.mxu0 %v7417_v12  ;;  %5396 = vmatpush1.bf16.msra.mxu1 %v7420_v13  ;;  %v7507_v12 = vld [vmem:[#allocation2 + $0x9c0] ss:$16 sps:$4 sm:$0xff]   ;;  %v7510_v13 = vld [vmem:[#allocation2 + $0x9c8] ss:$16 sps:$4 sm:$0xff]  }
 0x149   :  { %4914 = vmatprep.subr.bf16.mxu0 %v7425_v15  ;;  %5406 = vmatprep.subr.bf16.mxu1 %v7428_v16  ;;  %v7518_v15 = vld [vmem:[#allocation2 + $0x9ec] ss:$16 sps:$4 sm:$0xff]   ;;  %v7513_v16 = vld [vmem:[#allocation2 + $0x9e0] ss:$16 sps:$4 sm:$0xff]  }
 0x14b   :  { %4906 = vmatmul.mubr.bf16.vlgmr.msra.gmra.mrb[0].mxu0 %v102_v17  ;;  %5398 = vmatmul.mubr.bf16.vlgmr.msra.gmra.mrb[0].mxu1 %v102_v17  ;;  %v7516_v17 = vld [vmem:[#allocation2 + $0x9e8] ss:$16 sps:$4 sm:$0xff]  }
 0x14c   :  { %4915 = vmatpush1.bf16.msra.mxu0 %v7423_v19  ;;  %5407 = vmatpush1.bf16.msra.mxu1 %v7426_v20  ;;  %v80_v19 = vld [vmem:[%s8485_s0 + $0x40] sm:$0xff]  ;;  %v7524_v20 = vld [vmem:[#allocation2 + $0xa0c] ss:$16 sps:$4 sm:$0xff]  }
 0x14d   :  { %4916 = vmatprep.subr.bf16.mxu0 %v7431_v21  ;;  %5408 = vmatprep.subr.bf16.mxu1 %v7434_v22  ;;  %v83_v21 = vld [vmem:[%s8485_s0 + $0x58] sm:$0xff]  ;;  %v104_v22 = vpack.c.bf16 %v80_v19, %v80_v19 }
 0x14e   :  { %4946 = vmatprep.mubr.bf16.mxu0 %v105_v23  ;;  %5438 = vmatprep.mubr.bf16.mxu1 %v105_v23  ;;  %v7519_v23 = vld [vmem:[#allocation2 + $0xa00] ss:$16 sps:$4 sm:$0xff]   ;;  %v7614_v19 = vld [vmem:[#allocation2 + $0xbec] ss:$16 sps:$4 sm:$0xff]  }
 0x150   :  { %4917 = vmatpush1.bf16.msra.mxu0 %v7429_v24  ;;  %5409 = vmatpush1.bf16.msra.mxu1 %v7432_v25  ;;  %v7522_v24 = vld [vmem:[#allocation2 + $0xa08] ss:$16 sps:$4 sm:$0xff]   ;;  %v7527_v25 = vld [vmem:[#allocation2 + $0xa24] ss:$16 sps:$4 sm:$0xff]  }
 0x151   :  { %4918 = vmatprep.subr.bf16.mxu0 %v7437_v26  ;;  %5410 = vmatprep.subr.bf16.mxu1 %v7440_v27  ;;  %v7530_v26 = vld [vmem:[#allocation2 + $0xa2c] ss:$16 sps:$4 sm:$0xff]   ;;  %v107_v27 = vpack.c.bf16 %v83_v21, %v83_v21  ;;  %v7612_v21 = vld [vmem:[#allocation2 + $0xbe8] ss:$16 sps:$4 sm:$0xff]  }
 0x154   :  { %4919 = vmatpush1.bf16.msra.mxu0 %v7435_v28  ;;  %5411 = vmatpush1.bf16.msra.mxu1 %v7438_v29  ;;  %v7525_v28 = vld [vmem:[#allocation2 + $0xa20] ss:$16 sps:$4 sm:$0xff]   ;;  %v7528_v29 = vld [vmem:[#allocation2 + $0xa28] ss:$16 sps:$4 sm:$0xff]  }
 0x155   :  { %4920 = vmatprep.subr.bf16.mxu0 %v7443_v30  ;;  %5412 = vmatprep.subr.bf16.mxu1 %v7446_v31  ;;  %v7533_v30 = vld [vmem:[#allocation2 + $0xa44] ss:$16 sps:$4 sm:$0xff]   ;;  %v7536_v31 = vld [vmem:[#allocation2 + $0xa4c] ss:$16 sps:$4 sm:$0xff]  }
 0x158   :  { %4921 = vmatpush1.bf16.msra.mxu0 %v7441_v32  ;;  %5413 = vmatpush1.bf16.msra.mxu1 %v7444_v33  ;;  %v7531_v32 = vld [vmem:[#allocation2 + $0xa40] ss:$16 sps:$4 sm:$0xff]   ;;  %v7534_v33 = vld [vmem:[#allocation2 + $0xa48] ss:$16 sps:$4 sm:$0xff]  }
 0x159   :  { %4922 = vmatprep.subr.bf16.mxu0 %v7449_v34  ;;  %5414 = vmatprep.subr.bf16.mxu1 %v7452_v35  ;;  %v7539_v34 = vld [vmem:[#allocation2 + $0xa64] ss:$16 sps:$4 sm:$0xff]   ;;  %v7542_v35 = vld [vmem:[#allocation2 + $0xa6c] ss:$16 sps:$4 sm:$0xff]  }
 0x15c   :  { %4923 = vmatpush1.bf16.msra.mxu0 %v7447_v36  ;;  %5415 = vmatpush1.bf16.msra.mxu1 %v7450_v37  ;;  %v7537_v36 = vld [vmem:[#allocation2 + $0xa60] ss:$16 sps:$4 sm:$0xff]   ;;  %v7540_v37 = vld [vmem:[#allocation2 + $0xa68] ss:$16 sps:$4 sm:$0xff]  }
 0x15d   :  { %4924 = vmatprep.subr.bf16.mxu0 %v7455_v38  ;;  %5416 = vmatprep.subr.bf16.mxu1 %v7458_v39  ;;  %v7545_v38 = vld [vmem:[#allocation2 + $0xa84] ss:$16 sps:$4 sm:$0xff]   ;;  %v7548_v39 = vld [vmem:[#allocation2 + $0xa8c] ss:$16 sps:$4 sm:$0xff]  }
 0x160   :  { %4925 = vmatpush1.bf16.msra.mxu0 %v7453_v40  ;;  %5417 = vmatpush1.bf16.msra.mxu1 %v7456_v41  ;;  %v7543_v40 = vld [vmem:[#allocation2 + $0xa80] ss:$16 sps:$4 sm:$0xff]   ;;  %v7546_v41 = vld [vmem:[#allocation2 + $0xa88] ss:$16 sps:$4 sm:$0xff]  }
 0x161   :  { %4926 = vmatprep.subr.bf16.mxu0 %v7461_v42  ;;  %5418 = vmatprep.subr.bf16.mxu1 %v7464_v43  ;;  %v7551_v42 = vld [vmem:[#allocation2 + $0xaa4] ss:$16 sps:$4 sm:$0xff]   ;;  %v7554_v43 = vld [vmem:[#allocation2 + $0xaac] ss:$16 sps:$4 sm:$0xff]  }
 0x164   :  { %4927 = vmatpush1.bf16.msra.mxu0 %v7459_v44  ;;  %5419 = vmatpush1.bf16.msra.mxu1 %v7462_v45  ;;  %v7549_v44 = vld [vmem:[#allocation2 + $0xaa0] ss:$16 sps:$4 sm:$0xff]   ;;  %v7552_v45 = vld [vmem:[#allocation2 + $0xaa8] ss:$16 sps:$4 sm:$0xff]  }
 0x165   :  { %4928 = vmatprep.subr.bf16.mxu0 %v7467_v46  ;;  %5420 = vmatprep.subr.bf16.mxu1 %v7470_v47  ;;  %v7557_v46 = vld [vmem:[#allocation2 + $0xac4] ss:$16 sps:$4 sm:$0xff]   ;;  %v7560_v47 = vld [vmem:[#allocation2 + $0xacc] ss:$16 sps:$4 sm:$0xff]  }
 0x168   :  { %4929 = vmatpush1.bf16.msra.mxu0 %v7465_v48  ;;  %5421 = vmatpush1.bf16.msra.mxu1 %v7468_v49  ;;  %v7555_v48 = vld [vmem:[#allocation2 + $0xac0] ss:$16 sps:$4 sm:$0xff]   ;;  %v7558_v49 = vld [vmem:[#allocation2 + $0xac8] ss:$16 sps:$4 sm:$0xff]  }
 0x169   :  { %4930 = vmatprep.subr.bf16.mxu0 %v7473_v50  ;;  %5422 = vmatprep.subr.bf16.mxu1 %v7476_v51  ;;  %v7563_v50 = vld [vmem:[#allocation2 + $0xae4] ss:$16 sps:$4 sm:$0xff]   ;;  %v7566_v51 = vld [vmem:[#allocation2 + $0xaec] ss:$16 sps:$4 sm:$0xff]  }
 0x16c   :  { %4931 = vmatpush1.bf16.msra.mxu0 %v7471_v52  ;;  %5423 = vmatpush1.bf16.msra.mxu1 %v7474_v53  ;;  %v7561_v52 = vld [vmem:[#allocation2 + $0xae0] ss:$16 sps:$4 sm:$0xff]   ;;  %v7564_v53 = vld [vmem:[#allocation2 + $0xae8] ss:$16 sps:$4 sm:$0xff]  }
 0x16d   :  { %4932 = vmatprep.subr.bf16.mxu0 %v7479_v54  ;;  %5424 = vmatprep.subr.bf16.mxu1 %v7482_v55  ;;  %v7569_v54 = vld [vmem:[#allocation2 + $0xb04] ss:$16 sps:$4 sm:$0xff]   ;;  %v7572_v55 = vld [vmem:[#allocation2 + $0xb0c] ss:$16 sps:$4 sm:$0xff]  }
 0x170   :  { %4933 = vmatpush1.bf16.msra.mxu0 %v7477_v56  ;;  %5425 = vmatpush1.bf16.msra.mxu1 %v7480_v57  ;;  %v7567_v56 = vld [vmem:[#allocation2 + $0xb00] ss:$16 sps:$4 sm:$0xff]   ;;  %v7570_v57 = vld [vmem:[#allocation2 + $0xb08] ss:$16 sps:$4 sm:$0xff]  }
 0x171   :  { %4934 = vmatprep.subr.bf16.mxu0 %v7485_v58  ;;  %5426 = vmatprep.subr.bf16.mxu1 %v7488_v59  ;;  %v7575_v58 = vld [vmem:[#allocation2 + $0xb24] ss:$16 sps:$4 sm:$0xff]   ;;  %v7578_v59 = vld [vmem:[#allocation2 + $0xb2c] ss:$16 sps:$4 sm:$0xff]  }
 0x174   :  { %4935 = vmatpush1.bf16.msra.mxu0 %v7483_v60  ;;  %5427 = vmatpush1.bf16.msra.mxu1 %v7486_v61  ;;  %v7573_v60 = vld [vmem:[#allocation2 + $0xb20] ss:$16 sps:$4 sm:$0xff]   ;;  %v7576_v61 = vld [vmem:[#allocation2 + $0xb28] ss:$16 sps:$4 sm:$0xff]  }
 0x175   :  { %4936 = vmatprep.subr.bf16.mxu0 %v7491_v62  ;;  %5428 = vmatprep.subr.bf16.mxu1 %v7494_v63  ;;  %v7581_v62 = vld [vmem:[#allocation2 + $0xb44] ss:$16 sps:$4 sm:$0xff]   ;;  %v7584_v63 = vld [vmem:[#allocation2 + $0xb4c] ss:$16 sps:$4 sm:$0xff]  }
 0x178   :  { %4937 = vmatpush1.bf16.msra.mxu0 %v7489_v0  ;;  %5429 = vmatpush1.bf16.msra.mxu1 %v7492_v1  ;;  %v7579_v0 = vld [vmem:[#allocation2 + $0xb40] ss:$16 sps:$4 sm:$0xff]   ;;  %v7582_v1 = vld [vmem:[#allocation2 + $0xb48] ss:$16 sps:$4 sm:$0xff]  }
 0x179   :  { %4938 = vmatprep.subr.bf16.mxu0 %v7497_v2  ;;  %5430 = vmatprep.subr.bf16.mxu1 %v7500_v3  ;;  %v7587_v2 = vld [vmem:[#allocation2 + $0xb64] ss:$16 sps:$4 sm:$0xff]   ;;  %v7590_v3 = vld [vmem:[#allocation2 + $0xb6c] ss:$16 sps:$4 sm:$0xff]  }
 0x17c   :  { %4939 = vmatpush1.bf16.msra.mxu0 %v7495_v4  ;;  %5431 = vmatpush1.bf16.msra.mxu1 %v7498_v5  ;;  %v7585_v4 = vld [vmem:[#allocation2 + $0xb60] ss:$16 sps:$4 sm:$0xff]   ;;  %v7588_v5 = vld [vmem:[#allocation2 + $0xb68] ss:$16 sps:$4 sm:$0xff]  }
 0x17d   :  { %4940 = vmatprep.subr.bf16.mxu0 %v7503_v6  ;;  %5432 = vmatprep.subr.bf16.mxu1 %v7506_v7  ;;  %v7593_v6 = vld [vmem:[#allocation2 + $0xb84] ss:$16 sps:$4 sm:$0xff]   ;;  %v7596_v7 = vld [vmem:[#allocation2 + $0xb8c] ss:$16 sps:$4 sm:$0xff]  }
 0x180   :  { %4941 = vmatpush1.bf16.msra.mxu0 %v7501_v8  ;;  %5433 = vmatpush1.bf16.msra.mxu1 %v7504_v9  ;;  %v7591_v8 = vld [vmem:[#allocation2 + $0xb80] ss:$16 sps:$4 sm:$0xff]   ;;  %v7594_v9 = vld [vmem:[#allocation2 + $0xb88] ss:$16 sps:$4 sm:$0xff]  }
 0x181   :  { %4942 = vmatprep.subr.bf16.mxu0 %v7509_v10  ;;  %5434 = vmatprep.subr.bf16.mxu1 %v7512_v11  ;;  %v7599_v10 = vld [vmem:[#allocation2 + $0xba4] ss:$16 sps:$4 sm:$0xff]   ;;  %v7602_v11 = vld [vmem:[#allocation2 + $0xbac] ss:$16 sps:$4 sm:$0xff]  }
 0x184   :  { %4943 = vmatpush1.bf16.msra.mxu0 %v7507_v12  ;;  %5435 = vmatpush1.bf16.msra.mxu1 %v7510_v13  ;;  %v7597_v12 = vld [vmem:[#allocation2 + $0xba0] ss:$16 sps:$4 sm:$0xff]   ;;  %v7600_v13 = vld [vmem:[#allocation2 + $0xba8] ss:$16 sps:$4 sm:$0xff]  }
 0x185   :  { %4944 = vmatprep.subr.bf16.mxu0 %v7515_v14  ;;  %5436 = vmatprep.subr.bf16.mxu1 %v7518_v15  ;;  %v7605_v14 = vld [vmem:[#allocation2 + $0xbc4] ss:$16 sps:$4 sm:$0xff]   ;;  %v7608_v15 = vld [vmem:[#allocation2 + $0xbcc] ss:$16 sps:$4 sm:$0xff]  }
 0x188   :  { %4945 = vmatpush1.bf16.msra.mxu0 %v7513_v16  ;;  %5437 = vmatpush1.bf16.msra.mxu1 %v7516_v17  ;;  %v7603_v16 = vld [vmem:[#allocation2 + $0xbc0] ss:$16 sps:$4 sm:$0xff]   ;;  %v7606_v17 = vld [vmem:[#allocation2 + $0xbc8] ss:$16 sps:$4 sm:$0xff]  }
 0x189   :  { %4955 = vmatprep.subr.bf16.mxu0 %v7521_v18  ;;  %5447 = vmatprep.subr.bf16.mxu1 %v7524_v20  ;;  %v7611_v18 = vld [vmem:[#allocation2 + $0xbe4] ss:$16 sps:$4 sm:$0xff]   ;;  %v7609_v20 = vld [vmem:[#allocation2 + $0xbe0] ss:$16 sps:$4 sm:$0xff]  }
 0x18b   :  { %4947 = vmatmul.mubr.bf16.vlgmr.msra.gmra.mrb[0].mxu0 %v104_v22  ;;  %5439 = vmatmul.mubr.bf16.vlgmr.msra.gmra.mrb[0].mxu1 %v104_v22  ;;  %v7617_v22 = vld [vmem:[#allocation2 + $0xc04] ss:$16 sps:$4 sm:$0xff]  }
 0x18c   :  { %4956 = vmatpush1.bf16.msra.mxu0 %v7519_v23  ;;  %5448 = vmatpush1.bf16.msra.mxu1 %v7522_v24  ;;  %v82_v23 = vld [vmem:[%s8485_s0 + $0x50] sm:$0xff]  ;;  %v7620_v24 = vld [vmem:[#allocation2 + $0xc0c] ss:$16 sps:$4 sm:$0xff]  }
 0x18d   :  { %4957 = vmatprep.subr.bf16.mxu0 %v7527_v25  ;;  %5449 = vmatprep.subr.bf16.mxu1 %v7530_v26  ;;  %v85_v25 = vld [vmem:[%s8485_s0 + $0x68] sm:$0xff]  ;;  %v106_v26 = vpack.c.bf16 %v82_v23, %v82_v23 }
 0x18e   :  { %4987 = vmatprep.mubr.bf16.mxu0 %v107_v27  ;;  %5479 = vmatprep.mubr.bf16.mxu1 %v107_v27  ;;  %v7615_v27 = vld [vmem:[#allocation2 + $0xc00] ss:$16 sps:$4 sm:$0xff]   ;;  %v7710_v23 = vld [vmem:[#allocation2 + $0xdec] ss:$16 sps:$4 sm:$0xff]  }
 0x190   :  { %4958 = vmatpush1.bf16.msra.mxu0 %v7525_v28  ;;  %5450 = vmatpush1.bf16.msra.mxu1 %v7528_v29  ;;  %v7618_v28 = vld [vmem:[#allocation2 + $0xc08] ss:$16 sps:$4 sm:$0xff]   ;;  %v7623_v29 = vld [vmem:[#allocation2 + $0xc24] ss:$16 sps:$4 sm:$0xff]  }
 0x191   :  { %4959 = vmatprep.subr.bf16.mxu0 %v7533_v30  ;;  %5451 = vmatprep.subr.bf16.mxu1 %v7536_v31  ;;  %v7626_v30 = vld [vmem:[#allocation2 + $0xc2c] ss:$16 sps:$4 sm:$0xff]   ;;  %v109_v31 = vpack.c.bf16 %v85_v25, %v85_v25  ;;  %v7708_v25 = vld [vmem:[#allocation2 + $0xde8] ss:$16 sps:$4 sm:$0xff]  }
 0x194   :  { %4960 = vmatpush1.bf16.msra.mxu0 %v7531_v32  ;;  %5452 = vmatpush1.bf16.msra.mxu1 %v7534_v33  ;;  %v7621_v32 = vld [vmem:[#allocation2 + $0xc20] ss:$16 sps:$4 sm:$0xff]   ;;  %v7624_v33 = vld [vmem:[#allocation2 + $0xc28] ss:$16 sps:$4 sm:$0xff]  }
 0x195   :  { %4961 = vmatprep.subr.bf16.mxu0 %v7539_v34  ;;  %5453 = vmatprep.subr.bf16.mxu1 %v7542_v35  ;;  %v7629_v34 = vld [vmem:[#allocation2 + $0xc44] ss:$16 sps:$4 sm:$0xff]   ;;  %v7632_v35 = vld [vmem:[#allocation2 + $0xc4c] ss:$16 sps:$4 sm:$0xff]  }
 0x198   :  { %4962 = vmatpush1.bf16.msra.mxu0 %v7537_v36  ;;  %5454 = vmatpush1.bf16.msra.mxu1 %v7540_v37  ;;  %v7627_v36 = vld [vmem:[#allocation2 + $0xc40] ss:$16 sps:$4 sm:$0xff]   ;;  %v7630_v37 = vld [vmem:[#allocation2 + $0xc48] ss:$16 sps:$4 sm:$0xff]  }
 0x199   :  { %4963 = vmatprep.subr.bf16.mxu0 %v7545_v38  ;;  %5455 = vmatprep.subr.bf16.mxu1 %v7548_v39  ;;  %v7635_v38 = vld [vmem:[#allocation2 + $0xc64] ss:$16 sps:$4 sm:$0xff]   ;;  %v7638_v39 = vld [vmem:[#allocation2 + $0xc6c] ss:$16 sps:$4 sm:$0xff]  }
 0x19c   :  { %4964 = vmatpush1.bf16.msra.mxu0 %v7543_v40  ;;  %5456 = vmatpush1.bf16.msra.mxu1 %v7546_v41  ;;  %v7633_v40 = vld [vmem:[#allocation2 + $0xc60] ss:$16 sps:$4 sm:$0xff]   ;;  %v7636_v41 = vld [vmem:[#allocation2 + $0xc68] ss:$16 sps:$4 sm:$0xff]  }
 0x19d   :  { %4965 = vmatprep.subr.bf16.mxu0 %v7551_v42  ;;  %5457 = vmatprep.subr.bf16.mxu1 %v7554_v43  ;;  %v7641_v42 = vld [vmem:[#allocation2 + $0xc84] ss:$16 sps:$4 sm:$0xff]   ;;  %v7644_v43 = vld [vmem:[#allocation2 + $0xc8c] ss:$16 sps:$4 sm:$0xff]  }
 0x1a0   :  { %4966 = vmatpush1.bf16.msra.mxu0 %v7549_v44  ;;  %5458 = vmatpush1.bf16.msra.mxu1 %v7552_v45  ;;  %v7639_v44 = vld [vmem:[#allocation2 + $0xc80] ss:$16 sps:$4 sm:$0xff]   ;;  %v7642_v45 = vld [vmem:[#allocation2 + $0xc88] ss:$16 sps:$4 sm:$0xff]  }
 0x1a1   :  { %4967 = vmatprep.subr.bf16.mxu0 %v7557_v46  ;;  %5459 = vmatprep.subr.bf16.mxu1 %v7560_v47  ;;  %v7647_v46 = vld [vmem:[#allocation2 + $0xca4] ss:$16 sps:$4 sm:$0xff]   ;;  %v7650_v47 = vld [vmem:[#allocation2 + $0xcac] ss:$16 sps:$4 sm:$0xff]  }
 0x1a4   :  { %4968 = vmatpush1.bf16.msra.mxu0 %v7555_v48  ;;  %5460 = vmatpush1.bf16.msra.mxu1 %v7558_v49  ;;  %v7645_v48 = vld [vmem:[#allocation2 + $0xca0] ss:$16 sps:$4 sm:$0xff]   ;;  %v7648_v49 = vld [vmem:[#allocation2 + $0xca8] ss:$16 sps:$4 sm:$0xff]  }
 0x1a5   :  { %4969 = vmatprep.subr.bf16.mxu0 %v7563_v50  ;;  %5461 = vmatprep.subr.bf16.mxu1 %v7566_v51  ;;  %v7653_v50 = vld [vmem:[#allocation2 + $0xcc4] ss:$16 sps:$4 sm:$0xff]   ;;  %v7656_v51 = vld [vmem:[#allocation2 + $0xccc] ss:$16 sps:$4 sm:$0xff]  }
 0x1a8   :  { %4970 = vmatpush1.bf16.msra.mxu0 %v7561_v52  ;;  %5462 = vmatpush1.bf16.msra.mxu1 %v7564_v53  ;;  %v7651_v52 = vld [vmem:[#allocation2 + $0xcc0] ss:$16 sps:$4 sm:$0xff]   ;;  %v7654_v53 = vld [vmem:[#allocation2 + $0xcc8] ss:$16 sps:$4 sm:$0xff]  }
 0x1a9   :  { %4971 = vmatprep.subr.bf16.mxu0 %v7569_v54  ;;  %5463 = vmatprep.subr.bf16.mxu1 %v7572_v55  ;;  %v7659_v54 = vld [vmem:[#allocation2 + $0xce4] ss:$16 sps:$4 sm:$0xff]   ;;  %v7662_v55 = vld [vmem:[#allocation2 + $0xcec] ss:$16 sps:$4 sm:$0xff]  }
 0x1ac   :  { %4972 = vmatpush1.bf16.msra.mxu0 %v7567_v56  ;;  %5464 = vmatpush1.bf16.msra.mxu1 %v7570_v57  ;;  %v7657_v56 = vld [vmem:[#allocation2 + $0xce0] ss:$16 sps:$4 sm:$0xff]   ;;  %v7660_v57 = vld [vmem:[#allocation2 + $0xce8] ss:$16 sps:$4 sm:$0xff]  }
 0x1ad   :  { %4973 = vmatprep.subr.bf16.mxu0 %v7575_v58  ;;  %5465 = vmatprep.subr.bf16.mxu1 %v7578_v59  ;;  %v7665_v58 = vld [vmem:[#allocation2 + $0xd04] ss:$16 sps:$4 sm:$0xff]   ;;  %v7668_v59 = vld [vmem:[#allocation2 + $0xd0c] ss:$16 sps:$4 sm:$0xff]  }
 0x1b0   :  { %4974 = vmatpush1.bf16.msra.mxu0 %v7573_v60  ;;  %5466 = vmatpush1.bf16.msra.mxu1 %v7576_v61  ;;  %v7663_v60 = vld [vmem:[#allocation2 + $0xd00] ss:$16 sps:$4 sm:$0xff]   ;;  %v7666_v61 = vld [vmem:[#allocation2 + $0xd08] ss:$16 sps:$4 sm:$0xff]  }
 0x1b1   :  { %4975 = vmatprep.subr.bf16.mxu0 %v7581_v62  ;;  %5467 = vmatprep.subr.bf16.mxu1 %v7584_v63  ;;  %v7671_v62 = vld [vmem:[#allocation2 + $0xd24] ss:$16 sps:$4 sm:$0xff]   ;;  %v7674_v63 = vld [vmem:[#allocation2 + $0xd2c] ss:$16 sps:$4 sm:$0xff]  }
 0x1b4   :  { %4976 = vmatpush1.bf16.msra.mxu0 %v7579_v0  ;;  %5468 = vmatpush1.bf16.msra.mxu1 %v7582_v1  ;;  %v7669_v0 = vld [vmem:[#allocation2 + $0xd20] ss:$16 sps:$4 sm:$0xff]   ;;  %v7672_v1 = vld [vmem:[#allocation2 + $0xd28] ss:$16 sps:$4 sm:$0xff]  }
 0x1b5   :  { %4977 = vmatprep.subr.bf16.mxu0 %v7587_v2  ;;  %5469 = vmatprep.subr.bf16.mxu1 %v7590_v3  ;;  %v7677_v2 = vld [vmem:[#allocation2 + $0xd44] ss:$16 sps:$4 sm:$0xff]   ;;  %v7680_v3 = vld [vmem:[#allocation2 + $0xd4c] ss:$16 sps:$4 sm:$0xff]  }
 0x1b8   :  { %4978 = vmatpush1.bf16.msra.mxu0 %v7585_v4  ;;  %5470 = vmatpush1.bf16.msra.mxu1 %v7588_v5  ;;  %v7675_v4 = vld [vmem:[#allocation2 + $0xd40] ss:$16 sps:$4 sm:$0xff]   ;;  %v7678_v5 = vld [vmem:[#allocation2 + $0xd48] ss:$16 sps:$4 sm:$0xff]  }
 0x1b9   :  { %4979 = vmatprep.subr.bf16.mxu0 %v7593_v6  ;;  %5471 = vmatprep.subr.bf16.mxu1 %v7596_v7  ;;  %v7683_v6 = vld [vmem:[#allocation2 + $0xd64] ss:$16 sps:$4 sm:$0xff]   ;;  %v7686_v7 = vld [vmem:[#allocation2 + $0xd6c] ss:$16 sps:$4 sm:$0xff]  }
 0x1bc   :  { %4980 = vmatpush1.bf16.msra.mxu0 %v7591_v8  ;;  %5472 = vmatpush1.bf16.msra.mxu1 %v7594_v9  ;;  %v7681_v8 = vld [vmem:[#allocation2 + $0xd60] ss:$16 sps:$4 sm:$0xff]   ;;  %v7684_v9 = vld [vmem:[#allocation2 + $0xd68] ss:$16 sps:$4 sm:$0xff]  }
 0x1bd   :  { %4981 = vmatprep.subr.bf16.mxu0 %v7599_v10  ;;  %5473 = vmatprep.subr.bf16.mxu1 %v7602_v11  ;;  %v7689_v10 = vld [vmem:[#allocation2 + $0xd84] ss:$16 sps:$4 sm:$0xff]   ;;  %v7692_v11 = vld [vmem:[#allocation2 + $0xd8c] ss:$16 sps:$4 sm:$0xff]  }
 0x1c0   :  { %4982 = vmatpush1.bf16.msra.mxu0 %v7597_v12  ;;  %5474 = vmatpush1.bf16.msra.mxu1 %v7600_v13  ;;  %v7687_v12 = vld [vmem:[#allocation2 + $0xd80] ss:$16 sps:$4 sm:$0xff]   ;;  %v7690_v13 = vld [vmem:[#allocation2 + $0xd88] ss:$16 sps:$4 sm:$0xff]  }
 0x1c1   :  { %4983 = vmatprep.subr.bf16.mxu0 %v7605_v14  ;;  %5475 = vmatprep.subr.bf16.mxu1 %v7608_v15  ;;  %v7695_v14 = vld [vmem:[#allocation2 + $0xda4] ss:$16 sps:$4 sm:$0xff]   ;;  %v7698_v15 = vld [vmem:[#allocation2 + $0xdac] ss:$16 sps:$4 sm:$0xff]  }
 0x1c4   :  { %4984 = vmatpush1.bf16.msra.mxu0 %v7603_v16  ;;  %5476 = vmatpush1.bf16.msra.mxu1 %v7606_v17  ;;  %v7693_v16 = vld [vmem:[#allocation2 + $0xda0] ss:$16 sps:$4 sm:$0xff]   ;;  %v7696_v17 = vld [vmem:[#allocation2 + $0xda8] ss:$16 sps:$4 sm:$0xff]  }
 0x1c5   :  { %4985 = vmatprep.subr.bf16.mxu0 %v7611_v18  ;;  %5477 = vmatprep.subr.bf16.mxu1 %v7614_v19  ;;  %v7701_v18 = vld [vmem:[#allocation2 + $0xdc4] ss:$16 sps:$4 sm:$0xff]   ;;  %v7704_v19 = vld [vmem:[#allocation2 + $0xdcc] ss:$16 sps:$4 sm:$0xff]  }
 0x1c8   :  { %4986 = vmatpush1.bf16.msra.mxu0 %v7609_v20  ;;  %5478 = vmatpush1.bf16.msra.mxu1 %v7612_v21  ;;  %v7699_v20 = vld [vmem:[#allocation2 + $0xdc0] ss:$16 sps:$4 sm:$0xff]   ;;  %v7702_v21 = vld [vmem:[#allocation2 + $0xdc8] ss:$16 sps:$4 sm:$0xff]  }
 0x1c9   :  { %4996 = vmatprep.subr.bf16.mxu0 %v7617_v22  ;;  %5488 = vmatprep.subr.bf16.mxu1 %v7620_v24  ;;  %v7707_v22 = vld [vmem:[#allocation2 + $0xde4] ss:$16 sps:$4 sm:$0xff]   ;;  %v7705_v24 = vld [vmem:[#allocation2 + $0xde0] ss:$16 sps:$4 sm:$0xff]  }
 0x1cb   :  { %4988 = vmatmul.mubr.bf16.vlgmr.msra.gmra.mrb[0].mxu0 %v106_v26  ;;  %5480 = vmatmul.mubr.bf16.vlgmr.msra.gmra.mrb[0].mxu1 %v106_v26  ;;  %v7713_v26 = vld [vmem:[#allocation2 + $0xe04] ss:$16 sps:$4 sm:$0xff]  }
 0x1cc   :  { %4997 = vmatpush1.bf16.msra.mxu0 %v7615_v27  ;;  %5489 = vmatpush1.bf16.msra.mxu1 %v7618_v28  ;;  %v84_v27 = vld [vmem:[%s8485_s0 + $0x60] sm:$0xff]  ;;  %v7716_v28 = vld [vmem:[#allocation2 + $0xe0c] ss:$16 sps:$4 sm:$0xff]  }
 0x1cd   :  { %4998 = vmatprep.subr.bf16.mxu0 %v7623_v29  ;;  %5490 = vmatprep.subr.bf16.mxu1 %v7626_v30  ;;  %v87_v29 = vld [vmem:[%s8485_s0 + $0x78] sm:$0xff]  ;;  %v108_v30 = vpack.c.bf16 %v84_v27, %v84_v27 }
 0x1ce   :  { %5028 = vmatprep.mubr.bf16.mxu0 %v109_v31  ;;  %5520 = vmatprep.mubr.bf16.mxu1 %v109_v31  ;;  %v7711_v31 = vld [vmem:[#allocation2 + $0xe00] ss:$16 sps:$4 sm:$0xff]   ;;  %v7806_v27 = vld [vmem:[#allocation2 + $0xfec] ss:$16 sps:$4 sm:$0xff]  }
 0x1d0   :  { %4999 = vmatpush1.bf16.msra.mxu0 %v7621_v32  ;;  %5491 = vmatpush1.bf16.msra.mxu1 %v7624_v33  ;;  %v7714_v32 = vld [vmem:[#allocation2 + $0xe08] ss:$16 sps:$4 sm:$0xff]   ;;  %v7719_v33 = vld [vmem:[#allocation2 + $0xe24] ss:$16 sps:$4 sm:$0xff]  }
 0x1d1   :  { %5000 = vmatprep.subr.bf16.mxu0 %v7629_v34  ;;  %5492 = vmatprep.subr.bf16.mxu1 %v7632_v35  ;;  %v7722_v34 = vld [vmem:[#allocation2 + $0xe2c] ss:$16 sps:$4 sm:$0xff]   ;;  %v111_v35 = vpack.c.bf16 %v87_v29, %v87_v29  ;;  %v7804_v29 = vld [vmem:[#allocation2 + $0xfe8] ss:$16 sps:$4 sm:$0xff]  }
 0x1d4   :  { %5001 = vmatpush1.bf16.msra.mxu0 %v7627_v36  ;;  %5493 = vmatpush1.bf16.msra.mxu1 %v7630_v37  ;;  %v7717_v36 = vld [vmem:[#allocation2 + $0xe20] ss:$16 sps:$4 sm:$0xff]   ;;  %v7720_v37 = vld [vmem:[#allocation2 + $0xe28] ss:$16 sps:$4 sm:$0xff]  }
 0x1d5   :  { %5002 = vmatprep.subr.bf16.mxu0 %v7635_v38  ;;  %5494 = vmatprep.subr.bf16.mxu1 %v7638_v39  ;;  %v7725_v38 = vld [vmem:[#allocation2 + $0xe44] ss:$16 sps:$4 sm:$0xff]   ;;  %v7728_v39 = vld [vmem:[#allocation2 + $0xe4c] ss:$16 sps:$4 sm:$0xff]  }
 0x1d8   :  { %5003 = vmatpush1.bf16.msra.mxu0 %v7633_v40  ;;  %5495 = vmatpush1.bf16.msra.mxu1 %v7636_v41  ;;  %v7723_v40 = vld [vmem:[#allocation2 + $0xe40] ss:$16 sps:$4 sm:$0xff]   ;;  %v7726_v41 = vld [vmem:[#allocation2 + $0xe48] ss:$16 sps:$4 sm:$0xff]  }
 0x1d9   :  { %5004 = vmatprep.subr.bf16.mxu0 %v7641_v42  ;;  %5496 = vmatprep.subr.bf16.mxu1 %v7644_v43  ;;  %v7731_v42 = vld [vmem:[#allocation2 + $0xe64] ss:$16 sps:$4 sm:$0xff]   ;;  %v7734_v43 = vld [vmem:[#allocation2 + $0xe6c] ss:$16 sps:$4 sm:$0xff]  }
 0x1dc   :  { %5005 = vmatpush1.bf16.msra.mxu0 %v7639_v44  ;;  %5497 = vmatpush1.bf16.msra.mxu1 %v7642_v45  ;;  %v7729_v44 = vld [vmem:[#allocation2 + $0xe60] ss:$16 sps:$4 sm:$0xff]   ;;  %v7732_v45 = vld [vmem:[#allocation2 + $0xe68] ss:$16 sps:$4 sm:$0xff]  }
 0x1dd   :  { %5006 = vmatprep.subr.bf16.mxu0 %v7647_v46  ;;  %5498 = vmatprep.subr.bf16.mxu1 %v7650_v47  ;;  %v7737_v46 = vld [vmem:[#allocation2 + $0xe84] ss:$16 sps:$4 sm:$0xff]   ;;  %v7740_v47 = vld [vmem:[#allocation2 + $0xe8c] ss:$16 sps:$4 sm:$0xff]  }
 0x1e0   :  { %5007 = vmatpush1.bf16.msra.mxu0 %v7645_v48  ;;  %5499 = vmatpush1.bf16.msra.mxu1 %v7648_v49  ;;  %v7735_v48 = vld [vmem:[#allocation2 + $0xe80] ss:$16 sps:$4 sm:$0xff]   ;;  %v7738_v49 = vld [vmem:[#allocation2 + $0xe88] ss:$16 sps:$4 sm:$0xff]  }
 0x1e1   :  { %5008 = vmatprep.subr.bf16.mxu0 %v7653_v50  ;;  %5500 = vmatprep.subr.bf16.mxu1 %v7656_v51  ;;  %v7743_v50 = vld [vmem:[#allocation2 + $0xea4] ss:$16 sps:$4 sm:$0xff]   ;;  %v7746_v51 = vld [vmem:[#allocation2 + $0xeac] ss:$16 sps:$4 sm:$0xff]  }
 0x1e4   :  { %5009 = vmatpush1.bf16.msra.mxu0 %v7651_v52  ;;  %5501 = vmatpush1.bf16.msra.mxu1 %v7654_v53  ;;  %v7741_v52 = vld [vmem:[#allocation2 + $0xea0] ss:$16 sps:$4 sm:$0xff]   ;;  %v7744_v53 = vld [vmem:[#allocation2 + $0xea8] ss:$16 sps:$4 sm:$0xff]  }
 0x1e5   :  { %5010 = vmatprep.subr.bf16.mxu0 %v7659_v54  ;;  %5502 = vmatprep.subr.bf16.mxu1 %v7662_v55  ;;  %v7749_v54 = vld [vmem:[#allocation2 + $0xec4] ss:$16 sps:$4 sm:$0xff]   ;;  %v7752_v55 = vld [vmem:[#allocation2 + $0xecc] ss:$16 sps:$4 sm:$0xff]  }
 0x1e8   :  { %5011 = vmatpush1.bf16.msra.mxu0 %v7657_v56  ;;  %5503 = vmatpush1.bf16.msra.mxu1 %v7660_v57  ;;  %v7747_v56 = vld [vmem:[#allocation2 + $0xec0] ss:$16 sps:$4 sm:$0xff]   ;;  %v7750_v57 = vld [vmem:[#allocation2 + $0xec8] ss:$16 sps:$4 sm:$0xff]  }
 0x1e9   :  { %5012 = vmatprep.subr.bf16.mxu0 %v7665_v58  ;;  %5504 = vmatprep.subr.bf16.mxu1 %v7668_v59  ;;  %v7755_v58 = vld [vmem:[#allocation2 + $0xee4] ss:$16 sps:$4 sm:$0xff]   ;;  %v7758_v59 = vld [vmem:[#allocation2 + $0xeec] ss:$16 sps:$4 sm:$0xff]  }
 0x1ec   :  { %5013 = vmatpush1.bf16.msra.mxu0 %v7663_v60  ;;  %5505 = vmatpush1.bf16.msra.mxu1 %v7666_v61  ;;  %v7753_v60 = vld [vmem:[#allocation2 + $0xee0] ss:$16 sps:$4 sm:$0xff]   ;;  %v7756_v61 = vld [vmem:[#allocation2 + $0xee8] ss:$16 sps:$4 sm:$0xff]  }
 0x1ed   :  { %5014 = vmatprep.subr.bf16.mxu0 %v7671_v62  ;;  %5506 = vmatprep.subr.bf16.mxu1 %v7674_v63  ;;  %v7761_v62 = vld [vmem:[#allocation2 + $0xf04] ss:$16 sps:$4 sm:$0xff]   ;;  %v7764_v63 = vld [vmem:[#allocation2 + $0xf0c] ss:$16 sps:$4 sm:$0xff]  }
 0x1f0   :  { %5015 = vmatpush1.bf16.msra.mxu0 %v7669_v0  ;;  %5507 = vmatpush1.bf16.msra.mxu1 %v7672_v1  ;;  %v7759_v0 = vld [vmem:[#allocation2 + $0xf00] ss:$16 sps:$4 sm:$0xff]   ;;  %v7762_v1 = vld [vmem:[#allocation2 + $0xf08] ss:$16 sps:$4 sm:$0xff]  }
 0x1f1   :  { %5016 = vmatprep.subr.bf16.mxu0 %v7677_v2  ;;  %5508 = vmatprep.subr.bf16.mxu1 %v7680_v3  ;;  %v7767_v2 = vld [vmem:[#allocation2 + $0xf24] ss:$16 sps:$4 sm:$0xff]   ;;  %v7770_v3 = vld [vmem:[#allocation2 + $0xf2c] ss:$16 sps:$4 sm:$0xff]  }
 0x1f4   :  { %5017 = vmatpush1.bf16.msra.mxu0 %v7675_v4  ;;  %5509 = vmatpush1.bf16.msra.mxu1 %v7678_v5  ;;  %v7765_v4 = vld [vmem:[#allocation2 + $0xf20] ss:$16 sps:$4 sm:$0xff]   ;;  %v7768_v5 = vld [vmem:[#allocation2 + $0xf28] ss:$16 sps:$4 sm:$0xff]  }
 0x1f5   :  { %5018 = vmatprep.subr.bf16.mxu0 %v7683_v6  ;;  %5510 = vmatprep.subr.bf16.mxu1 %v7686_v7  ;;  %v7773_v6 = vld [vmem:[#allocation2 + $0xf44] ss:$16 sps:$4 sm:$0xff]   ;;  %v7776_v7 = vld [vmem:[#allocation2 + $0xf4c] ss:$16 sps:$4 sm:$0xff]  }
 0x1f8   :  { %5019 = vmatpush1.bf16.msra.mxu0 %v7681_v8  ;;  %5511 = vmatpush1.bf16.msra.mxu1 %v7684_v9  ;;  %v7771_v8 = vld [vmem:[#allocation2 + $0xf40] ss:$16 sps:$4 sm:$0xff]   ;;  %v7774_v9 = vld [vmem:[#allocation2 + $0xf48] ss:$16 sps:$4 sm:$0xff]  }
 0x1f9   :  { %5020 = vmatprep.subr.bf16.mxu0 %v7689_v10  ;;  %5512 = vmatprep.subr.bf16.mxu1 %v7692_v11  ;;  %v7779_v10 = vld [vmem:[#allocation2 + $0xf64] ss:$16 sps:$4 sm:$0xff]   ;;  %v7782_v11 = vld [vmem:[#allocation2 + $0xf6c] ss:$16 sps:$4 sm:$0xff]  }
 0x1fc   :  { %5021 = vmatpush1.bf16.msra.mxu0 %v7687_v12  ;;  %5513 = vmatpush1.bf16.msra.mxu1 %v7690_v13  ;;  %v7777_v12 = vld [vmem:[#allocation2 + $0xf60] ss:$16 sps:$4 sm:$0xff]   ;;  %v7780_v13 = vld [vmem:[#allocation2 + $0xf68] ss:$16 sps:$4 sm:$0xff]  }
 0x1fd   :  { %5022 = vmatprep.subr.bf16.mxu0 %v7695_v14  ;;  %5514 = vmatprep.subr.bf16.mxu1 %v7698_v15  ;;  %v7785_v14 = vld [vmem:[#allocation2 + $0xf84] ss:$16 sps:$4 sm:$0xff]   ;;  %v7788_v15 = vld [vmem:[#allocation2 + $0xf8c] ss:$16 sps:$4 sm:$0xff]  }
 0x200   :  { %5023 = vmatpush1.bf16.msra.mxu0 %v7693_v16  ;;  %5515 = vmatpush1.bf16.msra.mxu1 %v7696_v17  ;;  %v7783_v16 = vld [vmem:[#allocation2 + $0xf80] ss:$16 sps:$4 sm:$0xff]   ;;  %v7786_v17 = vld [vmem:[#allocation2 + $0xf88] ss:$16 sps:$4 sm:$0xff]  }
 0x201   :  { %5024 = vmatprep.subr.bf16.mxu0 %v7701_v18  ;;  %5516 = vmatprep.subr.bf16.mxu1 %v7704_v19  ;;  %v7791_v18 = vld [vmem:[#allocation2 + $0xfa4] ss:$16 sps:$4 sm:$0xff]   ;;  %v7794_v19 = vld [vmem:[#allocation2 + $0xfac] ss:$16 sps:$4 sm:$0xff]  }
 0x204   :  { %5025 = vmatpush1.bf16.msra.mxu0 %v7699_v20  ;;  %5517 = vmatpush1.bf16.msra.mxu1 %v7702_v21  ;;  %v7789_v20 = vld [vmem:[#allocation2 + $0xfa0] ss:$16 sps:$4 sm:$0xff]   ;;  %v7792_v21 = vld [vmem:[#allocation2 + $0xfa8] ss:$16 sps:$4 sm:$0xff]  }
 0x205   :  { %5026 = vmatprep.subr.bf16.mxu0 %v7707_v22  ;;  %5518 = vmatprep.subr.bf16.mxu1 %v7710_v23  ;;  %v7797_v22 = vld [vmem:[#allocation2 + $0xfc4] ss:$16 sps:$4 sm:$0xff]   ;;  %v7800_v23 = vld [vmem:[#allocation2 + $0xfcc] ss:$16 sps:$4 sm:$0xff]  }
 0x208   :  { %5027 = vmatpush1.bf16.msra.mxu0 %v7705_v24  ;;  %5519 = vmatpush1.bf16.msra.mxu1 %v7708_v25  ;;  %v7795_v24 = vld [vmem:[#allocation2 + $0xfc0] ss:$16 sps:$4 sm:$0xff]   ;;  %v7798_v25 = vld [vmem:[#allocation2 + $0xfc8] ss:$16 sps:$4 sm:$0xff]  }
 0x209   :  { %5037 = vmatprep.subr.bf16.mxu0 %v7713_v26  ;;  %5529 = vmatprep.subr.bf16.mxu1 %v7716_v28  ;;  %v7803_v26 = vld [vmem:[#allocation2 + $0xfe4] ss:$16 sps:$4 sm:$0xff]   ;;  %v7801_v28 = vld [vmem:[#allocation2 + $0xfe0] ss:$16 sps:$4 sm:$0xff]  }
 0x20b   :  { %5029 = vmatmul.mubr.bf16.vlgmr.msra.gmra.mrb[0].mxu0 %v108_v30  ;;  %5521 = vmatmul.mubr.bf16.vlgmr.msra.gmra.mrb[0].mxu1 %v108_v30  ;;  %v86_v30 = vld [vmem:[%s8485_s0 + $0x70] sm:$0xff] }
 0x20c   :  { %5038 = vmatpush1.bf16.msra.mxu0 %v7711_v31  ;;  %5530 = vmatpush1.bf16.msra.mxu1 %v7714_v32  ;;  %v7809_v31 = vld [vmem:[#allocation2 + $0x1004] ss:$16 sps:$4 sm:$0xff]   ;;  %v7812_v32 = vld [vmem:[#allocation2 + $0x100c] ss:$16 sps:$4 sm:$0xff]  }
 0x20d   :  { %5039 = vmatprep.subr.bf16.mxu0 %v7719_v33  ;;  %5531 = vmatprep.subr.bf16.mxu1 %v7722_v34  ;;  %v110_v33 = vpack.c.bf16 %v86_v30, %v86_v30  ;;  %v89_v34 = vld [vmem:[%s8485_s0 + $0x88] sm:$0xff]  ;;  %v7899_v30 = vld [vmem:[#allocation2 + $0x11e4] ss:$16 sps:$4 sm:$0xff]  }
 0x20e   :  { %5069 = vmatprep.mubr.bf16.mxu0 %v111_v35  ;;  %5561 = vmatprep.mubr.bf16.mxu1 %v111_v35  ;;  %v7807_v35 = vld [vmem:[#allocation2 + $0x1000] ss:$16 sps:$4 sm:$0xff]  }
 0x210   :  { %5040 = vmatpush1.bf16.msra.mxu0 %v7717_v36  ;;  %5532 = vmatpush1.bf16.msra.mxu1 %v7720_v37  ;;  %v7810_v36 = vld [vmem:[#allocation2 + $0x1008] ss:$16 sps:$4 sm:$0xff]   ;;  %v7815_v37 = vld [vmem:[#allocation2 + $0x1024] ss:$16 sps:$4 sm:$0xff]  }
 0x211   :  { %5041 = vmatprep.subr.bf16.mxu0 %v7725_v38  ;;  %5533 = vmatprep.subr.bf16.mxu1 %v7728_v39  ;;  %v7818_v38 = vld [vmem:[#allocation2 + $0x102c] ss:$16 sps:$4 sm:$0xff]   ;;  %v113_v39 = vpack.c.bf16 %v89_v34, %v89_v34  ;;  %v88_v34 = vld [vmem:[%s8485_s0 + $0x80] sm:$0xff] }
 0x214   :  { %5042 = vmatpush1.bf16.msra.mxu0 %v7723_v40  ;;  %5534 = vmatpush1.bf16.msra.mxu1 %v7726_v41  ;;  %v7813_v40 = vld [vmem:[#allocation2 + $0x1020] ss:$16 sps:$4 sm:$0xff]   ;;  %v7816_v41 = vld [vmem:[#allocation2 + $0x1028] ss:$16 sps:$4 sm:$0xff]  }
 0x215   :  { %5043 = vmatprep.subr.bf16.mxu0 %v7731_v42  ;;  %5535 = vmatprep.subr.bf16.mxu1 %v7734_v43  ;;  %v7821_v42 = vld [vmem:[#allocation2 + $0x1044] ss:$16 sps:$4 sm:$0xff]   ;;  %v7824_v43 = vld [vmem:[#allocation2 + $0x104c] ss:$16 sps:$4 sm:$0xff]  }
 0x218   :  { %5044 = vmatpush1.bf16.msra.mxu0 %v7729_v44  ;;  %5536 = vmatpush1.bf16.msra.mxu1 %v7732_v45  ;;  %v7819_v44 = vld [vmem:[#allocation2 + $0x1040] ss:$16 sps:$4 sm:$0xff]   ;;  %v7822_v45 = vld [vmem:[#allocation2 + $0x1048] ss:$16 sps:$4 sm:$0xff]  }
 0x219   :  { %5045 = vmatprep.subr.bf16.mxu0 %v7737_v46  ;;  %5537 = vmatprep.subr.bf16.mxu1 %v7740_v47  ;;  %v7827_v46 = vld [vmem:[#allocation2 + $0x1064] ss:$16 sps:$4 sm:$0xff]   ;;  %v7830_v47 = vld [vmem:[#allocation2 + $0x106c] ss:$16 sps:$4 sm:$0xff]  }
 0x21c   :  { %5046 = vmatpush1.bf16.msra.mxu0 %v7735_v48  ;;  %5538 = vmatpush1.bf16.msra.mxu1 %v7738_v49  ;;  %v7825_v48 = vld [vmem:[#allocation2 + $0x1060] ss:$16 sps:$4 sm:$0xff]   ;;  %v7828_v49 = vld [vmem:[#allocation2 + $0x1068] ss:$16 sps:$4 sm:$0xff]  }
 0x21d   :  { %5047 = vmatprep.subr.bf16.mxu0 %v7743_v50  ;;  %5539 = vmatprep.subr.bf16.mxu1 %v7746_v51  ;;  %v7833_v50 = vld [vmem:[#allocation2 + $0x1084] ss:$16 sps:$4 sm:$0xff]   ;;  %v7836_v51 = vld [vmem:[#allocation2 + $0x108c] ss:$16 sps:$4 sm:$0xff]  }
 0x220   :  { %5048 = vmatpush1.bf16.msra.mxu0 %v7741_v52  ;;  %5540 = vmatpush1.bf16.msra.mxu1 %v7744_v53  ;;  %v7831_v52 = vld [vmem:[#allocation2 + $0x1080] ss:$16 sps:$4 sm:$0xff]   ;;  %v7834_v53 = vld [vmem:[#allocation2 + $0x1088] ss:$16 sps:$4 sm:$0xff]  }
 0x221   :  { %5049 = vmatprep.subr.bf16.mxu0 %v7749_v54  ;;  %5541 = vmatprep.subr.bf16.mxu1 %v7752_v55  ;;  %v7839_v54 = vld [vmem:[#allocation2 + $0x10a4] ss:$16 sps:$4 sm:$0xff]   ;;  %v7842_v55 = vld [vmem:[#allocation2 + $0x10ac] ss:$16 sps:$4 sm:$0xff]  }
 0x224   :  { %5050 = vmatpush1.bf16.msra.mxu0 %v7747_v56  ;;  %5542 = vmatpush1.bf16.msra.mxu1 %v7750_v57  ;;  %v7837_v56 = vld [vmem:[#allocation2 + $0x10a0] ss:$16 sps:$4 sm:$0xff]   ;;  %v7840_v57 = vld [vmem:[#allocation2 + $0x10a8] ss:$16 sps:$4 sm:$0xff]  }
 0x225   :  { %5051 = vmatprep.subr.bf16.mxu0 %v7755_v58  ;;  %5543 = vmatprep.subr.bf16.mxu1 %v7758_v59  ;;  %v7845_v58 = vld [vmem:[#allocation2 + $0x10c4] ss:$16 sps:$4 sm:$0xff]   ;;  %v7848_v59 = vld [vmem:[#allocation2 + $0x10cc] ss:$16 sps:$4 sm:$0xff]  }
 0x228   :  { %5052 = vmatpush1.bf16.msra.mxu0 %v7753_v60  ;;  %5544 = vmatpush1.bf16.msra.mxu1 %v7756_v61  ;;  %v7843_v60 = vld [vmem:[#allocation2 + $0x10c0] ss:$16 sps:$4 sm:$0xff]   ;;  %v7846_v61 = vld [vmem:[#allocation2 + $0x10c8] ss:$16 sps:$4 sm:$0xff]  }
 0x229   :  { %5053 = vmatprep.subr.bf16.mxu0 %v7761_v62  ;;  %5545 = vmatprep.subr.bf16.mxu1 %v7764_v63  ;;  %v7851_v62 = vld [vmem:[#allocation2 + $0x10e4] ss:$16 sps:$4 sm:$0xff]   ;;  %v7854_v63 = vld [vmem:[#allocation2 + $0x10ec] ss:$16 sps:$4 sm:$0xff]  }
 0x22c   :  { %5054 = vmatpush1.bf16.msra.mxu0 %v7759_v0  ;;  %5546 = vmatpush1.bf16.msra.mxu1 %v7762_v1  ;;  %v7849_v0 = vld [vmem:[#allocation2 + $0x10e0] ss:$16 sps:$4 sm:$0xff]   ;;  %v7852_v1 = vld [vmem:[#allocation2 + $0x10e8] ss:$16 sps:$4 sm:$0xff]  }
 0x22d   :  { %5055 = vmatprep.subr.bf16.mxu0 %v7767_v2  ;;  %5547 = vmatprep.subr.bf16.mxu1 %v7770_v3  ;;  %v7857_v2 = vld [vmem:[#allocation2 + $0x1104] ss:$16 sps:$4 sm:$0xff]   ;;  %v7860_v3 = vld [vmem:[#allocation2 + $0x110c] ss:$16 sps:$4 sm:$0xff]  }
 0x230   :  { %5056 = vmatpush1.bf16.msra.mxu0 %v7765_v4  ;;  %5548 = vmatpush1.bf16.msra.mxu1 %v7768_v5  ;;  %v7855_v4 = vld [vmem:[#allocation2 + $0x1100] ss:$16 sps:$4 sm:$0xff]   ;;  %v7858_v5 = vld [vmem:[#allocation2 + $0x1108] ss:$16 sps:$4 sm:$0xff]  }
 0x231   :  { %5057 = vmatprep.subr.bf16.mxu0 %v7773_v6  ;;  %5549 = vmatprep.subr.bf16.mxu1 %v7776_v7  ;;  %v7863_v6 = vld [vmem:[#allocation2 + $0x1124] ss:$16 sps:$4 sm:$0xff]   ;;  %v7866_v7 = vld [vmem:[#allocation2 + $0x112c] ss:$16 sps:$4 sm:$0xff]  }
 0x234   :  { %5058 = vmatpush1.bf16.msra.mxu0 %v7771_v8  ;;  %5550 = vmatpush1.bf16.msra.mxu1 %v7774_v9  ;;  %v7861_v8 = vld [vmem:[#allocation2 + $0x1120] ss:$16 sps:$4 sm:$0xff]   ;;  %v7864_v9 = vld [vmem:[#allocation2 + $0x1128] ss:$16 sps:$4 sm:$0xff]  }
 0x235   :  { %5059 = vmatprep.subr.bf16.mxu0 %v7779_v10  ;;  %5551 = vmatprep.subr.bf16.mxu1 %v7782_v11  ;;  %v7869_v10 = vld [vmem:[#allocation2 + $0x1144] ss:$16 sps:$4 sm:$0xff]   ;;  %v7872_v11 = vld [vmem:[#allocation2 + $0x114c] ss:$16 sps:$4 sm:$0xff]  }
 0x238   :  { %5060 = vmatpush1.bf16.msra.mxu0 %v7777_v12  ;;  %5552 = vmatpush1.bf16.msra.mxu1 %v7780_v13  ;;  %v7867_v12 = vld [vmem:[#allocation2 + $0x1140] ss:$16 sps:$4 sm:$0xff]   ;;  %v7870_v13 = vld [vmem:[#allocation2 + $0x1148] ss:$16 sps:$4 sm:$0xff]  }
 0x239   :  { %5061 = vmatprep.subr.bf16.mxu0 %v7785_v14  ;;  %5553 = vmatprep.subr.bf16.mxu1 %v7788_v15  ;;  %v7875_v14 = vld [vmem:[#allocation2 + $0x1164] ss:$16 sps:$4 sm:$0xff]   ;;  %v7878_v15 = vld [vmem:[#allocation2 + $0x116c] ss:$16 sps:$4 sm:$0xff]  }
 0x23c   :  { %5062 = vmatpush1.bf16.msra.mxu0 %v7783_v16  ;;  %5554 = vmatpush1.bf16.msra.mxu1 %v7786_v17  ;;  %v7873_v16 = vld [vmem:[#allocation2 + $0x1160] ss:$16 sps:$4 sm:$0xff]   ;;  %v7876_v17 = vld [vmem:[#allocation2 + $0x1168] ss:$16 sps:$4 sm:$0xff]  }
 0x23d   :  { %5063 = vmatprep.subr.bf16.mxu0 %v7791_v18  ;;  %5555 = vmatprep.subr.bf16.mxu1 %v7794_v19  ;;  %v7881_v18 = vld [vmem:[#allocation2 + $0x1184] ss:$16 sps:$4 sm:$0xff]   ;;  %v7884_v19 = vld [vmem:[#allocation2 + $0x118c] ss:$16 sps:$4 sm:$0xff]  }
 0x240   :  { %5064 = vmatpush1.bf16.msra.mxu0 %v7789_v20  ;;  %5556 = vmatpush1.bf16.msra.mxu1 %v7792_v21  ;;  %v7879_v20 = vld [vmem:[#allocation2 + $0x1180] ss:$16 sps:$4 sm:$0xff]   ;;  %v7882_v21 = vld [vmem:[#allocation2 + $0x1188] ss:$16 sps:$4 sm:$0xff]  }
 0x241   :  { %5065 = vmatprep.subr.bf16.mxu0 %v7797_v22  ;;  %5557 = vmatprep.subr.bf16.mxu1 %v7800_v23  ;;  %v7887_v22 = vld [vmem:[#allocation2 + $0x11a4] ss:$16 sps:$4 sm:$0xff]   ;;  %v7890_v23 = vld [vmem:[#allocation2 + $0x11ac] ss:$16 sps:$4 sm:$0xff]  }
 0x244   :  { %5066 = vmatpush1.bf16.msra.mxu0 %v7795_v24  ;;  %5558 = vmatpush1.bf16.msra.mxu1 %v7798_v25  ;;  %v7885_v24 = vld [vmem:[#allocation2 + $0x11a0] ss:$16 sps:$4 sm:$0xff]   ;;  %v7888_v25 = vld [vmem:[#allocation2 + $0x11a8] ss:$16 sps:$4 sm:$0xff]  }
 0x245   :  { %5067 = vmatprep.subr.bf16.mxu0 %v7803_v26  ;;  %5559 = vmatprep.subr.bf16.mxu1 %v7806_v27  ;;  %v7893_v26 = vld [vmem:[#allocation2 + $0x11c4] ss:$16 sps:$4 sm:$0xff]   ;;  %v7896_v27 = vld [vmem:[#allocation2 + $0x11cc] ss:$16 sps:$4 sm:$0xff]  }
 0x248   :  { %5068 = vmatpush1.bf16.msra.mxu0 %v7801_v28  ;;  %5560 = vmatpush1.bf16.msra.mxu1 %v7804_v29  ;;  %v7891_v28 = vld [vmem:[#allocation2 + $0x11c0] ss:$16 sps:$4 sm:$0xff]   ;;  %v7894_v29 = vld [vmem:[#allocation2 + $0x11c8] ss:$16 sps:$4 sm:$0xff]  }
 0x249   :  { %5078 = vmatprep.subr.bf16.mxu0 %v7809_v31  ;;  %5570 = vmatprep.subr.bf16.mxu1 %v7812_v32  ;;  %v7902_v31 = vld [vmem:[#allocation2 + $0x11ec] ss:$16 sps:$4 sm:$0xff]   ;;  %v7897_v32 = vld [vmem:[#allocation2 + $0x11e0] ss:$16 sps:$4 sm:$0xff]  }
 0x24b   :  { %5070 = vmatmul.mubr.bf16.vlgmr.msra.gmra.mrb[0].mxu0 %v110_v33  ;;  %5562 = vmatmul.mubr.bf16.vlgmr.msra.gmra.mrb[0].mxu1 %v110_v33  ;;  %v7900_v33 = vld [vmem:[#allocation2 + $0x11e8] ss:$16 sps:$4 sm:$0xff]  }
 0x24c   :  { %5079 = vmatpush1.bf16.msra.mxu0 %v7807_v35  ;;  %5571 = vmatpush1.bf16.msra.mxu1 %v7810_v36  ;;  %v7905_v35 = vld [vmem:[#allocation2 + $0x1204] ss:$16 sps:$4 sm:$0xff]   ;;  %v7908_v36 = vld [vmem:[#allocation2 + $0x120c] ss:$16 sps:$4 sm:$0xff]  }
 0x24d   :  { %5080 = vmatprep.subr.bf16.mxu0 %v7815_v37  ;;  %5572 = vmatprep.subr.bf16.mxu1 %v7818_v38  ;;  %v112_v37 = vpack.c.bf16 %v88_v34, %v88_v34  ;;  %v91_v38 = vld [vmem:[%s8485_s0 + $0x98] sm:$0xff]  ;;  %v7995_v34 = vld [vmem:[#allocation2 + $0x13e4] ss:$16 sps:$4 sm:$0xff]  }
 0x24e   :  { %5110 = vmatprep.mubr.bf16.mxu0 %v113_v39  ;;  %5602 = vmatprep.mubr.bf16.mxu1 %v113_v39  ;;  %v7903_v39 = vld [vmem:[#allocation2 + $0x1200] ss:$16 sps:$4 sm:$0xff]  }
 0x250   :  { %5081 = vmatpush1.bf16.msra.mxu0 %v7813_v40  ;;  %5573 = vmatpush1.bf16.msra.mxu1 %v7816_v41  ;;  %v7906_v40 = vld [vmem:[#allocation2 + $0x1208] ss:$16 sps:$4 sm:$0xff]   ;;  %v7911_v41 = vld [vmem:[#allocation2 + $0x1224] ss:$16 sps:$4 sm:$0xff]  }
 0x251   :  { %5082 = vmatprep.subr.bf16.mxu0 %v7821_v42  ;;  %5574 = vmatprep.subr.bf16.mxu1 %v7824_v43  ;;  %v7914_v42 = vld [vmem:[#allocation2 + $0x122c] ss:$16 sps:$4 sm:$0xff]   ;;  %v115_v43 = vpack.c.bf16 %v91_v38, %v91_v38  ;;  %v90_v38 = vld [vmem:[%s8485_s0 + $0x90] sm:$0xff] }
 0x254   :  { %5083 = vmatpush1.bf16.msra.mxu0 %v7819_v44  ;;  %5575 = vmatpush1.bf16.msra.mxu1 %v7822_v45  ;;  %v7909_v44 = vld [vmem:[#allocation2 + $0x1220] ss:$16 sps:$4 sm:$0xff]   ;;  %v7912_v45 = vld [vmem:[#allocation2 + $0x1228] ss:$16 sps:$4 sm:$0xff]  }
 0x255   :  { %5084 = vmatprep.subr.bf16.mxu0 %v7827_v46  ;;  %5576 = vmatprep.subr.bf16.mxu1 %v7830_v47  ;;  %v7917_v46 = vld [vmem:[#allocation2 + $0x1244] ss:$16 sps:$4 sm:$0xff]   ;;  %v7920_v47 = vld [vmem:[#allocation2 + $0x124c] ss:$16 sps:$4 sm:$0xff]  }
 0x258   :  { %5085 = vmatpush1.bf16.msra.mxu0 %v7825_v48  ;;  %5577 = vmatpush1.bf16.msra.mxu1 %v7828_v49  ;;  %v7915_v48 = vld [vmem:[#allocation2 + $0x1240] ss:$16 sps:$4 sm:$0xff]   ;;  %v7918_v49 = vld [vmem:[#allocation2 + $0x1248] ss:$16 sps:$4 sm:$0xff]  }
 0x259   :  { %5086 = vmatprep.subr.bf16.mxu0 %v7833_v50  ;;  %5578 = vmatprep.subr.bf16.mxu1 %v7836_v51  ;;  %v7923_v50 = vld [vmem:[#allocation2 + $0x1264] ss:$16 sps:$4 sm:$0xff]   ;;  %v7926_v51 = vld [vmem:[#allocation2 + $0x126c] ss:$16 sps:$4 sm:$0xff]  }
 0x25c   :  { %5087 = vmatpush1.bf16.msra.mxu0 %v7831_v52  ;;  %5579 = vmatpush1.bf16.msra.mxu1 %v7834_v53  ;;  %v7921_v52 = vld [vmem:[#allocation2 + $0x1260] ss:$16 sps:$4 sm:$0xff]   ;;  %v7924_v53 = vld [vmem:[#allocation2 + $0x1268] ss:$16 sps:$4 sm:$0xff]  }
 0x25d   :  { %5088 = vmatprep.subr.bf16.mxu0 %v7839_v54  ;;  %5580 = vmatprep.subr.bf16.mxu1 %v7842_v55  ;;  %v7929_v54 = vld [vmem:[#allocation2 + $0x1284] ss:$16 sps:$4 sm:$0xff]   ;;  %v7932_v55 = vld [vmem:[#allocation2 + $0x128c] ss:$16 sps:$4 sm:$0xff]  }
 0x260   :  { %5089 = vmatpush1.bf16.msra.mxu0 %v7837_v56  ;;  %5581 = vmatpush1.bf16.msra.mxu1 %v7840_v57  ;;  %v7927_v56 = vld [vmem:[#allocation2 + $0x1280] ss:$16 sps:$4 sm:$0xff]   ;;  %v7930_v57 = vld [vmem:[#allocation2 + $0x1288] ss:$16 sps:$4 sm:$0xff]  }
 0x261   :  { %5090 = vmatprep.subr.bf16.mxu0 %v7845_v58  ;;  %5582 = vmatprep.subr.bf16.mxu1 %v7848_v59  ;;  %v7935_v58 = vld [vmem:[#allocation2 + $0x12a4] ss:$16 sps:$4 sm:$0xff]   ;;  %v7938_v59 = vld [vmem:[#allocation2 + $0x12ac] ss:$16 sps:$4 sm:$0xff]  }
 0x264   :  { %5091 = vmatpush1.bf16.msra.mxu0 %v7843_v60  ;;  %5583 = vmatpush1.bf16.msra.mxu1 %v7846_v61  ;;  %v7933_v60 = vld [vmem:[#allocation2 + $0x12a0] ss:$16 sps:$4 sm:$0xff]   ;;  %v7936_v61 = vld [vmem:[#allocation2 + $0x12a8] ss:$16 sps:$4 sm:$0xff]  }
 0x265   :  { %5092 = vmatprep.subr.bf16.mxu0 %v7851_v62  ;;  %5584 = vmatprep.subr.bf16.mxu1 %v7854_v63  ;;  %v7941_v62 = vld [vmem:[#allocation2 + $0x12c4] ss:$16 sps:$4 sm:$0xff]   ;;  %v7944_v63 = vld [vmem:[#allocation2 + $0x12cc] ss:$16 sps:$4 sm:$0xff]  }
 0x268   :  { %5093 = vmatpush1.bf16.msra.mxu0 %v7849_v0  ;;  %5585 = vmatpush1.bf16.msra.mxu1 %v7852_v1  ;;  %v7939_v0 = vld [vmem:[#allocation2 + $0x12c0] ss:$16 sps:$4 sm:$0xff]   ;;  %v7942_v1 = vld [vmem:[#allocation2 + $0x12c8] ss:$16 sps:$4 sm:$0xff]  }
 0x269   :  { %5094 = vmatprep.subr.bf16.mxu0 %v7857_v2  ;;  %5586 = vmatprep.subr.bf16.mxu1 %v7860_v3  ;;  %v7947_v2 = vld [vmem:[#allocation2 + $0x12e4] ss:$16 sps:$4 sm:$0xff]   ;;  %v7950_v3 = vld [vmem:[#allocation2 + $0x12ec] ss:$16 sps:$4 sm:$0xff]  }
 0x26c   :  { %5095 = vmatpush1.bf16.msra.mxu0 %v7855_v4  ;;  %5587 = vmatpush1.bf16.msra.mxu1 %v7858_v5  ;;  %v7945_v4 = vld [vmem:[#allocation2 + $0x12e0] ss:$16 sps:$4 sm:$0xff]   ;;  %v7948_v5 = vld [vmem:[#allocation2 + $0x12e8] ss:$16 sps:$4 sm:$0xff]  }
 0x26d   :  { %5096 = vmatprep.subr.bf16.mxu0 %v7863_v6  ;;  %5588 = vmatprep.subr.bf16.mxu1 %v7866_v7  ;;  %v7953_v6 = vld [vmem:[#allocation2 + $0x1304] ss:$16 sps:$4 sm:$0xff]   ;;  %v7956_v7 = vld [vmem:[#allocation2 + $0x130c] ss:$16 sps:$4 sm:$0xff]  }
 0x270   :  { %5097 = vmatpush1.bf16.msra.mxu0 %v7861_v8  ;;  %5589 = vmatpush1.bf16.msra.mxu1 %v7864_v9  ;;  %v7951_v8 = vld [vmem:[#allocation2 + $0x1300] ss:$16 sps:$4 sm:$0xff]   ;;  %v7954_v9 = vld [vmem:[#allocation2 + $0x1308] ss:$16 sps:$4 sm:$0xff]  }
 0x271   :  { %5098 = vmatprep.subr.bf16.mxu0 %v7869_v10  ;;  %5590 = vmatprep.subr.bf16.mxu1 %v7872_v11  ;;  %v7959_v10 = vld [vmem:[#allocation2 + $0x1324] ss:$16 sps:$4 sm:$0xff]   ;;  %v7962_v11 = vld [vmem:[#allocation2 + $0x132c] ss:$16 sps:$4 sm:$0xff]  }
 0x274   :  { %5099 = vmatpush1.bf16.msra.mxu0 %v7867_v12  ;;  %5591 = vmatpush1.bf16.msra.mxu1 %v7870_v13  ;;  %v7957_v12 = vld [vmem:[#allocation2 + $0x1320] ss:$16 sps:$4 sm:$0xff]   ;;  %v7960_v13 = vld [vmem:[#allocation2 + $0x1328] ss:$16 sps:$4 sm:$0xff]  }
 0x275   :  { %5100 = vmatprep.subr.bf16.mxu0 %v7875_v14  ;;  %5592 = vmatprep.subr.bf16.mxu1 %v7878_v15  ;;  %v7965_v14 = vld [vmem:[#allocation2 + $0x1344] ss:$16 sps:$4 sm:$0xff]   ;;  %v7968_v15 = vld [vmem:[#allocation2 + $0x134c] ss:$16 sps:$4 sm:$0xff]  }
 0x278   :  { %5101 = vmatpush1.bf16.msra.mxu0 %v7873_v16  ;;  %5593 = vmatpush1.bf16.msra.mxu1 %v7876_v17  ;;  %v7963_v16 = vld [vmem:[#allocation2 + $0x1340] ss:$16 sps:$4 sm:$0xff]   ;;  %v7966_v17 = vld [vmem:[#allocation2 + $0x1348] ss:$16 sps:$4 sm:$0xff]  }
 0x279   :  { %5102 = vmatprep.subr.bf16.mxu0 %v7881_v18  ;;  %5594 = vmatprep.subr.bf16.mxu1 %v7884_v19  ;;  %v7971_v18 = vld [vmem:[#allocation2 + $0x1364] ss:$16 sps:$4 sm:$0xff]   ;;  %v7974_v19 = vld [vmem:[#allocation2 + $0x136c] ss:$16 sps:$4 sm:$0xff]  }
 0x27c   :  { %5103 = vmatpush1.bf16.msra.mxu0 %v7879_v20  ;;  %5595 = vmatpush1.bf16.msra.mxu1 %v7882_v21  ;;  %v7969_v20 = vld [vmem:[#allocation2 + $0x1360] ss:$16 sps:$4 sm:$0xff]   ;;  %v7972_v21 = vld [vmem:[#allocation2 + $0x1368] ss:$16 sps:$4 sm:$0xff]  }
 0x27d   :  { %5104 = vmatprep.subr.bf16.mxu0 %v7887_v22  ;;  %5596 = vmatprep.subr.bf16.mxu1 %v7890_v23  ;;  %v7977_v22 = vld [vmem:[#allocation2 + $0x1384] ss:$16 sps:$4 sm:$0xff]   ;;  %v7980_v23 = vld [vmem:[#allocation2 + $0x138c] ss:$16 sps:$4 sm:$0xff]  }
 0x280   :  { %5105 = vmatpush1.bf16.msra.mxu0 %v7885_v24  ;;  %5597 = vmatpush1.bf16.msra.mxu1 %v7888_v25  ;;  %v7975_v24 = vld [vmem:[#allocation2 + $0x1380] ss:$16 sps:$4 sm:$0xff]   ;;  %v7978_v25 = vld [vmem:[#allocation2 + $0x1388] ss:$16 sps:$4 sm:$0xff]  }
 0x281   :  { %5106 = vmatprep.subr.bf16.mxu0 %v7893_v26  ;;  %5598 = vmatprep.subr.bf16.mxu1 %v7896_v27  ;;  %v7983_v26 = vld [vmem:[#allocation2 + $0x13a4] ss:$16 sps:$4 sm:$0xff]   ;;  %v7986_v27 = vld [vmem:[#allocation2 + $0x13ac] ss:$16 sps:$4 sm:$0xff]  }
 0x284   :  { %5107 = vmatpush1.bf16.msra.mxu0 %v7891_v28  ;;  %5599 = vmatpush1.bf16.msra.mxu1 %v7894_v29  ;;  %v7981_v28 = vld [vmem:[#allocation2 + $0x13a0] ss:$16 sps:$4 sm:$0xff]   ;;  %v7984_v29 = vld [vmem:[#allocation2 + $0x13a8] ss:$16 sps:$4 sm:$0xff]  }
 0x285   :  { %5108 = vmatprep.subr.bf16.mxu0 %v7899_v30  ;;  %5600 = vmatprep.subr.bf16.mxu1 %v7902_v31  ;;  %v7989_v30 = vld [vmem:[#allocation2 + $0x13c4] ss:$16 sps:$4 sm:$0xff]   ;;  %v7992_v31 = vld [vmem:[#allocation2 + $0x13cc] ss:$16 sps:$4 sm:$0xff]  }
 0x288   :  { %5109 = vmatpush1.bf16.msra.mxu0 %v7897_v32  ;;  %5601 = vmatpush1.bf16.msra.mxu1 %v7900_v33  ;;  %v7987_v32 = vld [vmem:[#allocation2 + $0x13c0] ss:$16 sps:$4 sm:$0xff]   ;;  %v7990_v33 = vld [vmem:[#allocation2 + $0x13c8] ss:$16 sps:$4 sm:$0xff]  }
 0x289   :  { %5119 = vmatprep.subr.bf16.mxu0 %v7905_v35  ;;  %5611 = vmatprep.subr.bf16.mxu1 %v7908_v36  ;;  %v7998_v35 = vld [vmem:[#allocation2 + $0x13ec] ss:$16 sps:$4 sm:$0xff]   ;;  %v7993_v36 = vld [vmem:[#allocation2 + $0x13e0] ss:$16 sps:$4 sm:$0xff]  }
 0x28b   :  { %5111 = vmatmul.mubr.bf16.vlgmr.msra.gmra.mrb[0].mxu0 %v112_v37  ;;  %5603 = vmatmul.mubr.bf16.vlgmr.msra.gmra.mrb[0].mxu1 %v112_v37  ;;  %v7996_v37 = vld [vmem:[#allocation2 + $0x13e8] ss:$16 sps:$4 sm:$0xff]  }
 0x28c   :  { %5120 = vmatpush1.bf16.msra.mxu0 %v7903_v39  ;;  %5612 = vmatpush1.bf16.msra.mxu1 %v7906_v40  ;;  %v8001_v39 = vld [vmem:[#allocation2 + $0x1404] ss:$16 sps:$4 sm:$0xff]   ;;  %v8004_v40 = vld [vmem:[#allocation2 + $0x140c] ss:$16 sps:$4 sm:$0xff]  }
 0x28d   :  { %5121 = vmatprep.subr.bf16.mxu0 %v7911_v41  ;;  %5613 = vmatprep.subr.bf16.mxu1 %v7914_v42  ;;  %v114_v41 = vpack.c.bf16 %v90_v38, %v90_v38  ;;  %v93_v42 = vld [vmem:[%s8485_s0 + $0xa8] sm:$0xff]  ;;  %v8091_v38 = vld [vmem:[#allocation2 + $0x15e4] ss:$16 sps:$4 sm:$0xff]  }
 0x28e   :  { %5151 = vmatprep.mubr.bf16.mxu0 %v115_v43  ;;  %5643 = vmatprep.mubr.bf16.mxu1 %v115_v43  ;;  %v7999_v43 = vld [vmem:[#allocation2 + $0x1400] ss:$16 sps:$4 sm:$0xff]  }
 0x290   :  { %5122 = vmatpush1.bf16.msra.mxu0 %v7909_v44  ;;  %5614 = vmatpush1.bf16.msra.mxu1 %v7912_v45  ;;  %v8002_v44 = vld [vmem:[#allocation2 + $0x1408] ss:$16 sps:$4 sm:$0xff]   ;;  %v8007_v45 = vld [vmem:[#allocation2 + $0x1424] ss:$16 sps:$4 sm:$0xff]  }
 0x291   :  { %5123 = vmatprep.subr.bf16.mxu0 %v7917_v46  ;;  %5615 = vmatprep.subr.bf16.mxu1 %v7920_v47  ;;  %v8010_v46 = vld [vmem:[#allocation2 + $0x142c] ss:$16 sps:$4 sm:$0xff]   ;;  %v117_v47 = vpack.c.bf16 %v93_v42, %v93_v42  ;;  %v92_v42 = vld [vmem:[%s8485_s0 + $0xa0] sm:$0xff] }
 0x294   :  { %5124 = vmatpush1.bf16.msra.mxu0 %v7915_v48  ;;  %5616 = vmatpush1.bf16.msra.mxu1 %v7918_v49  ;;  %v8005_v48 = vld [vmem:[#allocation2 + $0x1420] ss:$16 sps:$4 sm:$0xff]   ;;  %v8008_v49 = vld [vmem:[#allocation2 + $0x1428] ss:$16 sps:$4 sm:$0xff]  }
 0x295   :  { %5125 = vmatprep.subr.bf16.mxu0 %v7923_v50  ;;  %5617 = vmatprep.subr.bf16.mxu1 %v7926_v51  ;;  %v8013_v50 = vld [vmem:[#allocation2 + $0x1444] ss:$16 sps:$4 sm:$0xff]   ;;  %v8016_v51 = vld [vmem:[#allocation2 + $0x144c] ss:$16 sps:$4 sm:$0xff]  }
 0x298   :  { %5126 = vmatpush1.bf16.msra.mxu0 %v7921_v52  ;;  %5618 = vmatpush1.bf16.msra.mxu1 %v7924_v53  ;;  %v8011_v52 = vld [vmem:[#allocation2 + $0x1440] ss:$16 sps:$4 sm:$0xff]   ;;  %v8014_v53 = vld [vmem:[#allocation2 + $0x1448] ss:$16 sps:$4 sm:$0xff]  }
 0x299   :  { %5127 = vmatprep.subr.bf16.mxu0 %v7929_v54  ;;  %5619 = vmatprep.subr.bf16.mxu1 %v7932_v55  ;;  %v8019_v54 = vld [vmem:[#allocation2 + $0x1464] ss:$16 sps:$4 sm:$0xff]   ;;  %v8022_v55 = vld [vmem:[#allocation2 + $0x146c] ss:$16 sps:$4 sm:$0xff]  }
 0x29c   :  { %5128 = vmatpush1.bf16.msra.mxu0 %v7927_v56  ;;  %5620 = vmatpush1.bf16.msra.mxu1 %v7930_v57  ;;  %v8017_v56 = vld [vmem:[#allocation2 + $0x1460] ss:$16 sps:$4 sm:$0xff]   ;;  %v8020_v57 = vld [vmem:[#allocation2 + $0x1468] ss:$16 sps:$4 sm:$0xff]  }
 0x29d   :  { %5129 = vmatprep.subr.bf16.mxu0 %v7935_v58  ;;  %5621 = vmatprep.subr.bf16.mxu1 %v7938_v59  ;;  %v8025_v58 = vld [vmem:[#allocation2 + $0x1484] ss:$16 sps:$4 sm:$0xff]   ;;  %v8028_v59 = vld [vmem:[#allocation2 + $0x148c] ss:$16 sps:$4 sm:$0xff]  }
 0x2a0   :  { %5130 = vmatpush1.bf16.msra.mxu0 %v7933_v60  ;;  %5622 = vmatpush1.bf16.msra.mxu1 %v7936_v61  ;;  %v8023_v60 = vld [vmem:[#allocation2 + $0x1480] ss:$16 sps:$4 sm:$0xff]   ;;  %v8026_v61 = vld [vmem:[#allocation2 + $0x1488] ss:$16 sps:$4 sm:$0xff]  }
 0x2a1   :  { %5131 = vmatprep.subr.bf16.mxu0 %v7941_v62  ;;  %5623 = vmatprep.subr.bf16.mxu1 %v7944_v63  ;;  %v8031_v62 = vld [vmem:[#allocation2 + $0x14a4] ss:$16 sps:$4 sm:$0xff]   ;;  %v8034_v63 = vld [vmem:[#allocation2 + $0x14ac] ss:$16 sps:$4 sm:$0xff]  }
 0x2a4   :  { %5132 = vmatpush1.bf16.msra.mxu0 %v7939_v0  ;;  %5624 = vmatpush1.bf16.msra.mxu1 %v7942_v1  ;;  %v8029_v0 = vld [vmem:[#allocation2 + $0x14a0] ss:$16 sps:$4 sm:$0xff]   ;;  %v8032_v1 = vld [vmem:[#allocation2 + $0x14a8] ss:$16 sps:$4 sm:$0xff]  }
 0x2a5   :  { %5133 = vmatprep.subr.bf16.mxu0 %v7947_v2  ;;  %5625 = vmatprep.subr.bf16.mxu1 %v7950_v3  ;;  %v8037_v2 = vld [vmem:[#allocation2 + $0x14c4] ss:$16 sps:$4 sm:$0xff]   ;;  %v8040_v3 = vld [vmem:[#allocation2 + $0x14cc] ss:$16 sps:$4 sm:$0xff]  }
 0x2a8   :  { %5134 = vmatpush1.bf16.msra.mxu0 %v7945_v4  ;;  %5626 = vmatpush1.bf16.msra.mxu1 %v7948_v5  ;;  %v8035_v4 = vld [vmem:[#allocation2 + $0x14c0] ss:$16 sps:$4 sm:$0xff]   ;;  %v8038_v5 = vld [vmem:[#allocation2 + $0x14c8] ss:$16 sps:$4 sm:$0xff]  }
 0x2a9   :  { %5135 = vmatprep.subr.bf16.mxu0 %v7953_v6  ;;  %5627 = vmatprep.subr.bf16.mxu1 %v7956_v7  ;;  %v8043_v6 = vld [vmem:[#allocation2 + $0x14e4] ss:$16 sps:$4 sm:$0xff]   ;;  %v8046_v7 = vld [vmem:[#allocation2 + $0x14ec] ss:$16 sps:$4 sm:$0xff]  }
 0x2ac   :  { %5136 = vmatpush1.bf16.msra.mxu0 %v7951_v8  ;;  %5628 = vmatpush1.bf16.msra.mxu1 %v7954_v9  ;;  %v8041_v8 = vld [vmem:[#allocation2 + $0x14e0] ss:$16 sps:$4 sm:$0xff]   ;;  %v8044_v9 = vld [vmem:[#allocation2 + $0x14e8] ss:$16 sps:$4 sm:$0xff]  }
 0x2ad   :  { %5137 = vmatprep.subr.bf16.mxu0 %v7959_v10  ;;  %5629 = vmatprep.subr.bf16.mxu1 %v7962_v11  ;;  %v8049_v10 = vld [vmem:[#allocation2 + $0x1504] ss:$16 sps:$4 sm:$0xff]   ;;  %v8052_v11 = vld [vmem:[#allocation2 + $0x150c] ss:$16 sps:$4 sm:$0xff]  }
 0x2b0   :  { %5138 = vmatpush1.bf16.msra.mxu0 %v7957_v12  ;;  %5630 = vmatpush1.bf16.msra.mxu1 %v7960_v13  ;;  %v8047_v12 = vld [vmem:[#allocation2 + $0x1500] ss:$16 sps:$4 sm:$0xff]   ;;  %v8050_v13 = vld [vmem:[#allocation2 + $0x1508] ss:$16 sps:$4 sm:$0xff]  }
 0x2b1   :  { %5139 = vmatprep.subr.bf16.mxu0 %v7965_v14  ;;  %5631 = vmatprep.subr.bf16.mxu1 %v7968_v15  ;;  %v8055_v14 = vld [vmem:[#allocation2 + $0x1524] ss:$16 sps:$4 sm:$0xff]   ;;  %v8058_v15 = vld [vmem:[#allocation2 + $0x152c] ss:$16 sps:$4 sm:$0xff]  }
 0x2b4   :  { %5140 = vmatpush1.bf16.msra.mxu0 %v7963_v16  ;;  %5632 = vmatpush1.bf16.msra.mxu1 %v7966_v17  ;;  %v8053_v16 = vld [vmem:[#allocation2 + $0x1520] ss:$16 sps:$4 sm:$0xff]   ;;  %v8056_v17 = vld [vmem:[#allocation2 + $0x1528] ss:$16 sps:$4 sm:$0xff]  }
 0x2b5   :  { %5141 = vmatprep.subr.bf16.mxu0 %v7971_v18  ;;  %5633 = vmatprep.subr.bf16.mxu1 %v7974_v19  ;;  %v8061_v18 = vld [vmem:[#allocation2 + $0x1544] ss:$16 sps:$4 sm:$0xff]   ;;  %v8064_v19 = vld [vmem:[#allocation2 + $0x154c] ss:$16 sps:$4 sm:$0xff]  }
 0x2b8   :  { %5142 = vmatpush1.bf16.msra.mxu0 %v7969_v20  ;;  %5634 = vmatpush1.bf16.msra.mxu1 %v7972_v21  ;;  %v8059_v20 = vld [vmem:[#allocation2 + $0x1540] ss:$16 sps:$4 sm:$0xff]   ;;  %v8062_v21 = vld [vmem:[#allocation2 + $0x1548] ss:$16 sps:$4 sm:$0xff]  }
 0x2b9   :  { %5143 = vmatprep.subr.bf16.mxu0 %v7977_v22  ;;  %5635 = vmatprep.subr.bf16.mxu1 %v7980_v23  ;;  %v8067_v22 = vld [vmem:[#allocation2 + $0x1564] ss:$16 sps:$4 sm:$0xff]   ;;  %v8070_v23 = vld [vmem:[#allocation2 + $0x156c] ss:$16 sps:$4 sm:$0xff]  }
 0x2bc   :  { %5144 = vmatpush1.bf16.msra.mxu0 %v7975_v24  ;;  %5636 = vmatpush1.bf16.msra.mxu1 %v7978_v25  ;;  %v8065_v24 = vld [vmem:[#allocation2 + $0x1560] ss:$16 sps:$4 sm:$0xff]   ;;  %v8068_v25 = vld [vmem:[#allocation2 + $0x1568] ss:$16 sps:$4 sm:$0xff]  }
 0x2bd   :  { %5145 = vmatprep.subr.bf16.mxu0 %v7983_v26  ;;  %5637 = vmatprep.subr.bf16.mxu1 %v7986_v27  ;;  %v8073_v26 = vld [vmem:[#allocation2 + $0x1584] ss:$16 sps:$4 sm:$0xff]   ;;  %v8076_v27 = vld [vmem:[#allocation2 + $0x158c] ss:$16 sps:$4 sm:$0xff]  }
 0x2c0   :  { %5146 = vmatpush1.bf16.msra.mxu0 %v7981_v28  ;;  %5638 = vmatpush1.bf16.msra.mxu1 %v7984_v29  ;;  %v8071_v28 = vld [vmem:[#allocation2 + $0x1580] ss:$16 sps:$4 sm:$0xff]   ;;  %v8074_v29 = vld [vmem:[#allocation2 + $0x1588] ss:$16 sps:$4 sm:$0xff]  }
 0x2c1   :  { %5147 = vmatprep.subr.bf16.mxu0 %v7989_v30  ;;  %5639 = vmatprep.subr.bf16.mxu1 %v7992_v31  ;;  %v8079_v30 = vld [vmem:[#allocation2 + $0x15a4] ss:$16 sps:$4 sm:$0xff]   ;;  %v8082_v31 = vld [vmem:[#allocation2 + $0x15ac] ss:$16 sps:$4 sm:$0xff]  }
 0x2c4   :  { %5148 = vmatpush1.bf16.msra.mxu0 %v7987_v32  ;;  %5640 = vmatpush1.bf16.msra.mxu1 %v7990_v33  ;;  %v8077_v32 = vld [vmem:[#allocation2 + $0x15a0] ss:$16 sps:$4 sm:$0xff]   ;;  %v8080_v33 = vld [vmem:[#allocation2 + $0x15a8] ss:$16 sps:$4 sm:$0xff]  }
 0x2c5   :  { %5149 = vmatprep.subr.bf16.mxu0 %v7995_v34  ;;  %5641 = vmatprep.subr.bf16.mxu1 %v7998_v35  ;;  %v8085_v34 = vld [vmem:[#allocation2 + $0x15c4] ss:$16 sps:$4 sm:$0xff]   ;;  %v8088_v35 = vld [vmem:[#allocation2 + $0x15cc] ss:$16 sps:$4 sm:$0xff]  }
 0x2c8   :  { %5150 = vmatpush1.bf16.msra.mxu0 %v7993_v36  ;;  %5642 = vmatpush1.bf16.msra.mxu1 %v7996_v37  ;;  %v8083_v36 = vld [vmem:[#allocation2 + $0x15c0] ss:$16 sps:$4 sm:$0xff]   ;;  %v8086_v37 = vld [vmem:[#allocation2 + $0x15c8] ss:$16 sps:$4 sm:$0xff]  }
 0x2c9   :  { %5160 = vmatprep.subr.bf16.mxu0 %v8001_v39  ;;  %5652 = vmatprep.subr.bf16.mxu1 %v8004_v40  ;;  %v8094_v39 = vld [vmem:[#allocation2 + $0x15ec] ss:$16 sps:$4 sm:$0xff]   ;;  %v8089_v40 = vld [vmem:[#allocation2 + $0x15e0] ss:$16 sps:$4 sm:$0xff]  }
 0x2cb   :  { %5152 = vmatmul.mubr.bf16.vlgmr.msra.gmra.mrb[0].mxu0 %v114_v41  ;;  %5644 = vmatmul.mubr.bf16.vlgmr.msra.gmra.mrb[0].mxu1 %v114_v41  ;;  %v8092_v41 = vld [vmem:[#allocation2 + $0x15e8] ss:$16 sps:$4 sm:$0xff]  }
 0x2cc   :  { %5161 = vmatpush1.bf16.msra.mxu0 %v7999_v43  ;;  %5653 = vmatpush1.bf16.msra.mxu1 %v8002_v44  ;;  %v8097_v43 = vld [vmem:[#allocation2 + $0x1604] ss:$16 sps:$4 sm:$0xff]   ;;  %v8100_v44 = vld [vmem:[#allocation2 + $0x160c] ss:$16 sps:$4 sm:$0xff]  }
 0x2cd   :  { %5162 = vmatprep.subr.bf16.mxu0 %v8007_v45  ;;  %5654 = vmatprep.subr.bf16.mxu1 %v8010_v46  ;;  %v116_v45 = vpack.c.bf16 %v92_v42, %v92_v42  ;;  %v95_v46 = vld [vmem:[%s8485_s0 + $0xb8] sm:$0xff]  ;;  %v8187_v42 = vld [vmem:[#allocation2 + $0x17e4] ss:$16 sps:$4 sm:$0xff]  }
 0x2ce   :  { %5192 = vmatprep.mubr.bf16.mxu0 %v117_v47  ;;  %5684 = vmatprep.mubr.bf16.mxu1 %v117_v47  ;;  %v8095_v47 = vld [vmem:[#allocation2 + $0x1600] ss:$16 sps:$4 sm:$0xff]  }
 0x2d0   :  { %5163 = vmatpush1.bf16.msra.mxu0 %v8005_v48  ;;  %5655 = vmatpush1.bf16.msra.mxu1 %v8008_v49  ;;  %v8098_v48 = vld [vmem:[#allocation2 + $0x1608] ss:$16 sps:$4 sm:$0xff]   ;;  %v8103_v49 = vld [vmem:[#allocation2 + $0x1624] ss:$16 sps:$4 sm:$0xff]  }
 0x2d1   :  { %5164 = vmatprep.subr.bf16.mxu0 %v8013_v50  ;;  %5656 = vmatprep.subr.bf16.mxu1 %v8016_v51  ;;  %v8106_v50 = vld [vmem:[#allocation2 + $0x162c] ss:$16 sps:$4 sm:$0xff]   ;;  %v119_v51 = vpack.c.bf16 %v95_v46, %v95_v46  ;;  %v94_v46 = vld [vmem:[%s8485_s0 + $0xb0] sm:$0xff] }
 0x2d4   :  { %5165 = vmatpush1.bf16.msra.mxu0 %v8011_v52  ;;  %5657 = vmatpush1.bf16.msra.mxu1 %v8014_v53  ;;  %v8101_v52 = vld [vmem:[#allocation2 + $0x1620] ss:$16 sps:$4 sm:$0xff]   ;;  %v8104_v53 = vld [vmem:[#allocation2 + $0x1628] ss:$16 sps:$4 sm:$0xff]  }
 0x2d5   :  { %5166 = vmatprep.subr.bf16.mxu0 %v8019_v54  ;;  %5658 = vmatprep.subr.bf16.mxu1 %v8022_v55  ;;  %v8109_v54 = vld [vmem:[#allocation2 + $0x1644] ss:$16 sps:$4 sm:$0xff]   ;;  %v8112_v55 = vld [vmem:[#allocation2 + $0x164c] ss:$16 sps:$4 sm:$0xff]  }
 0x2d8   :  { %5167 = vmatpush1.bf16.msra.mxu0 %v8017_v56  ;;  %5659 = vmatpush1.bf16.msra.mxu1 %v8020_v57  ;;  %v8107_v56 = vld [vmem:[#allocation2 + $0x1640] ss:$16 sps:$4 sm:$0xff]   ;;  %v8110_v57 = vld [vmem:[#allocation2 + $0x1648] ss:$16 sps:$4 sm:$0xff]  }
 0x2d9   :  { %5168 = vmatprep.subr.bf16.mxu0 %v8025_v58  ;;  %5660 = vmatprep.subr.bf16.mxu1 %v8028_v59  ;;  %v8115_v58 = vld [vmem:[#allocation2 + $0x1664] ss:$16 sps:$4 sm:$0xff]   ;;  %v8118_v59 = vld [vmem:[#allocation2 + $0x166c] ss:$16 sps:$4 sm:$0xff]  }
 0x2dc   :  { %5169 = vmatpush1.bf16.msra.mxu0 %v8023_v60  ;;  %5661 = vmatpush1.bf16.msra.mxu1 %v8026_v61  ;;  %v8113_v60 = vld [vmem:[#allocation2 + $0x1660] ss:$16 sps:$4 sm:$0xff]   ;;  %v8116_v61 = vld [vmem:[#allocation2 + $0x1668] ss:$16 sps:$4 sm:$0xff]  }
 0x2dd   :  { %5170 = vmatprep.subr.bf16.mxu0 %v8031_v62  ;;  %5662 = vmatprep.subr.bf16.mxu1 %v8034_v63  ;;  %v8121_v62 = vld [vmem:[#allocation2 + $0x1684] ss:$16 sps:$4 sm:$0xff]   ;;  %v8124_v63 = vld [vmem:[#allocation2 + $0x168c] ss:$16 sps:$4 sm:$0xff]  }
 0x2e0   :  { %5171 = vmatpush1.bf16.msra.mxu0 %v8029_v0  ;;  %5663 = vmatpush1.bf16.msra.mxu1 %v8032_v1  ;;  %v8119_v0 = vld [vmem:[#allocation2 + $0x1680] ss:$16 sps:$4 sm:$0xff]   ;;  %v8122_v1 = vld [vmem:[#allocation2 + $0x1688] ss:$16 sps:$4 sm:$0xff]  }
 0x2e1   :  { %5172 = vmatprep.subr.bf16.mxu0 %v8037_v2  ;;  %5664 = vmatprep.subr.bf16.mxu1 %v8040_v3  ;;  %v8127_v2 = vld [vmem:[#allocation2 + $0x16a4] ss:$16 sps:$4 sm:$0xff]   ;;  %v8130_v3 = vld [vmem:[#allocation2 + $0x16ac] ss:$16 sps:$4 sm:$0xff]  }
 0x2e4   :  { %5173 = vmatpush1.bf16.msra.mxu0 %v8035_v4  ;;  %5665 = vmatpush1.bf16.msra.mxu1 %v8038_v5  ;;  %v8125_v4 = vld [vmem:[#allocation2 + $0x16a0] ss:$16 sps:$4 sm:$0xff]   ;;  %v8128_v5 = vld [vmem:[#allocation2 + $0x16a8] ss:$16 sps:$4 sm:$0xff]  }
 0x2e5   :  { %5174 = vmatprep.subr.bf16.mxu0 %v8043_v6  ;;  %5666 = vmatprep.subr.bf16.mxu1 %v8046_v7  ;;  %v8133_v6 = vld [vmem:[#allocation2 + $0x16c4] ss:$16 sps:$4 sm:$0xff]   ;;  %v8136_v7 = vld [vmem:[#allocation2 + $0x16cc] ss:$16 sps:$4 sm:$0xff]  }
 0x2e8   :  { %5175 = vmatpush1.bf16.msra.mxu0 %v8041_v8  ;;  %5667 = vmatpush1.bf16.msra.mxu1 %v8044_v9  ;;  %v8131_v8 = vld [vmem:[#allocation2 + $0x16c0] ss:$16 sps:$4 sm:$0xff]   ;;  %v8134_v9 = vld [vmem:[#allocation2 + $0x16c8] ss:$16 sps:$4 sm:$0xff]  }
 0x2e9   :  { %5176 = vmatprep.subr.bf16.mxu0 %v8049_v10  ;;  %5668 = vmatprep.subr.bf16.mxu1 %v8052_v11  ;;  %v8139_v10 = vld [vmem:[#allocation2 + $0x16e4] ss:$16 sps:$4 sm:$0xff]   ;;  %v8142_v11 = vld [vmem:[#allocation2 + $0x16ec] ss:$16 sps:$4 sm:$0xff]  }
 0x2ec   :  { %5177 = vmatpush1.bf16.msra.mxu0 %v8047_v12  ;;  %5669 = vmatpush1.bf16.msra.mxu1 %v8050_v13  ;;  %v8137_v12 = vld [vmem:[#allocation2 + $0x16e0] ss:$16 sps:$4 sm:$0xff]   ;;  %v8140_v13 = vld [vmem:[#allocation2 + $0x16e8] ss:$16 sps:$4 sm:$0xff]  }
 0x2ed   :  { %5178 = vmatprep.subr.bf16.mxu0 %v8055_v14  ;;  %5670 = vmatprep.subr.bf16.mxu1 %v8058_v15  ;;  %v8145_v14 = vld [vmem:[#allocation2 + $0x1704] ss:$16 sps:$4 sm:$0xff]   ;;  %v8148_v15 = vld [vmem:[#allocation2 + $0x170c] ss:$16 sps:$4 sm:$0xff]  }
 0x2f0   :  { %5179 = vmatpush1.bf16.msra.mxu0 %v8053_v16  ;;  %5671 = vmatpush1.bf16.msra.mxu1 %v8056_v17  ;;  %v8143_v16 = vld [vmem:[#allocation2 + $0x1700] ss:$16 sps:$4 sm:$0xff]   ;;  %v8146_v17 = vld [vmem:[#allocation2 + $0x1708] ss:$16 sps:$4 sm:$0xff]  }
 0x2f1   :  { %5180 = vmatprep.subr.bf16.mxu0 %v8061_v18  ;;  %5672 = vmatprep.subr.bf16.mxu1 %v8064_v19  ;;  %v8151_v18 = vld [vmem:[#allocation2 + $0x1724] ss:$16 sps:$4 sm:$0xff]   ;;  %v8154_v19 = vld [vmem:[#allocation2 + $0x172c] ss:$16 sps:$4 sm:$0xff]  }
 0x2f4   :  { %5181 = vmatpush1.bf16.msra.mxu0 %v8059_v20  ;;  %5673 = vmatpush1.bf16.msra.mxu1 %v8062_v21  ;;  %v8149_v20 = vld [vmem:[#allocation2 + $0x1720] ss:$16 sps:$4 sm:$0xff]   ;;  %v8152_v21 = vld [vmem:[#allocation2 + $0x1728] ss:$16 sps:$4 sm:$0xff]  }
 0x2f5   :  { %5182 = vmatprep.subr.bf16.mxu0 %v8067_v22  ;;  %5674 = vmatprep.subr.bf16.mxu1 %v8070_v23  ;;  %v8157_v22 = vld [vmem:[#allocation2 + $0x1744] ss:$16 sps:$4 sm:$0xff]   ;;  %v8160_v23 = vld [vmem:[#allocation2 + $0x174c] ss:$16 sps:$4 sm:$0xff]  }
 0x2f8   :  { %5183 = vmatpush1.bf16.msra.mxu0 %v8065_v24  ;;  %5675 = vmatpush1.bf16.msra.mxu1 %v8068_v25  ;;  %v8155_v24 = vld [vmem:[#allocation2 + $0x1740] ss:$16 sps:$4 sm:$0xff]   ;;  %v8158_v25 = vld [vmem:[#allocation2 + $0x1748] ss:$16 sps:$4 sm:$0xff]  }
 0x2f9   :  { %5184 = vmatprep.subr.bf16.mxu0 %v8073_v26  ;;  %5676 = vmatprep.subr.bf16.mxu1 %v8076_v27  ;;  %v8163_v26 = vld [vmem:[#allocation2 + $0x1764] ss:$16 sps:$4 sm:$0xff]   ;;  %v8166_v27 = vld [vmem:[#allocation2 + $0x176c] ss:$16 sps:$4 sm:$0xff]  }
 0x2fc   :  { %5185 = vmatpush1.bf16.msra.mxu0 %v8071_v28  ;;  %5677 = vmatpush1.bf16.msra.mxu1 %v8074_v29  ;;  %v8161_v28 = vld [vmem:[#allocation2 + $0x1760] ss:$16 sps:$4 sm:$0xff]   ;;  %v8164_v29 = vld [vmem:[#allocation2 + $0x1768] ss:$16 sps:$4 sm:$0xff]  }
 0x2fd   :  { %5186 = vmatprep.subr.bf16.mxu0 %v8079_v30  ;;  %5678 = vmatprep.subr.bf16.mxu1 %v8082_v31  ;;  %v8169_v30 = vld [vmem:[#allocation2 + $0x1784] ss:$16 sps:$4 sm:$0xff]   ;;  %v8172_v31 = vld [vmem:[#allocation2 + $0x178c] ss:$16 sps:$4 sm:$0xff]  }
 0x300   :  { %5187 = vmatpush1.bf16.msra.mxu0 %v8077_v32  ;;  %5679 = vmatpush1.bf16.msra.mxu1 %v8080_v33  ;;  %v8167_v32 = vld [vmem:[#allocation2 + $0x1780] ss:$16 sps:$4 sm:$0xff]   ;;  %v8170_v33 = vld [vmem:[#allocation2 + $0x1788] ss:$16 sps:$4 sm:$0xff]  }
 0x301   :  { %5188 = vmatprep.subr.bf16.mxu0 %v8085_v34  ;;  %5680 = vmatprep.subr.bf16.mxu1 %v8088_v35  ;;  %v8175_v34 = vld [vmem:[#allocation2 + $0x17a4] ss:$16 sps:$4 sm:$0xff]   ;;  %v8178_v35 = vld [vmem:[#allocation2 + $0x17ac] ss:$16 sps:$4 sm:$0xff]  }
 0x304   :  { %5189 = vmatpush1.bf16.msra.mxu0 %v8083_v36  ;;  %5681 = vmatpush1.bf16.msra.mxu1 %v8086_v37  ;;  %v8173_v36 = vld [vmem:[#allocation2 + $0x17a0] ss:$16 sps:$4 sm:$0xff]   ;;  %v8176_v37 = vld [vmem:[#allocation2 + $0x17a8] ss:$16 sps:$4 sm:$0xff]  }
 0x305   :  { %5190 = vmatprep.subr.bf16.mxu0 %v8091_v38  ;;  %5682 = vmatprep.subr.bf16.mxu1 %v8094_v39  ;;  %v8181_v38 = vld [vmem:[#allocation2 + $0x17c4] ss:$16 sps:$4 sm:$0xff]   ;;  %v8184_v39 = vld [vmem:[#allocation2 + $0x17cc] ss:$16 sps:$4 sm:$0xff]  }
 0x308   :  { %5191 = vmatpush1.bf16.msra.mxu0 %v8089_v40  ;;  %5683 = vmatpush1.bf16.msra.mxu1 %v8092_v41  ;;  %v8179_v40 = vld [vmem:[#allocation2 + $0x17c0] ss:$16 sps:$4 sm:$0xff]   ;;  %v8182_v41 = vld [vmem:[#allocation2 + $0x17c8] ss:$16 sps:$4 sm:$0xff]  }
 0x309   :  { %5201 = vmatprep.subr.bf16.mxu0 %v8097_v43  ;;  %5693 = vmatprep.subr.bf16.mxu1 %v8100_v44  ;;  %v8190_v43 = vld [vmem:[#allocation2 + $0x17ec] ss:$16 sps:$4 sm:$0xff]   ;;  %v8185_v44 = vld [vmem:[#allocation2 + $0x17e0] ss:$16 sps:$4 sm:$0xff]  }
 0x30b   :  { %5193 = vmatmul.mubr.bf16.vlgmr.msra.gmra.mrb[0].mxu0 %v116_v45  ;;  %5685 = vmatmul.mubr.bf16.vlgmr.msra.gmra.mrb[0].mxu1 %v116_v45  ;;  %v8188_v45 = vld [vmem:[#allocation2 + $0x17e8] ss:$16 sps:$4 sm:$0xff]  }
 0x30c   :  { %5202 = vmatpush1.bf16.msra.mxu0 %v8095_v47  ;;  %5694 = vmatpush1.bf16.msra.mxu1 %v8098_v48  ;;  %v8191_v47 = vld [vmem:[#allocation6 + $0x40] sm:$0xff]  }
 0x30d   :  { %5203 = vmatprep.subr.bf16.mxu0 %v8103_v49  ;;  %5695 = vmatprep.subr.bf16.mxu1 %v8106_v50  ;;  %v8192_v48 = vld [vmem:[#allocation6 + $0xc0] sm:$0xff]   ;;  %v118_v49 = vpack.c.bf16 %v94_v46, %v94_v46 }
 0x30e   :  { %5233 = vmatprep.mubr.bf16.mxu0 %v119_v51  ;;  %5725 = vmatprep.mubr.bf16.mxu1 %v119_v51  ;;  %v8193_v50 = vld [vmem:[#allocation6] sm:$0xff]  }
 0x30f   :  { %v8194_v51 = vld [vmem:[#allocation6 + $0x80] sm:$0xff]  }
 0x310   :  { %5204 = vmatpush1.bf16.msra.mxu0 %v8101_v52  ;;  %5696 = vmatpush1.bf16.msra.mxu1 %v8104_v53  ;;  %v8195_v52 = vld [vmem:[#allocation6 + $0x48] sm:$0xff]  }
 0x311   :  { %5205 = vmatprep.subr.bf16.mxu0 %v8109_v54  ;;  %5697 = vmatprep.subr.bf16.mxu1 %v8112_v55  ;;  %v8196_v53 = vld [vmem:[#allocation6 + $0xc8] sm:$0xff]  }
 0x312   :  { %v8197_v54 = vld [vmem:[#allocation6 + $0x8] sm:$0xff]  }
 0x313   :  { %v8198_v55 = vld [vmem:[#allocation6 + $0x88] sm:$0xff]  }
 0x314   :  { %5206 = vmatpush1.bf16.msra.mxu0 %v8107_v56  ;;  %5698 = vmatpush1.bf16.msra.mxu1 %v8110_v57  ;;  %v8199_v56 = vld [vmem:[#allocation6 + $0x50] sm:$0xff]  }
 0x315   :  { %5207 = vmatprep.subr.bf16.mxu0 %v8115_v58  ;;  %5699 = vmatprep.subr.bf16.mxu1 %v8118_v59  ;;  %v8200_v57 = vld [vmem:[#allocation6 + $0xd0] sm:$0xff]  }
 0x316   :  { %v8201_v58 = vld [vmem:[#allocation6 + $0x10] sm:$0xff]  }
 0x317   :  { %v8202_v59 = vld [vmem:[#allocation6 + $0x90] sm:$0xff]  }
 0x318   :  { %5208 = vmatpush1.bf16.msra.mxu0 %v8113_v60  ;;  %5700 = vmatpush1.bf16.msra.mxu1 %v8116_v61  ;;  %v8203_v60 = vld [vmem:[#allocation6 + $0x58] sm:$0xff]  }
 0x319   :  { %5209 = vmatprep.subr.bf16.mxu0 %v8121_v62  ;;  %5701 = vmatprep.subr.bf16.mxu1 %v8124_v63  ;;  %v8204_v61 = vld [vmem:[#allocation6 + $0xd8] sm:$0xff]  }
 0x31a   :  { %v8205_v62 = vld [vmem:[#allocation6 + $0x18] sm:$0xff]  }
 0x31b   :  { %v8206_v63 = vld [vmem:[#allocation6 + $0x98] sm:$0xff]  }
 0x31c   :  { %5210 = vmatpush1.bf16.msra.mxu0 %v8119_v0  ;;  %5702 = vmatpush1.bf16.msra.mxu1 %v8122_v1  ;;  %v8207_v0 = vld [vmem:[#allocation6 + $0x60] sm:$0xff]  }
 0x31d   :  { %5211 = vmatprep.subr.bf16.mxu0 %v8127_v2  ;;  %5703 = vmatprep.subr.bf16.mxu1 %v8130_v3  ;;  %v8208_v1 = vld [vmem:[#allocation6 + $0xe0] sm:$0xff]  }
 0x31e   :  { %v8209_v2 = vld [vmem:[#allocation6 + $0x20] sm:$0xff]  }
 0x31f   :  { %v8210_v3 = vld [vmem:[#allocation6 + $0xa0] sm:$0xff]  }
 0x320   :  { %5212 = vmatpush1.bf16.msra.mxu0 %v8125_v4  ;;  %5704 = vmatpush1.bf16.msra.mxu1 %v8128_v5  ;;  %v8211_v4 = vld [vmem:[#allocation6 + $0x68] sm:$0xff]  }
 0x321   :  { %5213 = vmatprep.subr.bf16.mxu0 %v8133_v6  ;;  %5705 = vmatprep.subr.bf16.mxu1 %v8136_v7  ;;  %v8212_v5 = vld [vmem:[#allocation6 + $0xe8] sm:$0xff]  }
 0x322   :  { %v8213_v6 = vld [vmem:[#allocation6 + $0x28] sm:$0xff]  }
 0x323   :  { %v8214_v7 = vld [vmem:[#allocation6 + $0xa8] sm:$0xff]  }
 0x324   :  { %5214 = vmatpush1.bf16.msra.mxu0 %v8131_v8  ;;  %5706 = vmatpush1.bf16.msra.mxu1 %v8134_v9  ;;  %v8215_v8 = vld [vmem:[#allocation6 + $0x70] sm:$0xff]  }
 0x325   :  { %5215 = vmatprep.subr.bf16.mxu0 %v8139_v10  ;;  %5707 = vmatprep.subr.bf16.mxu1 %v8142_v11  ;;  %v8216_v9 = vld [vmem:[#allocation6 + $0xf0] sm:$0xff]  }
 0x326   :  { %v8217_v10 = vld [vmem:[#allocation6 + $0x30] sm:$0xff]  }
 0x327   :  { %v8218_v11 = vld [vmem:[#allocation6 + $0xb0] sm:$0xff]  }
 0x328   :  { %5216 = vmatpush1.bf16.msra.mxu0 %v8137_v12  ;;  %5708 = vmatpush1.bf16.msra.mxu1 %v8140_v13  ;;  %v8219_v12 = vld [vmem:[#allocation6 + $0x78] sm:$0xff]  }
 0x329   :  { %5217 = vmatprep.subr.bf16.mxu0 %v8145_v14  ;;  %5709 = vmatprep.subr.bf16.mxu1 %v8148_v15  ;;  %v8220_v13 = vld [vmem:[#allocation6 + $0xf8] sm:$0xff]  }
 0x32a   :  { %v8221_v14 = vld [vmem:[#allocation6 + $0x38] sm:$0xff]  }
 0x32b   :  { %v8222_v15 = vld [vmem:[#allocation6 + $0xb8] sm:$0xff]  }
 0x32c   :  { %5218 = vmatpush1.bf16.msra.mxu0 %v8143_v16  ;;  %5710 = vmatpush1.bf16.msra.mxu1 %v8146_v17  ;;  %v890_v16 = vlaneseq }
 0x32d   :  { %5219 = vmatprep.subr.bf16.mxu0 %v8151_v18  ;;  %5711 = vmatprep.subr.bf16.mxu1 %v8154_v19 }
 0x32e   :  { %v891_v17 = vshrl.u32 %v890_v16, 7 }
 0x330   :  { %5220 = vmatpush1.bf16.msra.mxu0 %v8149_v20  ;;  %5712 = vmatpush1.bf16.msra.mxu1 %v8152_v21  ;;  %v892_v18 = vsub.s32 0, %v891_v17  ;;  %v900_v19 = vsub.s32 2, %v891_v17  ;;  %v888_v20 = vld [vmem:[#allocation4] sm:$0xf]  ;;  %v896_v21 = vsub.s32 1, %v891_v17 }
 0x331   :  { %5221 = vmatprep.subr.bf16.mxu0 %v8157_v22  ;;  %5713 = vmatprep.subr.bf16.mxu1 %v8160_v23  ;;  %v904_v22 = vsub.s32 3, %v891_v17 }
 0x332   :  { %v893_v23 = vrot.slane %v888_v20, %v892_v18 }
 0x334   :  { %5222 = vmatpush1.bf16.msra.mxu0 %v8155_v24  ;;  %5714 = vmatpush1.bf16.msra.mxu1 %v8158_v25  ;;  %v901_v24 = vrot.slane %v888_v20, %v900_v19  ;;  %v897_v25 = vrot.slane %v888_v20, %v896_v21 }
 0x335   :  { %5223 = vmatprep.subr.bf16.mxu0 %v8163_v26  ;;  %5715 = vmatprep.subr.bf16.mxu1 %v8166_v27  ;;  %v905_v26 = vrot.slane %v888_v20, %v904_v22 }
 0x338   :  { %5224 = vmatpush1.bf16.msra.mxu0 %v8161_v28  ;;  %5716 = vmatpush1.bf16.msra.mxu1 %v8164_v29 }
 0x339   :  { %5225 = vmatprep.subr.bf16.mxu0 %v8169_v30  ;;  %5717 = vmatprep.subr.bf16.mxu1 %v8172_v31 }
 0x33c   :  { %5226 = vmatpush1.bf16.msra.mxu0 %v8167_v32  ;;  %5718 = vmatpush1.bf16.msra.mxu1 %v8170_v33 }
 0x33d   :  { %5227 = vmatprep.subr.bf16.mxu0 %v8175_v34  ;;  %5719 = vmatprep.subr.bf16.mxu1 %v8178_v35 }
 0x340   :  { %5228 = vmatpush1.bf16.msra.mxu0 %v8173_v36  ;;  %5720 = vmatpush1.bf16.msra.mxu1 %v8176_v37 }
 0x341   :  { %5229 = vmatprep.subr.bf16.mxu0 %v8181_v38  ;;  %5721 = vmatprep.subr.bf16.mxu1 %v8184_v39 }
 0x344   :  { %5230 = vmatpush1.bf16.msra.mxu0 %v8179_v40  ;;  %5722 = vmatpush1.bf16.msra.mxu1 %v8182_v41 }
 0x345   :  { %5231 = vmatprep.subr.bf16.mxu0 %v8187_v42  ;;  %5723 = vmatprep.subr.bf16.mxu1 %v8190_v43 }
 0x348   :  { %5232 = vmatpush1.bf16.msra.mxu0 %v8185_v44  ;;  %5724 = vmatpush1.bf16.msra.mxu1 %v8188_v45 }
 0x349   :  { %6895 = vmatprep.subr.bf16.mxu0 %v8191_v47  ;;  %6917 = vmatprep.subr.bf16.mxu1 %v8192_v48 }
 0x34b   :  { %5234 = vmatmul.mubr.bf16.vlgmr.msra.gmra.mrb[0].mxu0 %v118_v49  ;;  %5726 = vmatmul.mubr.bf16.vlgmr.msra.gmra.mrb[0].mxu1 %v118_v49  ;;  %v6862_v49 = vld [vmem:[#allocation7] ss:$0 sm:$0xff] }
 0x34c   :  { %6896 = vmatpush3.bf16.msra.mxu0 %v8193_v50  ;;  %6918 = vmatpush3.bf16.msra.mxu1 %v8194_v51 }
 0x34d   :  { %6897 = vmatprep.subr.bf16.mxu0 %v8195_v52  ;;  %6919 = vmatprep.subr.bf16.mxu1 %v8196_v53 }
 0x350   :  { %6898 = vmatpush3.bf16.msra.mxu0 %v8197_v54  ;;  %6920 = vmatpush3.bf16.msra.mxu1 %v8198_v55 }
 0x351   :  { %6899 = vmatprep.subr.bf16.mxu0 %v8199_v56  ;;  %6921 = vmatprep.subr.bf16.mxu1 %v8200_v57 }
 0x354   :  { %6900 = vmatpush3.bf16.msra.mxu0 %v8201_v58  ;;  %6922 = vmatpush3.bf16.msra.mxu1 %v8202_v59 }
 0x355   :  { %6901 = vmatprep.subr.bf16.mxu0 %v8203_v60  ;;  %6923 = vmatprep.subr.bf16.mxu1 %v8204_v61 }
 0x358   :  { %6902 = vmatpush3.bf16.msra.mxu0 %v8205_v62  ;;  %6924 = vmatpush3.bf16.msra.mxu1 %v8206_v63 }
 0x359   :  { %6903 = vmatprep.subr.bf16.mxu0 %v8207_v0  ;;  %6925 = vmatprep.subr.bf16.mxu1 %v8208_v1 }
 0x35c   :  { %6904 = vmatpush3.bf16.msra.mxu0 %v8209_v2  ;;  %6926 = vmatpush3.bf16.msra.mxu1 %v8210_v3 }
 0x35d   :  { %6905 = vmatprep.subr.bf16.mxu0 %v8211_v4  ;;  %6927 = vmatprep.subr.bf16.mxu1 %v8212_v5 }
 0x360   :  { %6906 = vmatpush3.bf16.msra.mxu0 %v8213_v6  ;;  %6928 = vmatpush3.bf16.msra.mxu1 %v8214_v7 }
 0x361   :  { %6907 = vmatprep.subr.bf16.mxu0 %v8215_v8  ;;  %6929 = vmatprep.subr.bf16.mxu1 %v8216_v9 }
 0x364   :  { %6908 = vmatpush3.bf16.msra.mxu0 %v8217_v10  ;;  %6930 = vmatpush3.bf16.msra.mxu1 %v8218_v11 }
 0x365   :  { %6909 = vmatprep.subr.bf16.mxu0 %v8219_v12  ;;  %6931 = vmatprep.subr.bf16.mxu1 %v8220_v13 }
 0x368   :  { %6910 = vmatpush3.bf16.msra.mxu0 %v8221_v14  ;;  %6932 = vmatpush3.bf16.msra.mxu1 %v8222_v15 }
 0x41e   :  { %v5235_v27 = vpop.f32.mrb[0].mxu0  ;;  %v5727_v28 = vpop.f32.mrb[0].mxu1 }
 0x41f   :  { %v6939_v29 = vadd.f32 %v5235_v27, %v893_v23  ;;  %v6941_v30 = vadd.f32 %v5727_v28, %v901_v24  ;;  %v5237_v31 = vpop.f32.mrb[1].mxu0  ;;  %v5729_v32 = vpop.f32.mrb[1].mxu1 }
 0x420   :  { %v6940_v33 = vadd.f32 %v5237_v31, %v897_v25  ;;  %v6942_v34 = vadd.f32 %v5729_v32, %v905_v26  ;;  %v5239_v35 = vpop.f32.mrb[2].mxu0  ;;  %v5731_v36 = vpop.f32.mrb[2].mxu1 }
 0x421   :  { %v5734_v37 = vmax.f32 %v6939_v29, 0.0  ;;  %v5736_v38 = vmax.f32 %v6941_v30, 0.0  ;;  %v5240_v39 = vpop.f32.mrb[3].mxu0  ;;  %v5732_v40 = vpop.f32.mrb[3].mxu1 }
 0x422   :  { %v5735_v41 = vmax.f32 %v6940_v33, 0.0  ;;  %v5737_v42 = vmax.f32 %v6942_v34, 0.0 }
 0x423   :  { %v5738_v45 = vpack.c.bf16 %v5734_v37, %v5734_v37  ;;  %v5740_v46 = vpack.c.bf16 %v5736_v38, %v5736_v38 }
 0x424   :  { %v5739_v43 = vpack.c.bf16 %v5735_v41, %v5735_v41  ;;  %v5741_v44 = vpack.c.bf16 %v5737_v42, %v5737_v42 }
 0x426   :  { %6037 = vmatprep.mubr.bf16.mxu0 %v5739_v43  ;;  %6077 = vmatprep.mubr.bf16.mxu1 %v5741_v44 }
 0x427   :  { %6038 = vmatmul.mubr.bf16.vlgmr.msra.gmra.mrb[4].mxu0 %v5738_v45  ;;  %6078 = vmatmul.mubr.bf16.vlgmr.msra.gmra.mrb[4].mxu1 %v5740_v46 }
 0x4fa   :  { %v6911_v47 = vpop.f32.mrb[4].mxu0  ;;  %v6933_v48 = vpop.f32.mrb[4].mxu1 }
 0x4fb   :  { %v6912_v50 = vpop.f32.mrb[5].mxu0  ;;  %v6934_v51 = vpop.f32.mrb[5].mxu1 }
 0x4fc   :  { %v6913_v52 = vadd.f32 %v6912_v50, %v6911_v47  ;;  %v6935_v53 = vadd.f32 %v6934_v51, %v6933_v48  ;;  %v6914_v54 = vpop.f32.mrb[6].mxu0  ;;  %v6936_v55 = vpop.f32.mrb[6].mxu1 }
 0x4fd   :  { %v6915_v56 = vpop.f32.mrb[7].mxu0  ;;  %v6937_v57 = vpop.f32.mrb[7].mxu1 }
 0x4fe   :  { %v6040_v58 = vadd.f32 %v6913_v52, %v6862_v49 }
 0x500   :  { %v6080_v59 = vadd.f32 %v6935_v53, %v6040_v58 }
 0x502   :  { %v6085_v60 = vmax.f32 %v6080_v59, 0.0 }
 0x504   :  { %6086 = vst [vmem:[%s8490_s5] sm:$0xff] %v6085_v60 }
 0x505   :  { %6091 = vsyncpa [#allocation3], 1 }
 0x506   :  { %6092 = vsyncpa [#allocation5], 1 }
 0x507   :  { %6093 = vsyncpa [#allocation8], 1 }

</bundles_post_ra>
